<compile_context>
chip_gen: v7x
topology: tpu7x:2x2x1
jax: 0.10.0
libtpu: 0.0.40
codegen_flags: <defaults>
</compile_context>

<pallas_src>
import functools

import numpy as np
import jax
import jax.numpy as jnp
from jax.experimental import pallas as pl
from jax.experimental.pallas import tpu as pltpu


# ------------------------------ fused kernel --------------------------------

def _fused_interaction_kernel(x_ref, w1_ref, w2_ref, w3_ref, b3_ref, st_ref,
                              mask_ref, o_ref, xp_ref, *, H, W, eps, neg_slope):
    # x_ref   : (1, C, H*W)            input activations (channel-major, lane dense)
    # w*_ref  : (9, Cout, Cin)         conv weights, tap-major (ky*3+kx)
    # b3_ref  : (C, 1)                 bias of the final conv
    # st_ref  : (1, C, 4)              [gamma1, beta1, gamma2, beta2] per channel
    # mask_ref: (1, NV)                1.0 on real pixels, 0.0 on padding columns
    # o_ref   : (1, C, H*W)            output
    # xp_ref  : (C, (H+2)*(W+2))       zero-padded activation scratch (compute dtype)
    C = x_ref.shape[1]
    Wp = W + 2
    NV = H * Wp - 2            # number of computed output columns (incl. junk pad cols)
    base = Wp + 1              # flat padded index of pixel (0, 0)
    inv_n = 1.0 / float(H * W)

    fmask = mask_ref[...]      # (1, NV) f32

    # ---- build the zero-padded, flattened input in VMEM (no HBM pad copies) ----
    xp_ref[...] = jnp.zeros_like(xp_ref)
    x = x_ref[0].astype(xp_ref.dtype)                       # (C, H*W)
    for h in range(H):
        xp_ref[:, pl.ds(base + h * Wp, W)] = x[:, h * W:(h + 1) * W]

    def conv(w_ref):
        # 9 tap matmuls: acc(C, NV) += W_k(Cout,Cin) @ shifted slice(Cin, NV).
        # Each tap is a lane-offset slice of the padded slab (no reshapes).
        xp = xp_ref[...]                                    # (C, (H+2)*(W+2))
        acc = jnp.zeros((C, NV), jnp.float32)
        for k in range(9):                                  # static unroll
            dy, dx = k // 3, k % 3
            start = base + (dy - 1) * Wp + (dx - 1)
            acc = acc + jnp.dot(w_ref[k], xp[:, start:start + NV],
                                preferred_element_type=jnp.float32)
        return acc

    def adain_lrelu(acc, gamma, beta):
        # One-pass masked stats over the H*W valid pixels (conv bias cancels here).
        am = acc * fmask
        mean = jnp.sum(am, axis=1, keepdims=True) * inv_n               # (C, 1)
        var = jnp.sum(am * acc, axis=1, keepdims=True) * inv_n - mean * mean
        scale = (1.0 + gamma) * jax.lax.rsqrt(var + eps)                # (C, 1)
        offset = beta - mean * scale                                    # (C, 1)
        y = acc * scale + offset
        y = jnp.where(y > 0, y, neg_slope * y)
        return y * fmask        # keep padding columns exactly zero for the next conv

    st = st_ref[0]              # (C, 4)

    # ---- layer 1: conv + AdaIN + LeakyReLU ----
    y = adain_lrelu(conv(w1_ref), st[:, 0:1], st[:, 1:2])
    xp_ref[:, pl.ds(base, NV)] = y.astype(xp_ref.dtype)

    # ---- layer 2: conv + AdaIN + LeakyReLU ----
    y = adain_lrelu(conv(w2_ref), st[:, 2:3], st[:, 3:4])
    xp_ref[:, pl.ds(base, NV)] = y.astype(xp_ref.dtype)

    # ---- layer 3: conv + bias ----
    acc = conv(w3_ref) + b3_ref[...]
    # compact (C, NV) -> (C, H*W): drop the 2 padding columns per image row,
    # then one dense 256-lane store to the output block.
    rows = [acc[:, h * Wp:h * Wp + W] for h in range(H)]
    o_ref[0] = jnp.concatenate(rows, axis=1).astype(o_ref.dtype)


# -------------------------------- wrapper ------------------------------------

def interaction_module_forward(params, x_nchw, s, *, compute_dtype=jnp.float32):
    """Pallas forward of InteractionModule. x_nchw: (B,C,H,W) f32, s: (B,style_dim)."""
    B, C, H, W = x_nchw.shape
    HW = H * W
    Wp = W + 2
    NV = H * Wp - 2
    P = (H + 2) * Wp

    # Tiny AdaIN style FC (nn.Linear) done as plain-JAX glue -- far too small to
    # benefit from a kernel.  h = s @ W^T + b ; gamma = h[:, :C], beta = h[:, C:]
    h1 = s @ params['fc1_w'].T + params['fc1_b']
    h2 = s @ params['fc2_w'].T + params['fc2_b']
    styles = jnp.stack([h1[:, :C], h1[:, C:], h2[:, :C], h2[:, C:]],
                       axis=-1).astype(jnp.float32)                       # (B, C, 4)

    def prep_w(w_oihw):   # (Cout,Cin,3,3) -> (9, Cout, Cin), tap-major (ky*3+kx)
        return jnp.transpose(w_oihw, (2, 3, 0, 1)).reshape(9, C, C).astype(compute_dtype)

    w1, w2, w3 = prep_w(params['w1']), prep_w(params['w2']), prep_w(params['w3'])
    # conv1/conv2 biases cancel exactly under InstanceNorm2d(affine=False).
    b3 = params['b3'].reshape(C, 1).astype(jnp.float32)
    mask = jnp.asarray((np.arange(NV) % Wp) < W, jnp.float32).reshape(1, NV)

    x2d = x_nchw.reshape(B, C, HW)    # free bitcast; lane-dense (256) blocks

    kernel = functools.partial(_fused_interaction_kernel, H=H, W=W,
                               eps=1e-5, neg_slope=0.2)
    const3 = lambda b: (0, 0, 0)
    out = pl.pallas_call(
        kernel,
        out_shape=jax.ShapeDtypeStruct((B, C, HW), x_nchw.dtype),
        grid=(B,),
        in_specs=[
            pl.BlockSpec((1, C, HW), lambda b: (b, 0, 0)),   # x
            pl.BlockSpec((9, C, C), const3),                 # w1 (DMA'd once)
            pl.BlockSpec((9, C, C), const3),                 # w2 (DMA'd once)
            pl.BlockSpec((9, C, C), const3),                 # w3 (DMA'd once)
            pl.BlockSpec((C, 1), lambda b: (0, 0)),          # b3
            pl.BlockSpec((1, C, 4), lambda b: (b, 0, 0)),    # per-batch AdaIN params
            pl.BlockSpec((1, NV), lambda b: (0, 0)),         # valid-pixel mask
        ],
        out_specs=pl.BlockSpec((1, C, HW), lambda b: (b, 0, 0)),
        scratch_shapes=[pltpu.VMEM((C, P), compute_dtype)],
        compiler_params=pltpu.CompilerParams(
            dimension_semantics=("parallel",)),
    )(x2d, w1, w2, w3, b3, styles, mask)
    return out.reshape(B, C, H, W)


# ---------------------- pure-JAX reference (for checking) --------------------

def _ref_forward(params, x, s):
    C = x.shape[1]

    def conv(x, w, b):
        y = jax.lax.conv_general_dilated(
            x, w, window_strides=(1, 1), padding='SAME',
            dimension_numbers=('NCHW', 'OIHW', 'NCHW'))
        return y + b.reshape(1, -1, 1, 1)

    def adain(x, gamma, beta):
        mean = jnp.mean(x, axis=(2, 3), keepdims=True)
        var = jnp.mean((x - mean) ** 2, axis=(2, 3), keepdims=True)
        xn = (x - mean) * jax.lax.rsqrt(var + 1e-5)
        return (1.0 + gamma[:, :, None, None]) * xn + beta[:, :, None, None]

    def lrelu(x):
        return jnp.where(x > 0, x, 0.2 * x)

    h1 = s @ params['fc1_w'].T + params['fc1_b']
    h2 = s @ params['fc2_w'].T + params['fc2_b']
    g1, b1 = h1[:, :C], h1[:, C:]
    g2, b2 = h2[:, :C], h2[:, C:]
    y = lrelu(adain(conv(x, params['w1'], params['b1']), g1, b1))
    y = lrelu(adain(conv(y, params['w2'], params['b2']), g2, b2))
    return conv(y, params['w3'], params['b3'])


# ---------------------------------- main --------------------------------------

def _init_params(key, dim, style_dim):
    ks = jax.random.split(key, 10)
    cb = 1.0 / np.sqrt(dim * 9)
    fb = 1.0 / np.sqrt(style_dim)

    def u(k, shape, bound):
        return jax.random.uniform(k, shape, jnp.float32, -bound, bound)

    return dict(
        w1=u(ks[0], (dim, dim, 3, 3), cb), b1=u(ks[1], (dim,), cb),
        w2=u(ks[2], (dim, dim, 3, 3), cb), b2=u(ks[3], (dim,), cb),
        w3=u(ks[4], (dim, dim, 3, 3), cb), b3=u(ks[5], (dim,), cb),
        fc1_w=u(ks[6], (2 * dim, style_dim), fb), fc1_b=u(ks[7], (2 * dim,), fb),
        fc2_w=u(ks[8], (2 * dim, style_dim), fb), fc2_b=u(ks[9], (2 * dim,), fb),
    )


if __name__ == "__main__":
    B, C, H, W = 2, 16, 16, 16          # dim_out = 16
    style_dim = 32

    key = jax.random.PRNGKey(0)
    kx, ks_, kp = jax.random.split(key, 3)
    x = jax.random.normal(kx, (B, C, H, W), jnp.float32)    # NCHW, as in PyTorch
    s = jax.random.normal(ks_, (B, style_dim), jnp.float32)
    params = _init_params(kp, C, style_dim)

    # f32 MXU operands: bit-accurate path, checked tightly against the reference.
    fwd = jax.jit(functools.partial(interaction_module_forward,
                                    compute_dtype=jnp.float32))
    out = jax.block_until_ready(fwd(params, x, s))
    ref = _ref_forward(params, x, s)
    assert out.shape == (B, C, H, W)
    err = float(jnp.max(jnp.abs(out - ref)))
    assert jnp.allclose(out, ref, atol=1e-4, rtol=1e-4), err

    # bf16 MXU operands (v6e/v7x fast path); f32 accumulation + f32 norm math,
    # so only a loose sanity bound applies.
    fwd_bf16 = jax.jit(functools.partial(interaction_module_forward,
                                         compute_dtype=jnp.bfloat16))
    out_bf16 = jax.block_until_ready(fwd_bf16(params, x, s))
    err_bf16 = float(jnp.max(jnp.abs(out_bf16 - ref)))
    assert np.isfinite(err_bf16) and err_bf16 < 0.5, err_bf16

    print("KERNEL_OK")
</pallas_src>

<mosaic_0001>
module attributes {stable_mosaic.version = 11 : i64} {
  func.func @_fused_interaction_kernel(%arg0: i32, %arg1: memref<1x16x256xf32, #tpu.memory_space<vmem>>, %arg2: memref<9x16x16xf32, #tpu.memory_space<vmem>>, %arg3: memref<9x16x16xf32, #tpu.memory_space<vmem>>, %arg4: memref<9x16x16xf32, #tpu.memory_space<vmem>>, %arg5: memref<16x1xf32, #tpu.memory_space<vmem>>, %arg6: memref<1x16x4xf32, #tpu.memory_space<vmem>>, %arg7: memref<1x286xf32, #tpu.memory_space<vmem>>, %arg8: memref<1x16x256xf32, #tpu.memory_space<vmem>>, %arg9: memref<16x324xf32, #tpu.memory_space<vmem>>) attributes {dimension_semantics = [#tpu.dimension_semantics<parallel>], iteration_bounds = array<i64: 2>, scalar_prefetch = 0 : i64, scratch_operands = 1 : i64, tpu.core_type = #tpu.core_type<tc>, window_params = [{transform_indices = @transform_0, window_bounds = array<i64: 1, 16, 256>}, {pipeline_mode = #tpu.pipeline_mode<synchronous>, transform_indices = @transform_1, window_bounds = array<i64: 9, 16, 16>}, {pipeline_mode = #tpu.pipeline_mode<synchronous>, transform_indices = @transform_2, window_bounds = array<i64: 9, 16, 16>}, {pipeline_mode = #tpu.pipeline_mode<synchronous>, transform_indices = @transform_3, window_bounds = array<i64: 9, 16, 16>}, {pipeline_mode = #tpu.pipeline_mode<synchronous>, transform_indices = @transform_4, window_bounds = array<i64: 16, 1>}, {transform_indices = @transform_5, window_bounds = array<i64: 1, 16, 4>}, {pipeline_mode = #tpu.pipeline_mode<synchronous>, transform_indices = @transform_6, window_bounds = array<i64: 1, 286>}, {transform_indices = @transform_7, window_bounds = array<i64: 1, 16, 256>}]} {
    %c0 = arith.constant 0 : index
    %c0_0 = arith.constant 0 : index
    %0 = vector.load %arg7[%c0, %c0_0] : memref<1x286xf32, #tpu.memory_space<vmem>>, vector<1x286xf32>
    %cst = arith.constant 0.000000e+00 : f32
    %1 = vector.broadcast %cst : f32 to vector<16x324xf32>
    %c0_1 = arith.constant 0 : index
    %c0_2 = arith.constant 0 : index
    %2 = vector.load %arg9[%c0_1, %c0_2] : memref<16x324xf32, #tpu.memory_space<vmem>>, vector<16x324xf32>
    tpu.vector_store %arg9[%c0_1, %c0_2], %1 {strides = array<i32>} : memref<16x324xf32, #tpu.memory_space<vmem>>, vector<16x324xf32>,
    %c0_3 = arith.constant 0 : index
    %c0_4 = arith.constant 0 : index
    %c0_5 = arith.constant 0 : index
    %3 = vector.load %arg1[%c0_3, %c0_4, %c0_5] : memref<1x16x256xf32, #tpu.memory_space<vmem>>, vector<1x16x256xf32>
    %4 = vector.shape_cast %3 : vector<1x16x256xf32> to vector<16x256xf32>
    %5 = vector.extract_strided_slice %4 {offsets = [0, 0], sizes = [16, 16], strides = [1, 1]} : vector<16x256xf32> to vector<16x16xf32>
    %c0_6 = arith.constant 0 : index
    %c19 = arith.constant 19 : index
    %6 = vector.load %arg9[%c0_6, %c19] : memref<16x324xf32, #tpu.memory_space<vmem>>, vector<16x16xf32>
    tpu.vector_store %arg9[%c0_6, %c19], %5 {strides = array<i32>} : memref<16x324xf32, #tpu.memory_space<vmem>>, vector<16x16xf32>,
    %7 = vector.extract_strided_slice %4 {offsets = [0, 16], sizes = [16, 16], strides = [1, 1]} : vector<16x256xf32> to vector<16x16xf32>
    %c0_7 = arith.constant 0 : index
    %c37 = arith.constant 37 : index
    %8 = vector.load %arg9[%c0_7, %c37] : memref<16x324xf32, #tpu.memory_space<vmem>>, vector<16x16xf32>
    tpu.vector_store %arg9[%c0_7, %c37], %7 {strides = array<i32>} : memref<16x324xf32, #tpu.memory_space<vmem>>, vector<16x16xf32>,
    %9 = vector.extract_strided_slice %4 {offsets = [0, 32], sizes = [16, 16], strides = [1, 1]} : vector<16x256xf32> to vector<16x16xf32>
    %c0_8 = arith.constant 0 : index
    %c55 = arith.constant 55 : index
    %10 = vector.load %arg9[%c0_8, %c55] : memref<16x324xf32, #tpu.memory_space<vmem>>, vector<16x16xf32>
    tpu.vector_store %arg9[%c0_8, %c55], %9 {strides = array<i32>} : memref<16x324xf32, #tpu.memory_space<vmem>>, vector<16x16xf32>,
    %11 = vector.extract_strided_slice %4 {offsets = [0, 48], sizes = [16, 16], strides = [1, 1]} : vector<16x256xf32> to vector<16x16xf32>
    %c0_9 = arith.constant 0 : index
    %c73 = arith.constant 73 : index
    %12 = vector.load %arg9[%c0_9, %c73] : memref<16x324xf32, #tpu.memory_space<vmem>>, vector<16x16xf32>
    tpu.vector_store %arg9[%c0_9, %c73], %11 {strides = array<i32>} : memref<16x324xf32, #tpu.memory_space<vmem>>, vector<16x16xf32>,
    %13 = vector.extract_strided_slice %4 {offsets = [0, 64], sizes = [16, 16], strides = [1, 1]} : vector<16x256xf32> to vector<16x16xf32>
    %c0_10 = arith.constant 0 : index
    %c91 = arith.constant 91 : index
    %14 = vector.load %arg9[%c0_10, %c91] : memref<16x324xf32, #tpu.memory_space<vmem>>, vector<16x16xf32>
    tpu.vector_store %arg9[%c0_10, %c91], %13 {strides = array<i32>} : memref<16x324xf32, #tpu.memory_space<vmem>>, vector<16x16xf32>,
    %15 = vector.extract_strided_slice %4 {offsets = [0, 80], sizes = [16, 16], strides = [1, 1]} : vector<16x256xf32> to vector<16x16xf32>
    %c0_11 = arith.constant 0 : index
    %c109 = arith.constant 109 : index
    %16 = vector.load %arg9[%c0_11, %c109] : memref<16x324xf32, #tpu.memory_space<vmem>>, vector<16x16xf32>
    tpu.vector_store %arg9[%c0_11, %c109], %15 {strides = array<i32>} : memref<16x324xf32, #tpu.memory_space<vmem>>, vector<16x16xf32>,
    %17 = vector.extract_strided_slice %4 {offsets = [0, 96], sizes = [16, 16], strides = [1, 1]} : vector<16x256xf32> to vector<16x16xf32>
    %c0_12 = arith.constant 0 : index
    %c127 = arith.constant 127 : index
    %18 = vector.load %arg9[%c0_12, %c127] : memref<16x324xf32, #tpu.memory_space<vmem>>, vector<16x16xf32>
    tpu.vector_store %arg9[%c0_12, %c127], %17 {strides = array<i32>} : memref<16x324xf32, #tpu.memory_space<vmem>>, vector<16x16xf32>,
    %19 = vector.extract_strided_slice %4 {offsets = [0, 112], sizes = [16, 16], strides = [1, 1]} : vector<16x256xf32> to vector<16x16xf32>
    %c0_13 = arith.constant 0 : index
    %c145 = arith.constant 145 : index
    %20 = vector.load %arg9[%c0_13, %c145] : memref<16x324xf32, #tpu.memory_space<vmem>>, vector<16x16xf32>
    tpu.vector_store %arg9[%c0_13, %c145], %19 {strides = array<i32>} : memref<16x324xf32, #tpu.memory_space<vmem>>, vector<16x16xf32>,
    %21 = vector.extract_strided_slice %4 {offsets = [0, 128], sizes = [16, 16], strides = [1, 1]} : vector<16x256xf32> to vector<16x16xf32>
    %c0_14 = arith.constant 0 : index
    %c163 = arith.constant 163 : index
    %22 = vector.load %arg9[%c0_14, %c163] : memref<16x324xf32, #tpu.memory_space<vmem>>, vector<16x16xf32>
    tpu.vector_store %arg9[%c0_14, %c163], %21 {strides = array<i32>} : memref<16x324xf32, #tpu.memory_space<vmem>>, vector<16x16xf32>,
    %23 = vector.extract_strided_slice %4 {offsets = [0, 144], sizes = [16, 16], strides = [1, 1]} : vector<16x256xf32> to vector<16x16xf32>
    %c0_15 = arith.constant 0 : index
    %c181 = arith.constant 181 : index
    %24 = vector.load %arg9[%c0_15, %c181] : memref<16x324xf32, #tpu.memory_space<vmem>>, vector<16x16xf32>
    tpu.vector_store %arg9[%c0_15, %c181], %23 {strides = array<i32>} : memref<16x324xf32, #tpu.memory_space<vmem>>, vector<16x16xf32>,
    %25 = vector.extract_strided_slice %4 {offsets = [0, 160], sizes = [16, 16], strides = [1, 1]} : vector<16x256xf32> to vector<16x16xf32>
    %c0_16 = arith.constant 0 : index
    %c199 = arith.constant 199 : index
    %26 = vector.load %arg9[%c0_16, %c199] : memref<16x324xf32, #tpu.memory_space<vmem>>, vector<16x16xf32>
    tpu.vector_store %arg9[%c0_16, %c199], %25 {strides = array<i32>} : memref<16x324xf32, #tpu.memory_space<vmem>>, vector<16x16xf32>,
    %27 = vector.extract_strided_slice %4 {offsets = [0, 176], sizes = [16, 16], strides = [1, 1]} : vector<16x256xf32> to vector<16x16xf32>
    %c0_17 = arith.constant 0 : index
    %c217 = arith.constant 217 : index
    %28 = vector.load %arg9[%c0_17, %c217] : memref<16x324xf32, #tpu.memory_space<vmem>>, vector<16x16xf32>
    tpu.vector_store %arg9[%c0_17, %c217], %27 {strides = array<i32>} : memref<16x324xf32, #tpu.memory_space<vmem>>, vector<16x16xf32>,
    %29 = vector.extract_strided_slice %4 {offsets = [0, 192], sizes = [16, 16], strides = [1, 1]} : vector<16x256xf32> to vector<16x16xf32>
    %c0_18 = arith.constant 0 : index
    %c235 = arith.constant 235 : index
    %30 = vector.load %arg9[%c0_18, %c235] : memref<16x324xf32, #tpu.memory_space<vmem>>, vector<16x16xf32>
    tpu.vector_store %arg9[%c0_18, %c235], %29 {strides = array<i32>} : memref<16x324xf32, #tpu.memory_space<vmem>>, vector<16x16xf32>,
    %31 = vector.extract_strided_slice %4 {offsets = [0, 208], sizes = [16, 16], strides = [1, 1]} : vector<16x256xf32> to vector<16x16xf32>
    %c0_19 = arith.constant 0 : index
    %c253 = arith.constant 253 : index
    %32 = vector.load %arg9[%c0_19, %c253] : memref<16x324xf32, #tpu.memory_space<vmem>>, vector<16x16xf32>
    tpu.vector_store %arg9[%c0_19, %c253], %31 {strides = array<i32>} : memref<16x324xf32, #tpu.memory_space<vmem>>, vector<16x16xf32>,
    %33 = vector.extract_strided_slice %4 {offsets = [0, 224], sizes = [16, 16], strides = [1, 1]} : vector<16x256xf32> to vector<16x16xf32>
    %c0_20 = arith.constant 0 : index
    %c271 = arith.constant 271 : index
    %34 = vector.load %arg9[%c0_20, %c271] : memref<16x324xf32, #tpu.memory_space<vmem>>, vector<16x16xf32>
    tpu.vector_store %arg9[%c0_20, %c271], %33 {strides = array<i32>} : memref<16x324xf32, #tpu.memory_space<vmem>>, vector<16x16xf32>,
    %35 = vector.extract_strided_slice %4 {offsets = [0, 240], sizes = [16, 16], strides = [1, 1]} : vector<16x256xf32> to vector<16x16xf32>
    %c0_21 = arith.constant 0 : index
    %c289 = arith.constant 289 : index
    %36 = vector.load %arg9[%c0_21, %c289] : memref<16x324xf32, #tpu.memory_space<vmem>>, vector<16x16xf32>
    tpu.vector_store %arg9[%c0_21, %c289], %35 {strides = array<i32>} : memref<16x324xf32, #tpu.memory_space<vmem>>, vector<16x16xf32>,
    %c0_22 = arith.constant 0 : index
    %c0_23 = arith.constant 0 : index
    %c0_24 = arith.constant 0 : index
    %37 = vector.load %arg6[%c0_22, %c0_23, %c0_24] : memref<1x16x4xf32, #tpu.memory_space<vmem>>, vector<1x16x4xf32>
    %38 = vector.shape_cast %37 : vector<1x16x4xf32> to vector<16x4xf32>
    %c0_25 = arith.constant 0 : index
    %c0_26 = arith.constant 0 : index
    %39 = vector.load %arg9[%c0_25, %c0_26] : memref<16x324xf32, #tpu.memory_space<vmem>>, vector<16x324xf32>
    %cst_27 = arith.constant 0.000000e+00 : f32
    %40 = vector.broadcast %cst_27 : f32 to vector<16x286xf32>
    %c0_28 = arith.constant 0 : index
    %c0_29 = arith.constant 0 : index
    %c0_30 = arith.constant 0 : index
    %41 = vector.load %arg2[%c0_28, %c0_29, %c0_30] : memref<9x16x16xf32, #tpu.memory_space<vmem>>, vector<1x16x16xf32>
    %42 = vector.shape_cast %41 : vector<1x16x16xf32> to vector<16x16xf32>
    %43 = vector.extract_strided_slice %39 {offsets = [0, 0], sizes = [16, 286], strides = [1, 1]} : vector<16x324xf32> to vector<16x286xf32>
    %cst_31 = arith.constant dense<0.000000e+00> : vector<16x286xf32>
    %44 = tpu.matmul %42, %43, %cst_31 {dimension_numbers = #tpu.dot_dimension_numbers<[1], [0], [0], [1], [0, 0, 1, 1], [], []>} : vector<16x16xf32>, vector<16x286xf32>, vector<16x286xf32> -> vector<16x286xf32>
    %45 = arith.addf %40, %44 : vector<16x286xf32>
    %c1 = arith.constant 1 : index
    %c0_32 = arith.constant 0 : index
    %c0_33 = arith.constant 0 : index
    %46 = vector.load %arg2[%c1, %c0_32, %c0_33] : memref<9x16x16xf32, #tpu.memory_space<vmem>>, vector<1x16x16xf32>
    %47 = vector.shape_cast %46 : vector<1x16x16xf32> to vector<16x16xf32>
    %48 = vector.extract_strided_slice %39 {offsets = [0, 1], sizes = [16, 286], strides = [1, 1]} : vector<16x324xf32> to vector<16x286xf32>
    %cst_34 = arith.constant dense<0.000000e+00> : vector<16x286xf32>
    %49 = tpu.matmul %47, %48, %cst_34 {dimension_numbers = #tpu.dot_dimension_numbers<[1], [0], [0], [1], [0, 0, 1, 1], [], []>} : vector<16x16xf32>, vector<16x286xf32>, vector<16x286xf32> -> vector<16x286xf32>
    %50 = arith.addf %45, %49 : vector<16x286xf32>
    %c2 = arith.constant 2 : index
    %c0_35 = arith.constant 0 : index
    %c0_36 = arith.constant 0 : index
    %51 = vector.load %arg2[%c2, %c0_35, %c0_36] : memref<9x16x16xf32, #tpu.memory_space<vmem>>, vector<1x16x16xf32>
    %52 = vector.shape_cast %51 : vector<1x16x16xf32> to vector<16x16xf32>
    %53 = vector.extract_strided_slice %39 {offsets = [0, 2], sizes = [16, 286], strides = [1, 1]} : vector<16x324xf32> to vector<16x286xf32>
    %cst_37 = arith.constant dense<0.000000e+00> : vector<16x286xf32>
    %54 = tpu.matmul %52, %53, %cst_37 {dimension_numbers = #tpu.dot_dimension_numbers<[1], [0], [0], [1], [0, 0, 1, 1], [], []>} : vector<16x16xf32>, vector<16x286xf32>, vector<16x286xf32> -> vector<16x286xf32>
    %55 = arith.addf %50, %54 : vector<16x286xf32>
    %c3 = arith.constant 3 : index
    %c0_38 = arith.constant 0 : index
    %c0_39 = arith.constant 0 : index
    %56 = vector.load %arg2[%c3, %c0_38, %c0_39] : memref<9x16x16xf32, #tpu.memory_space<vmem>>, vector<1x16x16xf32>
    %57 = vector.shape_cast %56 : vector<1x16x16xf32> to vector<16x16xf32>
    %58 = vector.extract_strided_slice %39 {offsets = [0, 18], sizes = [16, 286], strides = [1, 1]} : vector<16x324xf32> to vector<16x286xf32>
    %cst_40 = arith.constant dense<0.000000e+00> : vector<16x286xf32>
    %59 = tpu.matmul %57, %58, %cst_40 {dimension_numbers = #tpu.dot_dimension_numbers<[1], [0], [0], [1], [0, 0, 1, 1], [], []>} : vector<16x16xf32>, vector<16x286xf32>, vector<16x286xf32> -> vector<16x286xf32>
    %60 = arith.addf %55, %59 : vector<16x286xf32>
    %c4 = arith.constant 4 : index
    %c0_41 = arith.constant 0 : index
    %c0_42 = arith.constant 0 : index
    %61 = vector.load %arg2[%c4, %c0_41, %c0_42] : memref<9x16x16xf32, #tpu.memory_space<vmem>>, vector<1x16x16xf32>
    %62 = vector.shape_cast %61 : vector<1x16x16xf32> to vector<16x16xf32>
    %63 = vector.extract_strided_slice %39 {offsets = [0, 19], sizes = [16, 286], strides = [1, 1]} : vector<16x324xf32> to vector<16x286xf32>
    %cst_43 = arith.constant dense<0.000000e+00> : vector<16x286xf32>
    %64 = tpu.matmul %62, %63, %cst_43 {dimension_numbers = #tpu.dot_dimension_numbers<[1], [0], [0], [1], [0, 0, 1, 1], [], []>} : vector<16x16xf32>, vector<16x286xf32>, vector<16x286xf32> -> vector<16x286xf32>
    %65 = arith.addf %60, %64 : vector<16x286xf32>
    %c5 = arith.constant 5 : index
    %c0_44 = arith.constant 0 : index
    %c0_45 = arith.constant 0 : index
    %66 = vector.load %arg2[%c5, %c0_44, %c0_45] : memref<9x16x16xf32, #tpu.memory_space<vmem>>, vector<1x16x16xf32>
    %67 = vector.shape_cast %66 : vector<1x16x16xf32> to vector<16x16xf32>
    %68 = vector.extract_strided_slice %39 {offsets = [0, 20], sizes = [16, 286], strides = [1, 1]} : vector<16x324xf32> to vector<16x286xf32>
    %cst_46 = arith.constant dense<0.000000e+00> : vector<16x286xf32>
    %69 = tpu.matmul %67, %68, %cst_46 {dimension_numbers = #tpu.dot_dimension_numbers<[1], [0], [0], [1], [0, 0, 1, 1], [], []>} : vector<16x16xf32>, vector<16x286xf32>, vector<16x286xf32> -> vector<16x286xf32>
    %70 = arith.addf %65, %69 : vector<16x286xf32>
    %c6 = arith.constant 6 : index
    %c0_47 = arith.constant 0 : index
    %c0_48 = arith.constant 0 : index
    %71 = vector.load %arg2[%c6, %c0_47, %c0_48] : memref<9x16x16xf32, #tpu.memory_space<vmem>>, vector<1x16x16xf32>
    %72 = vector.shape_cast %71 : vector<1x16x16xf32> to vector<16x16xf32>
    %73 = vector.extract_strided_slice %39 {offsets = [0, 36], sizes = [16, 286], strides = [1, 1]} : vector<16x324xf32> to vector<16x286xf32>
    %cst_49 = arith.constant dense<0.000000e+00> : vector<16x286xf32>
    %74 = tpu.matmul %72, %73, %cst_49 {dimension_numbers = #tpu.dot_dimension_numbers<[1], [0], [0], [1], [0, 0, 1, 1], [], []>} : vector<16x16xf32>, vector<16x286xf32>, vector<16x286xf32> -> vector<16x286xf32>
    %75 = arith.addf %70, %74 : vector<16x286xf32>
    %c7 = arith.constant 7 : index
    %c0_50 = arith.constant 0 : index
    %c0_51 = arith.constant 0 : index
    %76 = vector.load %arg2[%c7, %c0_50, %c0_51] : memref<9x16x16xf32, #tpu.memory_space<vmem>>, vector<1x16x16xf32>
    %77 = vector.shape_cast %76 : vector<1x16x16xf32> to vector<16x16xf32>
    %78 = vector.extract_strided_slice %39 {offsets = [0, 37], sizes = [16, 286], strides = [1, 1]} : vector<16x324xf32> to vector<16x286xf32>
    %cst_52 = arith.constant dense<0.000000e+00> : vector<16x286xf32>
    %79 = tpu.matmul %77, %78, %cst_52 {dimension_numbers = #tpu.dot_dimension_numbers<[1], [0], [0], [1], [0, 0, 1, 1], [], []>} : vector<16x16xf32>, vector<16x286xf32>, vector<16x286xf32> -> vector<16x286xf32>
    %80 = arith.addf %75, %79 : vector<16x286xf32>
    %c8 = arith.constant 8 : index
    %c0_53 = arith.constant 0 : index
    %c0_54 = arith.constant 0 : index
    %81 = vector.load %arg2[%c8, %c0_53, %c0_54] : memref<9x16x16xf32, #tpu.memory_space<vmem>>, vector<1x16x16xf32>
    %82 = vector.shape_cast %81 : vector<1x16x16xf32> to vector<16x16xf32>
    %83 = vector.extract_strided_slice %39 {offsets = [0, 38], sizes = [16, 286], strides = [1, 1]} : vector<16x324xf32> to vector<16x286xf32>
    %cst_55 = arith.constant dense<0.000000e+00> : vector<16x286xf32>
    %84 = tpu.matmul %82, %83, %cst_55 {dimension_numbers = #tpu.dot_dimension_numbers<[1], [0], [0], [1], [0, 0, 1, 1], [], []>} : vector<16x16xf32>, vector<16x286xf32>, vector<16x286xf32> -> vector<16x286xf32>
    %85 = arith.addf %80, %84 : vector<16x286xf32>
    %86 = vector.extract_strided_slice %38 {offsets = [0, 0], sizes = [16, 1], strides = [1, 1]} : vector<16x4xf32> to vector<16x1xf32>
    %87 = vector.extract_strided_slice %38 {offsets = [0, 1], sizes = [16, 1], strides = [1, 1]} : vector<16x4xf32> to vector<16x1xf32>
    %88 = vector.broadcast %0 : vector<1x286xf32> to vector<16x286xf32>
    %89 = arith.mulf %85, %88 : vector<16x286xf32>
    %cst_56 = arith.constant dense<0.000000e+00> : vector<16xf32>
    %90 = vector.multi_reduction <add>, %89, %cst_56 [1] : vector<16x286xf32> to vector<16xf32>
    %91 = vector.shape_cast %90 : vector<16xf32> to vector<16x1xf32>
    %cst_57 = arith.constant 3.906250e-03 : f32
    %92 = vector.broadcast %cst_57 : f32 to vector<16x1xf32>
    %93 = arith.mulf %91, %92 : vector<16x1xf32>
    %94 = arith.mulf %89, %85 : vector<16x286xf32>
    %cst_58 = arith.constant dense<0.000000e+00> : vector<16xf32>
    %95 = vector.multi_reduction <add>, %94, %cst_58 [1] : vector<16x286xf32> to vector<16xf32>
    %96 = vector.shape_cast %95 : vector<16xf32> to vector<16x1xf32>
    %cst_59 = arith.constant 3.906250e-03 : f32
    %97 = vector.broadcast %cst_59 : f32 to vector<16x1xf32>
    %98 = arith.mulf %96, %97 : vector<16x1xf32>
    %99 = arith.mulf %93, %93 : vector<16x1xf32>
    %100 = arith.subf %98, %99 : vector<16x1xf32>
    %cst_60 = arith.constant 1.000000e+00 : f32
    %101 = vector.broadcast %cst_60 : f32 to vector<16x1xf32>
    %102 = arith.addf %101, %86 : vector<16x1xf32>
    %cst_61 = arith.constant 9.99999974E-6 : f32
    %103 = vector.broadcast %cst_61 : f32 to vector<16x1xf32>
    %104 = arith.addf %100, %103 : vector<16x1xf32>
    %105 = math.rsqrt %104 : vector<16x1xf32>
    %106 = arith.mulf %102, %105 : vector<16x1xf32>
    %107 = arith.mulf %93, %106 : vector<16x1xf32>
    %108 = arith.subf %87, %107 : vector<16x1xf32>
    %109 = vector.broadcast %106 : vector<16x1xf32> to vector<16x286xf32>
    %110 = arith.mulf %85, %109 : vector<16x286xf32>
    %111 = vector.broadcast %108 : vector<16x1xf32> to vector<16x286xf32>
    %112 = arith.addf %110, %111 : vector<16x286xf32>
    %cst_62 = arith.constant 0.000000e+00 : f32
    %113 = vector.broadcast %cst_62 : f32 to vector<16x286xf32>
    %114 = arith.cmpf ogt, %112, %113 : vector<16x286xf32>
    %cst_63 = arith.constant 2.000000e-01 : f32
    %115 = vector.broadcast %cst_63 : f32 to vector<16x286xf32>
    %116 = arith.mulf %115, %112 : vector<16x286xf32>
    %117 = arith.select %114, %112, %116 : vector<16x286xi1>, vector<16x286xf32>
    %118 = vector.broadcast %0 : vector<1x286xf32> to vector<16x286xf32>
    %119 = arith.mulf %117, %118 : vector<16x286xf32>
    %c0_64 = arith.constant 0 : index
    %c19_65 = arith.constant 19 : index
    %120 = vector.load %arg9[%c0_64, %c19_65] : memref<16x324xf32, #tpu.memory_space<vmem>>, vector<16x286xf32>
    tpu.vector_store %arg9[%c0_64, %c19_65], %119 {strides = array<i32>} : memref<16x324xf32, #tpu.memory_space<vmem>>, vector<16x286xf32>,
    %c0_66 = arith.constant 0 : index
    %c0_67 = arith.constant 0 : index
    %121 = vector.load %arg9[%c0_66, %c0_67] : memref<16x324xf32, #tpu.memory_space<vmem>>, vector<16x324xf32>
    %cst_68 = arith.constant 0.000000e+00 : f32
    %122 = vector.broadcast %cst_68 : f32 to vector<16x286xf32>
    %c0_69 = arith.constant 0 : index
    %c0_70 = arith.constant 0 : index
    %c0_71 = arith.constant 0 : index
    %123 = vector.load %arg3[%c0_69, %c0_70, %c0_71] : memref<9x16x16xf32, #tpu.memory_space<vmem>>, vector<1x16x16xf32>
    %124 = vector.shape_cast %123 : vector<1x16x16xf32> to vector<16x16xf32>
    %125 = vector.extract_strided_slice %121 {offsets = [0, 0], sizes = [16, 286], strides = [1, 1]} : vector<16x324xf32> to vector<16x286xf32>
    %cst_72 = arith.constant dense<0.000000e+00> : vector<16x286xf32>
    %126 = tpu.matmul %124, %125, %cst_72 {dimension_numbers = #tpu.dot_dimension_numbers<[1], [0], [0], [1], [0, 0, 1, 1], [], []>} : vector<16x16xf32>, vector<16x286xf32>, vector<16x286xf32> -> vector<16x286xf32>
    %127 = arith.addf %122, %126 : vector<16x286xf32>
    %c1_73 = arith.constant 1 : index
    %c0_74 = arith.constant 0 : index
    %c0_75 = arith.constant 0 : index
    %128 = vector.load %arg3[%c1_73, %c0_74, %c0_75] : memref<9x16x16xf32, #tpu.memory_space<vmem>>, vector<1x16x16xf32>
    %129 = vector.shape_cast %128 : vector<1x16x16xf32> to vector<16x16xf32>
    %130 = vector.extract_strided_slice %121 {offsets = [0, 1], sizes = [16, 286], strides = [1, 1]} : vector<16x324xf32> to vector<16x286xf32>
    %cst_76 = arith.constant dense<0.000000e+00> : vector<16x286xf32>
    %131 = tpu.matmul %129, %130, %cst_76 {dimension_numbers = #tpu.dot_dimension_numbers<[1], [0], [0], [1], [0, 0, 1, 1], [], []>} : vector<16x16xf32>, vector<16x286xf32>, vector<16x286xf32> -> vector<16x286xf32>
    %132 = arith.addf %127, %131 : vector<16x286xf32>
    %c2_77 = arith.constant 2 : index
    %c0_78 = arith.constant 0 : index
    %c0_79 = arith.constant 0 : index
    %133 = vector.load %arg3[%c2_77, %c0_78, %c0_79] : memref<9x16x16xf32, #tpu.memory_space<vmem>>, vector<1x16x16xf32>
    %134 = vector.shape_cast %133 : vector<1x16x16xf32> to vector<16x16xf32>
    %135 = vector.extract_strided_slice %121 {offsets = [0, 2], sizes = [16, 286], strides = [1, 1]} : vector<16x324xf32> to vector<16x286xf32>
    %cst_80 = arith.constant dense<0.000000e+00> : vector<16x286xf32>
    %136 = tpu.matmul %134, %135, %cst_80 {dimension_numbers = #tpu.dot_dimension_numbers<[1], [0], [0], [1], [0, 0, 1, 1], [], []>} : vector<16x16xf32>, vector<16x286xf32>, vector<16x286xf32> -> vector<16x286xf32>
    %137 = arith.addf %132, %136 : vector<16x286xf32>
    %c3_81 = arith.constant 3 : index
    %c0_82 = arith.constant 0 : index
    %c0_83 = arith.constant 0 : index
    %138 = vector.load %arg3[%c3_81, %c0_82, %c0_83] : memref<9x16x16xf32, #tpu.memory_space<vmem>>, vector<1x16x16xf32>
    %139 = vector.shape_cast %138 : vector<1x16x16xf32> to vector<16x16xf32>
    %140 = vector.extract_strided_slice %121 {offsets = [0, 18], sizes = [16, 286], strides = [1, 1]} : vector<16x324xf32> to vector<16x286xf32>
    %cst_84 = arith.constant dense<0.000000e+00> : vector<16x286xf32>
    %141 = tpu.matmul %139, %140, %cst_84 {dimension_numbers = #tpu.dot_dimension_numbers<[1], [0], [0], [1], [0, 0, 1, 1], [], []>} : vector<16x16xf32>, vector<16x286xf32>, vector<16x286xf32> -> vector<16x286xf32>
    %142 = arith.addf %137, %141 : vector<16x286xf32>
    %c4_85 = arith.constant 4 : index
    %c0_86 = arith.constant 0 : index
    %c0_87 = arith.constant 0 : index
    %143 = vector.load %arg3[%c4_85, %c0_86, %c0_87] : memref<9x16x16xf32, #tpu.memory_space<vmem>>, vector<1x16x16xf32>
    %144 = vector.shape_cast %143 : vector<1x16x16xf32> to vector<16x16xf32>
    %145 = vector.extract_strided_slice %121 {offsets = [0, 19], sizes = [16, 286], strides = [1, 1]} : vector<16x324xf32> to vector<16x286xf32>
    %cst_88 = arith.constant dense<0.000000e+00> : vector<16x286xf32>
    %146 = tpu.matmul %144, %145, %cst_88 {dimension_numbers = #tpu.dot_dimension_numbers<[1], [0], [0], [1], [0, 0, 1, 1], [], []>} : vector<16x16xf32>, vector<16x286xf32>, vector<16x286xf32> -> vector<16x286xf32>
    %147 = arith.addf %142, %146 : vector<16x286xf32>
    %c5_89 = arith.constant 5 : index
    %c0_90 = arith.constant 0 : index
    %c0_91 = arith.constant 0 : index
    %148 = vector.load %arg3[%c5_89, %c0_90, %c0_91] : memref<9x16x16xf32, #tpu.memory_space<vmem>>, vector<1x16x16xf32>
    %149 = vector.shape_cast %148 : vector<1x16x16xf32> to vector<16x16xf32>
    %150 = vector.extract_strided_slice %121 {offsets = [0, 20], sizes = [16, 286], strides = [1, 1]} : vector<16x324xf32> to vector<16x286xf32>
    %cst_92 = arith.constant dense<0.000000e+00> : vector<16x286xf32>
    %151 = tpu.matmul %149, %150, %cst_92 {dimension_numbers = #tpu.dot_dimension_numbers<[1], [0], [0], [1], [0, 0, 1, 1], [], []>} : vector<16x16xf32>, vector<16x286xf32>, vector<16x286xf32> -> vector<16x286xf32>
    %152 = arith.addf %147, %151 : vector<16x286xf32>
    %c6_93 = arith.constant 6 : index
    %c0_94 = arith.constant 0 : index
    %c0_95 = arith.constant 0 : index
    %153 = vector.load %arg3[%c6_93, %c0_94, %c0_95] : memref<9x16x16xf32, #tpu.memory_space<vmem>>, vector<1x16x16xf32>
    %154 = vector.shape_cast %153 : vector<1x16x16xf32> to vector<16x16xf32>
    %155 = vector.extract_strided_slice %121 {offsets = [0, 36], sizes = [16, 286], strides = [1, 1]} : vector<16x324xf32> to vector<16x286xf32>
    %cst_96 = arith.constant dense<0.000000e+00> : vector<16x286xf32>
    %156 = tpu.matmul %154, %155, %cst_96 {dimension_numbers = #tpu.dot_dimension_numbers<[1], [0], [0], [1], [0, 0, 1, 1], [], []>} : vector<16x16xf32>, vector<16x286xf32>, vector<16x286xf32> -> vector<16x286xf32>
    %157 = arith.addf %152, %156 : vector<16x286xf32>
    %c7_97 = arith.constant 7 : index
    %c0_98 = arith.constant 0 : index
    %c0_99 = arith.constant 0 : index
    %158 = vector.load %arg3[%c7_97, %c0_98, %c0_99] : memref<9x16x16xf32, #tpu.memory_space<vmem>>, vector<1x16x16xf32>
    %159 = vector.shape_cast %158 : vector<1x16x16xf32> to vector<16x16xf32>
    %160 = vector.extract_strided_slice %121 {offsets = [0, 37], sizes = [16, 286], strides = [1, 1]} : vector<16x324xf32> to vector<16x286xf32>
    %cst_100 = arith.constant dense<0.000000e+00> : vector<16x286xf32>
    %161 = tpu.matmul %159, %160, %cst_100 {dimension_numbers = #tpu.dot_dimension_numbers<[1], [0], [0], [1], [0, 0, 1, 1], [], []>} : vector<16x16xf32>, vector<16x286xf32>, vector<16x286xf32> -> vector<16x286xf32>
    %162 = arith.addf %157, %161 : vector<16x286xf32>
    %c8_101 = arith.constant 8 : index
    %c0_102 = arith.constant 0 : index
    %c0_103 = arith.constant 0 : index
    %163 = vector.load %arg3[%c8_101, %c0_102, %c0_103] : memref<9x16x16xf32, #tpu.memory_space<vmem>>, vector<1x16x16xf32>
    %164 = vector.shape_cast %163 : vector<1x16x16xf32> to vector<16x16xf32>
    %165 = vector.extract_strided_slice %121 {offsets = [0, 38], sizes = [16, 286], strides = [1, 1]} : vector<16x324xf32> to vector<16x286xf32>
    %cst_104 = arith.constant dense<0.000000e+00> : vector<16x286xf32>
    %166 = tpu.matmul %164, %165, %cst_104 {dimension_numbers = #tpu.dot_dimension_numbers<[1], [0], [0], [1], [0, 0, 1, 1], [], []>} : vector<16x16xf32>, vector<16x286xf32>, vector<16x286xf32> -> vector<16x286xf32>
    %167 = arith.addf %162, %166 : vector<16x286xf32>
    %168 = vector.extract_strided_slice %38 {offsets = [0, 2], sizes = [16, 1], strides = [1, 1]} : vector<16x4xf32> to vector<16x1xf32>
    %169 = vector.extract_strided_slice %38 {offsets = [0, 3], sizes = [16, 1], strides = [1, 1]} : vector<16x4xf32> to vector<16x1xf32>
    %170 = vector.broadcast %0 : vector<1x286xf32> to vector<16x286xf32>
    %171 = arith.mulf %167, %170 : vector<16x286xf32>
    %cst_105 = arith.constant dense<0.000000e+00> : vector<16xf32>
    %172 = vector.multi_reduction <add>, %171, %cst_105 [1] : vector<16x286xf32> to vector<16xf32>
    %173 = vector.shape_cast %172 : vector<16xf32> to vector<16x1xf32>
    %cst_106 = arith.constant 3.906250e-03 : f32
    %174 = vector.broadcast %cst_106 : f32 to vector<16x1xf32>
    %175 = arith.mulf %173, %174 : vector<16x1xf32>
    %176 = arith.mulf %171, %167 : vector<16x286xf32>
    %cst_107 = arith.constant dense<0.000000e+00> : vector<16xf32>
    %177 = vector.multi_reduction <add>, %176, %cst_107 [1] : vector<16x286xf32> to vector<16xf32>
    %178 = vector.shape_cast %177 : vector<16xf32> to vector<16x1xf32>
    %cst_108 = arith.constant 3.906250e-03 : f32
    %179 = vector.broadcast %cst_108 : f32 to vector<16x1xf32>
    %180 = arith.mulf %178, %179 : vector<16x1xf32>
    %181 = arith.mulf %175, %175 : vector<16x1xf32>
    %182 = arith.subf %180, %181 : vector<16x1xf32>
    %cst_109 = arith.constant 1.000000e+00 : f32
    %183 = vector.broadcast %cst_109 : f32 to vector<16x1xf32>
    %184 = arith.addf %183, %168 : vector<16x1xf32>
    %cst_110 = arith.constant 9.99999974E-6 : f32
    %185 = vector.broadcast %cst_110 : f32 to vector<16x1xf32>
    %186 = arith.addf %182, %185 : vector<16x1xf32>
    %187 = math.rsqrt %186 : vector<16x1xf32>
    %188 = arith.mulf %184, %187 : vector<16x1xf32>
    %189 = arith.mulf %175, %188 : vector<16x1xf32>
    %190 = arith.subf %169, %189 : vector<16x1xf32>
    %191 = vector.broadcast %188 : vector<16x1xf32> to vector<16x286xf32>
    %192 = arith.mulf %167, %191 : vector<16x286xf32>
    %193 = vector.broadcast %190 : vector<16x1xf32> to vector<16x286xf32>
    %194 = arith.addf %192, %193 : vector<16x286xf32>
    %cst_111 = arith.constant 0.000000e+00 : f32
    %195 = vector.broadcast %cst_111 : f32 to vector<16x286xf32>
    %196 = arith.cmpf ogt, %194, %195 : vector<16x286xf32>
    %cst_112 = arith.constant 2.000000e-01 : f32
    %197 = vector.broadcast %cst_112 : f32 to vector<16x286xf32>
    %198 = arith.mulf %197, %194 : vector<16x286xf32>
    %199 = arith.select %196, %194, %198 : vector<16x286xi1>, vector<16x286xf32>
    %200 = vector.broadcast %0 : vector<1x286xf32> to vector<16x286xf32>
    %201 = arith.mulf %199, %200 : vector<16x286xf32>
    %c0_113 = arith.constant 0 : index
    %c19_114 = arith.constant 19 : index
    %202 = vector.load %arg9[%c0_113, %c19_114] : memref<16x324xf32, #tpu.memory_space<vmem>>, vector<16x286xf32>
    tpu.vector_store %arg9[%c0_113, %c19_114], %201 {strides = array<i32>} : memref<16x324xf32, #tpu.memory_space<vmem>>, vector<16x286xf32>,
    %c0_115 = arith.constant 0 : index
    %c0_116 = arith.constant 0 : index
    %203 = vector.load %arg9[%c0_115, %c0_116] : memref<16x324xf32, #tpu.memory_space<vmem>>, vector<16x324xf32>
    %cst_117 = arith.constant 0.000000e+00 : f32
    %204 = vector.broadcast %cst_117 : f32 to vector<16x286xf32>
    %c0_118 = arith.constant 0 : index
    %c0_119 = arith.constant 0 : index
    %c0_120 = arith.constant 0 : index
    %205 = vector.load %arg4[%c0_118, %c0_119, %c0_120] : memref<9x16x16xf32, #tpu.memory_space<vmem>>, vector<1x16x16xf32>
    %206 = vector.shape_cast %205 : vector<1x16x16xf32> to vector<16x16xf32>
    %207 = vector.extract_strided_slice %203 {offsets = [0, 0], sizes = [16, 286], strides = [1, 1]} : vector<16x324xf32> to vector<16x286xf32>
    %cst_121 = arith.constant dense<0.000000e+00> : vector<16x286xf32>
    %208 = tpu.matmul %206, %207, %cst_121 {dimension_numbers = #tpu.dot_dimension_numbers<[1], [0], [0], [1], [0, 0, 1, 1], [], []>} : vector<16x16xf32>, vector<16x286xf32>, vector<16x286xf32> -> vector<16x286xf32>
    %209 = arith.addf %204, %208 : vector<16x286xf32>
    %c1_122 = arith.constant 1 : index
    %c0_123 = arith.constant 0 : index
    %c0_124 = arith.constant 0 : index
    %210 = vector.load %arg4[%c1_122, %c0_123, %c0_124] : memref<9x16x16xf32, #tpu.memory_space<vmem>>, vector<1x16x16xf32>
    %211 = vector.shape_cast %210 : vector<1x16x16xf32> to vector<16x16xf32>
    %212 = vector.extract_strided_slice %203 {offsets = [0, 1], sizes = [16, 286], strides = [1, 1]} : vector<16x324xf32> to vector<16x286xf32>
    %cst_125 = arith.constant dense<0.000000e+00> : vector<16x286xf32>
    %213 = tpu.matmul %211, %212, %cst_125 {dimension_numbers = #tpu.dot_dimension_numbers<[1], [0], [0], [1], [0, 0, 1, 1], [], []>} : vector<16x16xf32>, vector<16x286xf32>, vector<16x286xf32> -> vector<16x286xf32>
    %214 = arith.addf %209, %213 : vector<16x286xf32>
    %c2_126 = arith.constant 2 : index
    %c0_127 = arith.constant 0 : index
    %c0_128 = arith.constant 0 : index
    %215 = vector.load %arg4[%c2_126, %c0_127, %c0_128] : memref<9x16x16xf32, #tpu.memory_space<vmem>>, vector<1x16x16xf32>
    %216 = vector.shape_cast %215 : vector<1x16x16xf32> to vector<16x16xf32>
    %217 = vector.extract_strided_slice %203 {offsets = [0, 2], sizes = [16, 286], strides = [1, 1]} : vector<16x324xf32> to vector<16x286xf32>
    %cst_129 = arith.constant dense<0.000000e+00> : vector<16x286xf32>
    %218 = tpu.matmul %216, %217, %cst_129 {dimension_numbers = #tpu.dot_dimension_numbers<[1], [0], [0], [1], [0, 0, 1, 1], [], []>} : vector<16x16xf32>, vector<16x286xf32>, vector<16x286xf32> -> vector<16x286xf32>
    %219 = arith.addf %214, %218 : vector<16x286xf32>
    %c3_130 = arith.constant 3 : index
    %c0_131 = arith.constant 0 : index
    %c0_132 = arith.constant 0 : index
    %220 = vector.load %arg4[%c3_130, %c0_131, %c0_132] : memref<9x16x16xf32, #tpu.memory_space<vmem>>, vector<1x16x16xf32>
    %221 = vector.shape_cast %220 : vector<1x16x16xf32> to vector<16x16xf32>
    %222 = vector.extract_strided_slice %203 {offsets = [0, 18], sizes = [16, 286], strides = [1, 1]} : vector<16x324xf32> to vector<16x286xf32>
    %cst_133 = arith.constant dense<0.000000e+00> : vector<16x286xf32>
    %223 = tpu.matmul %221, %222, %cst_133 {dimension_numbers = #tpu.dot_dimension_numbers<[1], [0], [0], [1], [0, 0, 1, 1], [], []>} : vector<16x16xf32>, vector<16x286xf32>, vector<16x286xf32> -> vector<16x286xf32>
    %224 = arith.addf %219, %223 : vector<16x286xf32>
    %c4_134 = arith.constant 4 : index
    %c0_135 = arith.constant 0 : index
    %c0_136 = arith.constant 0 : index
    %225 = vector.load %arg4[%c4_134, %c0_135, %c0_136] : memref<9x16x16xf32, #tpu.memory_space<vmem>>, vector<1x16x16xf32>
    %226 = vector.shape_cast %225 : vector<1x16x16xf32> to vector<16x16xf32>
    %227 = vector.extract_strided_slice %203 {offsets = [0, 19], sizes = [16, 286], strides = [1, 1]} : vector<16x324xf32> to vector<16x286xf32>
    %cst_137 = arith.constant dense<0.000000e+00> : vector<16x286xf32>
    %228 = tpu.matmul %226, %227, %cst_137 {dimension_numbers = #tpu.dot_dimension_numbers<[1], [0], [0], [1], [0, 0, 1, 1], [], []>} : vector<16x16xf32>, vector<16x286xf32>, vector<16x286xf32> -> vector<16x286xf32>
    %229 = arith.addf %224, %228 : vector<16x286xf32>
    %c5_138 = arith.constant 5 : index
    %c0_139 = arith.constant 0 : index
    %c0_140 = arith.constant 0 : index
    %230 = vector.load %arg4[%c5_138, %c0_139, %c0_140] : memref<9x16x16xf32, #tpu.memory_space<vmem>>, vector<1x16x16xf32>
    %231 = vector.shape_cast %230 : vector<1x16x16xf32> to vector<16x16xf32>
    %232 = vector.extract_strided_slice %203 {offsets = [0, 20], sizes = [16, 286], strides = [1, 1]} : vector<16x324xf32> to vector<16x286xf32>
    %cst_141 = arith.constant dense<0.000000e+00> : vector<16x286xf32>
    %233 = tpu.matmul %231, %232, %cst_141 {dimension_numbers = #tpu.dot_dimension_numbers<[1], [0], [0], [1], [0, 0, 1, 1], [], []>} : vector<16x16xf32>, vector<16x286xf32>, vector<16x286xf32> -> vector<16x286xf32>
    %234 = arith.addf %229, %233 : vector<16x286xf32>
    %c6_142 = arith.constant 6 : index
    %c0_143 = arith.constant 0 : index
    %c0_144 = arith.constant 0 : index
    %235 = vector.load %arg4[%c6_142, %c0_143, %c0_144] : memref<9x16x16xf32, #tpu.memory_space<vmem>>, vector<1x16x16xf32>
    %236 = vector.shape_cast %235 : vector<1x16x16xf32> to vector<16x16xf32>
    %237 = vector.extract_strided_slice %203 {offsets = [0, 36], sizes = [16, 286], strides = [1, 1]} : vector<16x324xf32> to vector<16x286xf32>
    %cst_145 = arith.constant dense<0.000000e+00> : vector<16x286xf32>
    %238 = tpu.matmul %236, %237, %cst_145 {dimension_numbers = #tpu.dot_dimension_numbers<[1], [0], [0], [1], [0, 0, 1, 1], [], []>} : vector<16x16xf32>, vector<16x286xf32>, vector<16x286xf32> -> vector<16x286xf32>
    %239 = arith.addf %234, %238 : vector<16x286xf32>
    %c7_146 = arith.constant 7 : index
    %c0_147 = arith.constant 0 : index
    %c0_148 = arith.constant 0 : index
    %240 = vector.load %arg4[%c7_146, %c0_147, %c0_148] : memref<9x16x16xf32, #tpu.memory_space<vmem>>, vector<1x16x16xf32>
    %241 = vector.shape_cast %240 : vector<1x16x16xf32> to vector<16x16xf32>
    %242 = vector.extract_strided_slice %203 {offsets = [0, 37], sizes = [16, 286], strides = [1, 1]} : vector<16x324xf32> to vector<16x286xf32>
    %cst_149 = arith.constant dense<0.000000e+00> : vector<16x286xf32>
    %243 = tpu.matmul %241, %242, %cst_149 {dimension_numbers = #tpu.dot_dimension_numbers<[1], [0], [0], [1], [0, 0, 1, 1], [], []>} : vector<16x16xf32>, vector<16x286xf32>, vector<16x286xf32> -> vector<16x286xf32>
    %244 = arith.addf %239, %243 : vector<16x286xf32>
    %c8_150 = arith.constant 8 : index
    %c0_151 = arith.constant 0 : index
    %c0_152 = arith.constant 0 : index
    %245 = vector.load %arg4[%c8_150, %c0_151, %c0_152] : memref<9x16x16xf32, #tpu.memory_space<vmem>>, vector<1x16x16xf32>
    %246 = vector.shape_cast %245 : vector<1x16x16xf32> to vector<16x16xf32>
    %247 = vector.extract_strided_slice %203 {offsets = [0, 38], sizes = [16, 286], strides = [1, 1]} : vector<16x324xf32> to vector<16x286xf32>
    %cst_153 = arith.constant dense<0.000000e+00> : vector<16x286xf32>
    %248 = tpu.matmul %246, %247, %cst_153 {dimension_numbers = #tpu.dot_dimension_numbers<[1], [0], [0], [1], [0, 0, 1, 1], [], []>} : vector<16x16xf32>, vector<16x286xf32>, vector<16x286xf32> -> vector<16x286xf32>
    %249 = arith.addf %244, %248 : vector<16x286xf32>
    %c0_154 = arith.constant 0 : index
    %c0_155 = arith.constant 0 : index
    %250 = vector.load %arg5[%c0_154, %c0_155] : memref<16x1xf32, #tpu.memory_space<vmem>>, vector<16x1xf32>
    %251 = vector.broadcast %250 : vector<16x1xf32> to vector<16x286xf32>
    %252 = arith.addf %249, %251 : vector<16x286xf32>
    %253 = vector.extract_strided_slice %252 {offsets = [0, 0], sizes = [16, 16], strides = [1, 1]} : vector<16x286xf32> to vector<16x16xf32>
    %254 = vector.extract_strided_slice %252 {offsets = [0, 18], sizes = [16, 16], strides = [1, 1]} : vector<16x286xf32> to vector<16x16xf32>
    %255 = vector.extract_strided_slice %252 {offsets = [0, 36], sizes = [16, 16], strides = [1, 1]} : vector<16x286xf32> to vector<16x16xf32>
    %256 = vector.extract_strided_slice %252 {offsets = [0, 54], sizes = [16, 16], strides = [1, 1]} : vector<16x286xf32> to vector<16x16xf32>
    %257 = vector.extract_strided_slice %252 {offsets = [0, 72], sizes = [16, 16], strides = [1, 1]} : vector<16x286xf32> to vector<16x16xf32>
    %258 = vector.extract_strided_slice %252 {offsets = [0, 90], sizes = [16, 16], strides = [1, 1]} : vector<16x286xf32> to vector<16x16xf32>
    %259 = vector.extract_strided_slice %252 {offsets = [0, 108], sizes = [16, 16], strides = [1, 1]} : vector<16x286xf32> to vector<16x16xf32>
    %260 = vector.extract_strided_slice %252 {offsets = [0, 126], sizes = [16, 16], strides = [1, 1]} : vector<16x286xf32> to vector<16x16xf32>
    %261 = vector.extract_strided_slice %252 {offsets = [0, 144], sizes = [16, 16], strides = [1, 1]} : vector<16x286xf32> to vector<16x16xf32>
    %262 = vector.extract_strided_slice %252 {offsets = [0, 162], sizes = [16, 16], strides = [1, 1]} : vector<16x286xf32> to vector<16x16xf32>
    %263 = vector.extract_strided_slice %252 {offsets = [0, 180], sizes = [16, 16], strides = [1, 1]} : vector<16x286xf32> to vector<16x16xf32>
    %264 = vector.extract_strided_slice %252 {offsets = [0, 198], sizes = [16, 16], strides = [1, 1]} : vector<16x286xf32> to vector<16x16xf32>
    %265 = vector.extract_strided_slice %252 {offsets = [0, 216], sizes = [16, 16], strides = [1, 1]} : vector<16x286xf32> to vector<16x16xf32>
    %266 = vector.extract_strided_slice %252 {offsets = [0, 234], sizes = [16, 16], strides = [1, 1]} : vector<16x286xf32> to vector<16x16xf32>
    %267 = vector.extract_strided_slice %252 {offsets = [0, 252], sizes = [16, 16], strides = [1, 1]} : vector<16x286xf32> to vector<16x16xf32>
    %268 = vector.extract_strided_slice %252 {offsets = [0, 270], sizes = [16, 16], strides = [1, 1]} : vector<16x286xf32> to vector<16x16xf32>
    %269 = tpu.concatenate %253, %254, %255, %256, %257, %258, %259, %260, %261, %262, %263, %264, %265, %266, %267, %268 in 1 : vector<16x16xf32>, vector<16x16xf32>, vector<16x16xf32>, vector<16x16xf32>, vector<16x16xf32>, vector<16x16xf32>, vector<16x16xf32>, vector<16x16xf32>, vector<16x16xf32>, vector<16x16xf32>, vector<16x16xf32>, vector<16x16xf32>, vector<16x16xf32>, vector<16x16xf32>, vector<16x16xf32>, vector<16x16xf32> -> vector<16x256xf32>
    %c0_156 = arith.constant 0 : index
    %c0_157 = arith.constant 0 : index
    %c0_158 = arith.constant 0 : index
    %270 = vector.load %arg8[%c0_156, %c0_157, %c0_158] : memref<1x16x256xf32, #tpu.memory_space<vmem>>, vector<1x16x256xf32>
    %271 = vector.shape_cast %270 : vector<1x16x256xf32> to vector<16x256xf32>
    %272 = vector.shape_cast %269 : vector<16x256xf32> to vector<1x16x256xf32>
    tpu.vector_store %arg8[%c0_156, %c0_157, %c0_158], %272 {strides = array<i32>} : memref<1x16x256xf32, #tpu.memory_space<vmem>>, vector<1x16x256xf32>,
    return
  }
  func.func @transform_0(%arg0: i32) -> (i32, i32, i32) {
    %c0_i32 = arith.constant 0 : i32
    %c0_i32_0 = arith.constant 0 : i32
    %c0_i32_1 = arith.constant 0 : i32
    return %arg0, %c0_i32, %c0_i32_0 : i32, i32, i32
  }
  func.func @transform_1(%arg0: i32) -> (i32, i32, i32) {
    %c0_i32 = arith.constant 0 : i32
    %c0_i32_0 = arith.constant 0 : i32
    %c0_i32_1 = arith.constant 0 : i32
    %c0_i32_2 = arith.constant 0 : i32
    return %c0_i32, %c0_i32_0, %c0_i32_1 : i32, i32, i32
  }
  func.func @transform_2(%arg0: i32) -> (i32, i32, i32) {
    %c0_i32 = arith.constant 0 : i32
    %c0_i32_0 = arith.constant 0 : i32
    %c0_i32_1 = arith.constant 0 : i32
    %c0_i32_2 = arith.constant 0 : i32
    return %c0_i32, %c0_i32_0, %c0_i32_1 : i32, i32, i32
  }
  func.func @transform_3(%arg0: i32) -> (i32, i32, i32) {
    %c0_i32 = arith.constant 0 : i32
    %c0_i32_0 = arith.constant 0 : i32
    %c0_i32_1 = arith.constant 0 : i32
    %c0_i32_2 = arith.constant 0 : i32
    return %c0_i32, %c0_i32_0, %c0_i32_1 : i32, i32, i32
  }
  func.func @transform_4(%arg0: i32) -> (i32, i32) {
    %c0_i32 = arith.constant 0 : i32
    %c0_i32_0 = arith.constant 0 : i32
    %c0_i32_1 = arith.constant 0 : i32
    return %c0_i32, %c0_i32_0 : i32, i32
  }
  func.func @transform_5(%arg0: i32) -> (i32, i32, i32) {
    %c0_i32 = arith.constant 0 : i32
    %c0_i32_0 = arith.constant 0 : i32
    %c0_i32_1 = arith.constant 0 : i32
    return %arg0, %c0_i32, %c0_i32_0 : i32, i32, i32
  }
  func.func @transform_6(%arg0: i32) -> (i32, i32) {
    %c0_i32 = arith.constant 0 : i32
    %c0_i32_0 = arith.constant 0 : i32
    %c0_i32_1 = arith.constant 0 : i32
    return %c0_i32, %c0_i32_0 : i32, i32
  }
  func.func @transform_7(%arg0: i32) -> (i32, i32, i32) {
    %c0_i32 = arith.constant 0 : i32
    %c0_i32_0 = arith.constant 0 : i32
    %c0_i32_1 = arith.constant 0 : i32
    return %arg0, %c0_i32, %c0_i32_0 : i32, i32, i32
  }
}

</mosaic_0001>

<bundles_post_ra>
// kernel: interaction_module_forward.1
= control target key start
LH: loop header
LB: loop body
LE: loop exit
PB: predicated region body
PF: predicated region fallthrough
CT: control target
= control target key end

     0   :  { %s7406_s24 = smov 0   ;;  %s8363_s0 = inlined_call_operand.vmem [shape: f32[2,16,256], index: 0, kind: input, shape index: {}]   ;;  %s8364_s1 = inlined_call_operand.vmem [shape: f32[9,16,16], index: 1, kind: input, shape index: {}]   ;;  %s8365_s2 = inlined_call_operand.vmem [shape: f32[9,16,16], index: 2, kind: input, shape index: {}]   ;;  %s8366_s3 = inlined_call_operand.vmem [shape: f32[9,16,16], index: 3, kind: input, shape index: {}]   ;;  %s8367_s4 = inlined_call_operand.vmem [shape: f32[16,1], index: 4, kind: input, shape index: {}]   ;;  %s8368_s5 = inlined_call_operand.vmem [shape: f32[2,16,4], index: 5, kind: input, shape index: {}]   ;;  %s8369_s6 = inlined_call_operand.vmem [shape: f32[1,286], index: 6, kind: input, shape index: {}]   ;;  %s8370_s7 = inlined_call_operand.vmem [shape: f32[2,16,256], index: 7, kind: output, shape index: {}]  }
   0x1 LB: > { %s6061_s25 = sadd.s32 4294967295, %s7322_s24   ;;  %p6065_p0 = scmp.ge.s32.totalorder %s7322_s24, 1  ;;  %s7322_s24 = sphi %s7406_s24, %s17_s24  }
   0x2   : > { %p247_p1 = scmp.lt.s32.totalorder %s7322_s24, 3 }
   0x4   : > { %p248_p2 = pnand %p6065_p0, %p247_p1 }
   0x5   : > { %p284_p3 = scmp.lt.s32.totalorder (!%p248_p2), %s6061_s25, 1  ;;  %v7324_v0 = vmov (!%p248_p2), 0.0   ;;  %s7325_s30 = smov (!%p248_p2), 33   ;;  %vm302_vm0 = vcmask (!%p248_p2), 556032   ;;  %vm375_vm1 = vcmask (!%p248_p2), 121856   ;;  %vm385_vm2 = vcmask (!%p248_p2), 269448  }
   0x6   : > { %251 = sbr.rel (%p248_p2) target bundleno = 2798 (0xaee), region = 48  ;;  %301 = vst [vmem:[#allocation2 + $0x8] sm:$0xff] (!%p248_p2), %v7324_v0  ;;  %300 = vst [vmem:[#allocation2] sm:$0xff] (!%p248_p2), %v7324_v0  ;;  %578 = vmatprep.mubr.f32.mxu1 (!%p248_p2), %v7324_v0  ;;  %920 = vmatprep.mubr.f32.mxu0 (!%p248_p2), %v7324_v0  ;;  %s7326_s8 = smov (!%p248_p2), 31   ;;  %vm319_vm3 = vcmask (!%p248_p2), 285848   ;;  %vm396_vm4 = vcmask (!%p248_p2), 417048  }
   0x7   : > { %304 = vst [vmem:[#allocation2 + $0x18] sm:$0xff] (!%p248_p2), %v7324_v0  ;;  %305 = vst [vmem:[#allocation2 + $0x20] sm:$0xff] (!%p248_p2), %v7324_v0  ;;  %s7327_s9 = smov (!%p248_p2), 19   ;;  %s7328_s10 = smov (!%p248_p2), 35   ;;  %vm328_vm5 = vcmask (!%p248_p2), 433448   ;;  %vm405_vm6 = vcmask (!%p248_p2), 564648  }
   0x8   : > { %s7329_s11 = smov (!%p248_p2), 21   ;;  %s7330_s12 = smov (!%p248_p2), 37   ;;  %306 = vst.msk [vmem:[#allocation2 + $0x28] sm:$0xff] (!%p248_p2), %vm302_vm0, %v7324_v0  ;;  %303 = vst.msk [vmem:[#allocation2 + $0x10] sm:$0xff] (!%p248_p2), %vm302_vm0, %v7324_v0  ;;  %vm337_vm7 = vcmask (!%p248_p2), 581048   ;;  %vm414_vm8 = vcmask (!%p248_p2), 712248  }
   0x9   : > { %s7331_s13 = smov (!%p248_p2), 23   ;;  %s7332_s14 = smov (!%p248_p2), 39   ;;  %vm346_vm9 = vcmask (!%p248_p2), 728648   ;;  %vm423_vm10 = vcmask (!%p248_p2), 859848   ;;  %vm443_vm11 = vcmask (!%p248_p2), 105472   ;;  %vm355_vm12 = vcmask (!%p248_p2), 876248  }
   0xa   : > { %s7333_s15 = smov (!%p248_p2), 25   ;;  %s7334_s16 = smov (!%p248_p2), 41   ;;  %vm432_vm13 = vcmask (!%p248_p2), 1007448   ;;  %vm441_vm14 = vcmask (!%p248_p2), 1048552   ;;  %vm453_vm15 = vcmask (!%p248_p2), 253048   ;;  %vm364_vm0 = vcmask (!%p248_p2), 1023848  }
   0xb   : > { %s7335_s17 = smov (!%p248_p2), 45   ;;  %s7336_s18 = smov (!%p248_p2), 27  }
   0xc   : > { %s7337_s19 = smov (!%p248_p2), 43   ;;  %s7338_s20 = smov (!%p248_p2), 47  }
   0xd   : > { %s8377_s25 = smov (!%p284_p3, %s6061_s25), 1  ;;  %s7339_s21 = smov 29  }
   0xe   : > { %s6230_s26 = sshll.u32 %s8377_s25, 5  ;;  %s7340_s22 = smov 49  }
   0xf   : > { %s288_s29 = scalar_lea.vmem %s8363_s0, %s6230_s26  ;;  %s7341_s23 = smov 127  }
  0x10   : > { %v307_v1 = vld [vmem:[%s288_s29] sm:$0xff]  ;;  %v309_v2 = vld [vmem:[%s288_s29 + $0x10] sm:$0xff]  ;;  %v310_v3 = vld [vmem:[%s288_s29 + $0x18] sm:$0xff]  ;;  %s7342_s27 = smov 126   ;;  %s7343_s28 = smov 110  }
  0x11   : > { %379 = vrot.lane.b32.xlu1 %v307_v1, %s7325_s30  ;;  %367 = vrot.lane.b32.xlu0 %v307_v1, %s7326_s8  ;;  %v308_v4 = vld [vmem:[%s288_s29 + $0x8] sm:$0xff]  ;;  %s7344_s29 = smov 109  }
  0x15   : > { %381 = vrot.lane.b32.xlu1 %v309_v2, %s7325_s30  ;;  %369 = vrot.lane.b32.xlu0 %v309_v2, %s7326_s8  ;;  %s7345_s30 = smov 108   ;;  %s7346_s8 = smov 92  }
  0x19   : > { %315 = vrot.lane.b32.xlu1 %v309_v2, %s7327_s9  ;;  %313 = vrot.lane.b32.xlu0 %v307_v1, %s7327_s9 }
  0x1d   : > { %392 = vrot.lane.b32.xlu1 %v310_v3, %s7328_s10  ;;  %390 = vrot.lane.b32.xlu0 %v308_v4, %s7328_s10  ;;  %s7347_s10 = smov 91  }
  0x21   : > { %324 = vrot.lane.b32.xlu1 %v309_v2, %s7329_s11  ;;  %322 = vrot.lane.b32.xlu0 %v307_v1, %s7329_s11  ;;  %s7348_s11 = smov 90  }
  0x25   : > { %401 = vrot.lane.b32.xlu1 %v310_v3, %s7330_s12  ;;  %399 = vrot.lane.b32.xlu0 %v308_v4, %s7330_s12  ;;  %s7361_s12 = smov 106  }
  0x29   : > { %333 = vrot.lane.b32.xlu1 %v309_v2, %s7331_s13  ;;  %331 = vrot.lane.b32.xlu0 %v307_v1, %s7331_s13  ;;  %s7362_s13 = smov 104  }
  0x2d   : > { %410 = vrot.lane.b32.xlu1 %v310_v3, %s7332_s14  ;;  %408 = vrot.lane.b32.xlu0 %v308_v4, %s7332_s14  ;;  %s7363_s14 = smov 102  }
  0x31   : > { %342 = vrot.lane.b32.xlu1 %v309_v2, %s7333_s15  ;;  %340 = vrot.lane.b32.xlu0 %v307_v1, %s7333_s15  ;;  %s7364_s15 = smov 100  }
  0x35   : > { %419 = vrot.lane.b32.xlu1 %v310_v3, %s7334_s16  ;;  %417 = vrot.lane.b32.xlu0 %v308_v4, %s7334_s16 }
  0x39   : > { %437 = vrot.lane.b32.xlu1 %v310_v3, %s7335_s17  ;;  %435 = vrot.lane.b32.xlu0 %v308_v4, %s7335_s17  ;;  %s6231_s17 = sshll.u32 %s8377_s25, 4 }
  0x3d   : > { %351 = vrot.lane.b32.xlu1 %v309_v2, %s7336_s18  ;;  %349 = vrot.lane.b32.xlu0 %v307_v1, %s7336_s18  ;;  %s7356_s18 = smov 122  }
  0x41   : > { %428 = vrot.lane.b32.xlu1 %v310_v3, %s7337_s19  ;;  %426 = vrot.lane.b32.xlu0 %v308_v4, %s7337_s19  ;;  %s7357_s19 = smov 120  }
  0x45   : > { %449 = vrot.lane.b32.xlu1 %v310_v3, %s7338_s20  ;;  %447 = vrot.lane.b32.xlu0 %v308_v4, %s7338_s20  ;;  %s293_s20 = scalar_lea.vmem %s8368_s5, %s6231_s17  ;;  %s7355_s17 = smov 124  }
  0x49   : > { %360 = vrot.lane.b32.xlu1 %v309_v2, %s7339_s21  ;;  %358 = vrot.lane.b32.xlu0 %v307_v1, %s7339_s21  ;;  %s7351_s21 = smov 1  }
  0x4d   : > { %458 = vrot.lane.b32.xlu1 %v310_v3, %s7340_s22  ;;  %456 = vrot.lane.b32.xlu0 %v308_v4, %s7340_s22  ;;  %s7359_s22 = smov 116  }
  0x83   : > { %v380_v5 = vpop.permute.xlu1 %379  ;;  %v7432_v6 = vpop.permute.xlu0 %367 }
  0x84   : > { %376 = vst.msk [vmem:[#allocation2 + $0x8] sm:$0xff] %vm375_vm1, %v7432_v6 }
  0x85   : > { %386 = vst.msk [vmem:[#allocation2 + $0x8] sm:$0xff] %vm385_vm2, %v380_v5 }
  0x87   : > { %v382_v7 = vpop.permute.xlu1 %381  ;;  %v7435_v8 = vpop.permute.xlu0 %369 }
  0x88   : > { %378 = vst.msk [vmem:[#allocation2 + $0x20] sm:$0xff] %vm375_vm1, %v7435_v8  ;;  %vm373_vm1 = vcmask 1048568  }
  0x89   : > { %387 = vst.msk [vmem:[#allocation2 + $0x20] sm:$0xff] %vm385_vm2, %v382_v7  ;;  %vm462_vm2 = vcmask 400648  }
  0x8b   : > { %v316_v9 = vpop.permute.xlu1 %315  ;;  %v314_v10 = vpop.permute.xlu0 %313 }
  0x8c   : > { %321 = vst.msk [vmem:[#allocation2 + $0x18] sm:$0xff] %vm319_vm3, %v316_v9  ;;  %320 = vst.msk [vmem:[#allocation2] sm:$0xff] %vm319_vm3, %v314_v10  ;;  %vm496_vm3 = vcmask 1039360  }
  0x8f   : > { %v393_v11 = vpop.permute.xlu1 %392  ;;  %v391_v12 = vpop.permute.xlu0 %390 }
  0x90   : > { %398 = vst.msk [vmem:[#allocation2 + $0x20] sm:$0xff] %vm396_vm4, %v393_v11  ;;  %397 = vst.msk [vmem:[#allocation2 + $0x8] sm:$0xff] %vm396_vm4, %v391_v12  ;;  %vm839_vm4 = vcmask 1031168  }
  0x93   : > { %v325_v13 = vpop.permute.xlu1 %324  ;;  %v323_v14 = vpop.permute.xlu0 %322 }
  0x94   : > { %330 = vst.msk [vmem:[#allocation2 + $0x18] sm:$0xff] %vm328_vm5, %v325_v13  ;;  %329 = vst.msk [vmem:[#allocation2] sm:$0xff] %vm328_vm5, %v323_v14  ;;  %vm507_vm5 = vcmask 130048  }
  0x97   : > { %v402_v15 = vpop.permute.xlu1 %401  ;;  %v400_v16 = vpop.permute.xlu0 %399 }
  0x98   : > { %407 = vst.msk [vmem:[#allocation2 + $0x20] sm:$0xff] %vm405_vm6, %v402_v15  ;;  %406 = vst.msk [vmem:[#allocation2 + $0x8] sm:$0xff] %vm405_vm6, %v400_v16  ;;  %vm1029_vm6 = vcmask 900096  }
  0x9b   : > { %v334_v17 = vpop.permute.xlu1 %333  ;;  %v332_v18 = vpop.permute.xlu0 %331 }
  0x9c   : > { %339 = vst.msk [vmem:[#allocation2 + $0x18] sm:$0xff] %vm337_vm7, %v334_v17  ;;  %338 = vst.msk [vmem:[#allocation2] sm:$0xff] %vm337_vm7, %v332_v18  ;;  %vm1219_vm7 = vcmask 891904  }
  0x9f   : > { %v411_v19 = vpop.permute.xlu1 %410  ;;  %v409_v20 = vpop.permute.xlu0 %408 }
  0xa0   : > { %416 = vst.msk [vmem:[#allocation2 + $0x20] sm:$0xff] %vm414_vm8, %v411_v19  ;;  %415 = vst.msk [vmem:[#allocation2 + $0x8] sm:$0xff] %vm414_vm8, %v409_v20  ;;  %vm1409_vm8 = vcmask 883712  }
  0xa3   : > { %v343_v21 = vpop.permute.xlu1 %342  ;;  %v341_v22 = vpop.permute.xlu0 %340 }
  0xa4   : > { %348 = vst.msk [vmem:[#allocation2 + $0x18] sm:$0xff] %vm346_vm9, %v343_v21  ;;  %347 = vst.msk [vmem:[#allocation2] sm:$0xff] %vm346_vm9, %v341_v22  ;;  %v6073_v22 = vld [vmem:[%s8364_s1 + $0x18] sm:$0xff]  ;;  %vm1599_vm9 = vcmask 752640  }
  0xa7   : > { %v420_v23 = vpop.permute.xlu1 %419  ;;  %v418_v24 = vpop.permute.xlu0 %417 }
  0xa8   : > { %425 = vst.msk [vmem:[#allocation2 + $0x20] sm:$0xff] %vm423_vm10, %v420_v23  ;;  %424 = vst.msk [vmem:[#allocation2 + $0x8] sm:$0xff] %vm423_vm10, %v418_v24  ;;  %v7522_v23 = vld [vmem:[%s8364_s1 + $0x20] sm:$0xff]  ;;  %vm1789_vm10 = vcmask 744448  }
  0xab   : > { %v438_v25 = vpop.permute.xlu1 %437  ;;  %v436_v26 = vpop.permute.xlu0 %435 }
  0xac   : > { %446 = vst.msk [vmem:[#allocation2 + $0x28] sm:$0xff] %vm443_vm11, %v438_v25  ;;  %444 = vst.msk [vmem:[#allocation2 + $0x10] sm:$0xff] %vm443_vm11, %v436_v26  ;;  %vm8371_vm11 = vcmask 736256  }
  0xaf   : > { %v352_v27 = vpop.permute.xlu1 %351  ;;  %v350_v28 = vpop.permute.xlu0 %349 }
  0xb0   : > { %357 = vst.msk [vmem:[#allocation2 + $0x18] sm:$0xff] %vm355_vm12, %v352_v27  ;;  %356 = vst.msk [vmem:[#allocation2] sm:$0xff] %vm355_vm12, %v350_v28  ;;  %vm2177_vm12 = vcmask 244736  }
  0xb3   : > { %v429_v29 = vpop.permute.xlu1 %428  ;;  %v427_v30 = vpop.permute.xlu0 %426 }
  0xb4   : > { %434 = vst.msk [vmem:[#allocation2 + $0x20] sm:$0xff] %vm432_vm13, %v429_v29  ;;  %433 = vst.msk [vmem:[#allocation2 + $0x8] sm:$0xff] %vm432_vm13, %v427_v30 }
  0xb5   : > { %445 = vst.msk [vmem:[#allocation2 + $0x20] sm:$0xff] %vm441_vm14, %v438_v25  ;;  %442 = vst.msk [vmem:[#allocation2 + $0x8] sm:$0xff] %vm441_vm14, %v436_v26 }
  0xb7   : > { %v450_v31 = vpop.permute.xlu1 %449  ;;  %v448_v32 = vpop.permute.xlu0 %447 }
  0xb8   : > { %455 = vst.msk [vmem:[#allocation2 + $0x28] sm:$0xff] %vm453_vm15, %v450_v31  ;;  %454 = vst.msk [vmem:[#allocation2 + $0x10] sm:$0xff] %vm453_vm15, %v448_v32 }
  0xbb   : > { %v361_v33 = vpop.permute.xlu1 %360  ;;  %v359_v34 = vpop.permute.xlu0 %358 }
  0xbc   : > { %366 = vst.msk [vmem:[#allocation2 + $0x18] sm:$0xff] %vm364_vm0, %v361_v33  ;;  %365 = vst.msk [vmem:[#allocation2] sm:$0xff] %vm364_vm0, %v359_v34  ;;  %v7440_v37 = vld [vmem:[#allocation2 + $0x20] sm:$0xff]  ;;  %v7444_v39 = vld [vmem:[#allocation2 + $0x8] sm:$0xff] }
  0xbd   : > { %377 = vst.msk [vmem:[#allocation2 + $0x18] sm:$0xff] %vm373_vm1, %v7435_v8  ;;  %374 = vst.msk [vmem:[#allocation2] sm:$0xff] %vm373_vm1, %v7432_v6  ;;  %v6072_v8 = vld [vmem:[%s8364_s1 + $0x10] sm:$0xff]  ;;  %v6538_v16 = vpack.c.bf16 %v7440_v37, %v7444_v39 }
  0xbf   : > { %v459_v35 = vpop.permute.xlu1 %458  ;;  %v457_v36 = vpop.permute.xlu0 %456 }
  0xc0   : > { %464 = vst.msk [vmem:[#allocation2 + $0x28] sm:$0xff] %vm462_vm2, %v459_v35  ;;  %463 = vst.msk [vmem:[#allocation2 + $0x10] sm:$0xff] %vm462_vm2, %v457_v36  ;;  %v7545_v35 = vld [vmem:[%s8364_s1 + $0x28] sm:$0xff] }
  0xc4   : > { %v7452_v43 = vld [vmem:[#allocation2] sm:$0xff]  ;;  %v7454_v44 = vld [vmem:[#allocation2 + $0x18] sm:$0xff] }
  0xc5   : > { %v6950_v45 = vpack.i.bf16 %v7454_v44, %v7452_v43 }
  0xc7   : > { %v7442_v38 = vld [vmem:[#allocation2 + $0x28] sm:$0xff]  ;;  %v7446_v40 = vld [vmem:[#allocation2 + $0x10] sm:$0xff] }
  0xc8   : > { %v6945_v41 = vpack.i.bf16 %v7442_v38, %v7440_v37  ;;  %v6940_v42 = vpack.i.bf16 %v7446_v40, %v7444_v39  ;;  %v6540_v39 = vpack.c.bf16 %v7454_v44, %v7452_v43  ;;  %v473_v43 = vld [vmem:[%s8364_s1] sm:$0xff] }
  0xca   : > { %6946 = vrot.lane.b32.xlu1 %v6945_v41, %s7341_s23  ;;  %6941 = vrot.lane.b32.xlu0 %v6940_v42, %s7341_s23 }
  0xce   : > { %6956 = vrot.lane.b32.xlu1 %v6940_v42, %s7342_s27  ;;  %6951 = vrot.lane.b32.xlu0 %v6950_v45, %s7341_s23 }
  0xd2   : > { %6966 = vrot.lane.b32.xlu1 %v6950_v45, %s7342_s27  ;;  %6961 = vrot.lane.b32.xlu0 %v6945_v41, %s7342_s27 }
  0xd6   : > { %6976 = vrot.lane.b32.xlu1 %v6945_v41, %s7343_s28  ;;  %6971 = vrot.lane.b32.xlu0 %v6940_v42, %s7343_s28 }
  0xda   : > { %6986 = vrot.lane.b32.xlu1 %v6940_v42, %s7344_s29  ;;  %6981 = vrot.lane.b32.xlu0 %v6950_v45, %s7343_s28 }
  0xde   : > { %6996 = vrot.lane.b32.xlu1 %v6950_v45, %s7344_s29  ;;  %6991 = vrot.lane.b32.xlu0 %v6945_v41, %s7344_s29 }
  0xe2   : > { %7006 = vrot.lane.b32.xlu1 %v6945_v41, %s7345_s30  ;;  %7001 = vrot.lane.b32.xlu0 %v6940_v42, %s7345_s30 }
  0xe6   : > { %7016 = vrot.lane.b32.xlu1 %v6940_v42, %s7346_s8  ;;  %7011 = vrot.lane.b32.xlu0 %v6950_v45, %s7345_s30 }
  0xea   : > { %7026 = vrot.lane.b32.xlu1 %v6950_v45, %s7346_s8  ;;  %7021 = vrot.lane.b32.xlu0 %v6945_v41, %s7346_s8 }
  0xee   : > { %7036 = vrot.lane.b32.xlu1 %v6945_v41, %s7347_s10  ;;  %7031 = vrot.lane.b32.xlu0 %v6940_v42, %s7347_s10 }
  0xf2   : > { %7046 = vrot.lane.b32.xlu1 %v6940_v42, %s7348_s11  ;;  %7041 = vrot.lane.b32.xlu0 %v6950_v45, %s7347_s10 }
  0xf6   : > { %7056 = vrot.lane.b32.xlu1 %v6950_v45, %s7348_s11  ;;  %7051 = vrot.lane.b32.xlu0 %v6945_v41, %s7348_s11  ;;  %v6542_v41 = vpack.c.bf16 %v7442_v38, %v7446_v40 }
 0x13c   : > { %v6947_v46 = vpop.permute.xlu1 %6946  ;;  %v6942_v47 = vpop.permute.xlu0 %6941 }
 0x13d   : > { %v6949_v48 = vunpack.i.h.bf16 %v6947_v46  ;;  %v6948_v49 = vunpack.i.l.bf16 %v6947_v46  ;;  %v6944_v50 = vunpack.i.h.bf16 %v6942_v47  ;;  %v6943_v51 = vunpack.i.l.bf16 %v6942_v47 }
 0x13f   : > { %v498_v52 = vsel %vm496_vm3, %v6943_v51, %v6944_v50  ;;  %v500_v53 = vsel %vm496_vm3, %v6948_v49, %v6949_v48  ;;  %v6534_v3 = vpack.c.bf16 %v6949_v48, %v6944_v50 }
 0x140   : > { %v7484_v54 = vpop.permute.xlu1 %6956  ;;  %v6952_v55 = vpop.permute.xlu0 %6951  ;;  %v6530_v56 = vpack.c.bf16 %v500_v53, %v498_v52 }
 0x141   : > { %v6954_v57 = vunpack.i.h.bf16 %v6952_v55  ;;  %v6953_v58 = vunpack.i.l.bf16 %v6952_v55  ;;  %v6959_v59 = vunpack.i.h.bf16 %v7484_v54  ;;  %v6958_v60 = vunpack.i.l.bf16 %v7484_v54  ;;  %v474_v54 = vld [vmem:[%s8364_s1 + $0x8] sm:$0xff] }
 0x142   : > { %6531 = vmatprep.subr.bf16.mxu1 %v6530_v56 }
 0x143   : > { %v497_v61 = vsel %vm496_vm3, %v6953_v58, %v6943_v51  ;;  %v499_v62 = vsel %vm496_vm3, %v6954_v57, %v6948_v49  ;;  %v841_v9 = vsel %vm839_vm4, %v6958_v60, %v6959_v59  ;;  %v7569_v49 = vld [vmem:[%s8364_s1 + $0x30] sm:$0xff] }
 0x144   : > { %v6967_v63 = vpop.permute.xlu1 %6966  ;;  %v7490_v1 = vpop.permute.xlu0 %6961  ;;  %v6532_v2 = vpack.c.bf16 %v499_v62, %v497_v61 }
 0x145   : > { %v6969_v4 = vunpack.i.h.bf16 %v6967_v63  ;;  %v6968_v5 = vunpack.i.l.bf16 %v6967_v63  ;;  %v6964_v6 = vunpack.i.h.bf16 %v7490_v1  ;;  %v6963_v7 = vunpack.i.l.bf16 %v7490_v1 }
 0x146   : > { %6533 = vmatpush1.bf16.msra.mxu1 %v6532_v2 }
 0x147   : > { %6535 = vmatprep.subr.bf16.mxu1 %v6534_v3  ;;  %v843_v10 = vsel %vm839_vm4, %v6963_v7, %v6964_v6  ;;  %v840_v11 = vsel %vm839_vm4, %v6968_v5, %v6958_v60  ;;  %v842_v12 = vsel %vm839_vm4, %v6969_v4, %v6963_v7  ;;  %v6550_v53 = vpack.c.bf16 %v6964_v6, %v6959_v59  ;;  %v7597_v59 = vld [vmem:[%s8364_s1 + $0x38] sm:$0xff] }
 0x148   : > { %v7505_v13 = vpop.permute.xlu1 %6976  ;;  %v7507_v14 = vpop.permute.xlu0 %6971  ;;  %v6546_v15 = vpack.c.bf16 %v843_v10, %v841_v9  ;;  %v6548_v17 = vpack.c.bf16 %v842_v12, %v840_v11  ;;  %v7621_v10 = vld [vmem:[%s8364_s1 + $0x40] sm:$0xff] }
 0x149   : > { %v6979_v18 = vunpack.i.h.bf16 %v7505_v13  ;;  %v6978_v19 = vunpack.i.l.bf16 %v7505_v13  ;;  %v6974_v20 = vunpack.i.h.bf16 %v7507_v14  ;;  %v6973_v21 = vunpack.i.l.bf16 %v7507_v14  ;;  %6074 = vmatmul.mubr.msk.f32.vlgmr.msra.gmra.mrb[0].mxu1 %vm507_vm5, %v6072_v8 }
 0x14a   : > { %6537 = vmatpush3.bf16.msra.mxu1 %v6534_v3  ;;  %6547 = vmatprep.subr.bf16.mxu0 %v6546_v15 }
 0x14b   : > { %6539 = vmatprep.subr.bf16.mxu1 %v6538_v16  ;;  %6549 = vmatpush1.bf16.msra.mxu0 %v6548_v17  ;;  %v1031_v24 = vsel %vm1029_vm6, %v6973_v21, %v6974_v20  ;;  %v1033_v25 = vsel %vm1029_vm6, %v6978_v19, %v6979_v18 }
 0x14c   : > { %v7530_v26 = vpop.permute.xlu1 %6986  ;;  %v6982_v27 = vpop.permute.xlu0 %6981  ;;  %584 = vmatprep.mubr.f32.mxu1 %v7324_v0  ;;  %v6554_v28 = vpack.c.bf16 %v1033_v25, %v1031_v24  ;;  %v7637_v24 = vld [vmem:[%s8364_s1 + $0x48] sm:$0xff] }
 0x14d   : > { %v6984_v29 = vunpack.i.h.bf16 %v6982_v27  ;;  %v6983_v30 = vunpack.i.l.bf16 %v6982_v27  ;;  %6075 = vmatmul.mubr.msk.f32.gmra.mrb[2].mxu1 %vm507_vm5, %v6073_v22  ;;  %v6989_v31 = vunpack.i.h.bf16 %v7530_v26  ;;  %v6988_v32 = vunpack.i.l.bf16 %v7530_v26 }
 0x14e   : > { %6084 = vmatmul.mubr.msk.f32.vlgmr.msra.gmra.mrb[0].mxu0 %vm507_vm5, %v7522_v23  ;;  %6555 = vmatprep.subr.bf16.mxu0 %v6554_v28 }
 0x14f   : > { %v1032_v33 = vsel %vm1029_vm6, %v6984_v29, %v6978_v19  ;;  %v1030_v34 = vsel %vm1029_vm6, %v6983_v30, %v6973_v21  ;;  %6345 = vmatprep.mubr.msk.f32.mxu1 %vm507_vm5, %v6072_v8  ;;  %926 = vmatprep.mubr.f32.mxu0 %v7324_v0  ;;  %v1221_v38 = vsel %vm1219_vm7, %v6988_v32, %v6989_v31 }
 0x150   : > { %v6997_v36 = vpop.permute.xlu1 %6996  ;;  %v7547_v37 = vpop.permute.xlu0 %6991  ;;  %v6556_v42 = vpack.c.bf16 %v1032_v33, %v1030_v34  ;;  %v6558_v19 = vpack.c.bf16 %v6979_v18, %v6974_v20 }
 0x151   : > { %v6999_v45 = vunpack.i.h.bf16 %v6997_v36  ;;  %v6998_v46 = vunpack.i.l.bf16 %v6997_v36  ;;  %v6994_v47 = vunpack.i.h.bf16 %v7547_v37  ;;  %v6993_v48 = vunpack.i.l.bf16 %v7547_v37  ;;  %6346 = vmatmul.mubr.msk.f32.vlgmr.msra.gmra.mrb[4].mxu1 %vm507_vm5, %v6073_v22 }
 0x152   : > { %6541 = vmatpush1.bf16.msra.mxu1 %v6540_v39  ;;  %6085 = vmatmul.mubr.msk.f32.gmra.mrb[2].mxu0 %vm507_vm5, %v7545_v35 }
 0x153   : > { %v1220_v40 = vsel %vm1219_vm7, %v6998_v46, %v6988_v32  ;;  %v1222_v44 = vsel %vm1219_vm7, %v6999_v45, %v6993_v48  ;;  %6543 = vmatprep.subr.bf16.mxu1 %v6542_v41  ;;  %6557 = vmatpush1.bf16.msra.mxu0 %v6556_v42  ;;  %v1223_v50 = vsel %vm1219_vm7, %v6993_v48, %v6994_v47 }
 0x154   : > { %v7574_v51 = vpop.permute.xlu1 %7006  ;;  %v7576_v52 = vpop.permute.xlu0 %7001  ;;  %736 = vmatprep.mubr.f32.mxu1 %v7324_v0  ;;  %1110 = vmatprep.mubr.f32.mxu0 %v7324_v0  ;;  %v6562_v55 = vpack.c.bf16 %v1223_v50, %v1221_v38  ;;  %v6564_v56 = vpack.c.bf16 %v1222_v44, %v1220_v40  ;;  %v6566_v45 = vpack.c.bf16 %v6994_v47, %v6989_v31 }
 0x155   : > { %v7009_v57 = vunpack.i.h.bf16 %v7574_v51  ;;  %v7008_v58 = vunpack.i.l.bf16 %v7574_v51  ;;  %v7004_v60 = vunpack.i.h.bf16 %v7576_v52  ;;  %v7003_v61 = vunpack.i.l.bf16 %v7576_v52  ;;  %6078 = vmatmul.mubr.msk.f32.vlgmr.msra.gmra.mrb[0].mxu1 %vm507_vm5, %v473_v43 }
 0x156   : > { %6545 = vmatpush3.bf16.msra.mxu1 %v6542_v41  ;;  %6090 = vmatmul.mubr.msk.f32.vlgmr.msra.gmra.mrb[0].mxu0 %vm507_vm5, %v7569_v49 }
 0x157   : > { %6551 = vmatprep.subr.bf16.mxu1 %v6550_v53  ;;  %6563 = vmatprep.subr.bf16.mxu0 %v6562_v55  ;;  %v1411_v62 = vsel %vm1409_vm8, %v7003_v61, %v7004_v60  ;;  %v1413_v63 = vsel %vm1409_vm8, %v7008_v58, %v7009_v57 }
 0x158   : > { %6565 = vmatpush1.bf16.msra.mxu0 %v6564_v56  ;;  %v7605_v1 = vpop.permute.xlu1 %7016  ;;  %v7012_v2 = vpop.permute.xlu0 %7011  ;;  %742 = vmatprep.mubr.f32.mxu1 %v7324_v0  ;;  %v6570_v3 = vpack.c.bf16 %v1413_v63, %v1411_v62  ;;  %v6107_v63 = vld [vmem:[%s8364_s1 + $0x68] sm:$0xff] }
 0x159   : > { %v7014_v4 = vunpack.i.h.bf16 %v7012_v2  ;;  %v7013_v5 = vunpack.i.l.bf16 %v7012_v2  ;;  %6079 = vmatmul.mubr.msk.f32.gmra.mrb[2].mxu1 %vm507_vm5, %v474_v54  ;;  %1116 = vmatprep.mubr.f32.mxu0 %v7324_v0  ;;  %v7019_v6 = vunpack.i.h.bf16 %v7605_v1  ;;  %v7018_v7 = vunpack.i.l.bf16 %v7605_v1  ;;  %v6113_v2 = vld [vmem:[%s8364_s1 + $0x78] sm:$0xff]  ;;  %v6118_v1 = vld [vmem:[%s8364_s1 + $0x80] sm:$0xff] }
 0x15a   : > { %6091 = vmatmul.mubr.msk.f32.gmra.mrb[2].mxu0 %vm507_vm5, %v7597_v59  ;;  %6571 = vmatprep.subr.bf16.mxu0 %v6570_v3 }
 0x15b   : > { %v1412_v8 = vsel %vm1409_vm8, %v7014_v4, %v7008_v58  ;;  %v1410_v9 = vsel %vm1409_vm8, %v7013_v5, %v7003_v61  ;;  %6352 = vmatprep.mubr.msk.f32.mxu1 %vm507_vm5, %v473_v43  ;;  %1300 = vmatprep.mubr.f32.mxu0 %v7324_v0  ;;  %v1601_v14 = vsel %vm1599_vm9, %v7018_v7, %v7019_v6  ;;  %v6119_v4 = vld [vmem:[%s8364_s1 + $0x88] sm:$0xff] }
 0x15c   : > { %v7027_v11 = vpop.permute.xlu1 %7026  ;;  %v7623_v12 = vpop.permute.xlu0 %7021  ;;  %v6572_v15 = vpack.c.bf16 %v1412_v8, %v1410_v9  ;;  %v6574_v58 = vpack.c.bf16 %v7009_v57, %v7004_v60  ;;  %v6112_v57 = vld [vmem:[%s8364_s1 + $0x70] sm:$0xff] }
 0x15d   : > { %v7024_v16 = vunpack.i.h.bf16 %v7623_v12  ;;  %v7023_v17 = vunpack.i.l.bf16 %v7623_v12  ;;  %6353 = vmatmul.mubr.msk.f32.vlgmr.msra.gmra.mrb[4].mxu1 %vm507_vm5, %v474_v54  ;;  %v7029_v21 = vunpack.i.h.bf16 %v7027_v11  ;;  %v7028_v22 = vunpack.i.l.bf16 %v7027_v11 }
 0x15e   : > { %6553 = vmatpush3.bf16.msra.mxu1 %v6550_v53  ;;  %6096 = vmatmul.mubr.msk.f32.vlgmr.msra.gmra.mrb[0].mxu0 %vm507_vm5, %v7621_v10  ;;  %v6106_v53 = vld [vmem:[%s8364_s1 + $0x60] sm:$0xff] }
 0x15f   : > { %6559 = vmatprep.subr.bf16.mxu1 %v6558_v19  ;;  %6573 = vmatpush1.bf16.msra.mxu0 %v6572_v15  ;;  %v1603_v13 = vsel %vm1599_vm9, %v7023_v17, %v7024_v16  ;;  %v1600_v32 = vsel %vm1599_vm9, %v7028_v22, %v7018_v7  ;;  %v1602_v33 = vsel %vm1599_vm9, %v7029_v21, %v7023_v17  ;;  %v2155_v21 = vlaneseq }
 0x160   : > { %v7645_v18 = vpop.permute.xlu1 %7036  ;;  %v7647_v20 = vpop.permute.xlu0 %7031  ;;  %1306 = vmatprep.mubr.f32.mxu0 %v7324_v0  ;;  %v6578_v25 = vpack.c.bf16 %v1603_v13, %v1601_v14  ;;  %6359 = vmatprep.mubr.msk.f32.mxu1 %vm507_vm5, %v7522_v23  ;;  %v6100_v23 = vld [vmem:[%s8364_s1 + $0x50] sm:$0xff]  ;;  %v6580_v46 = vpack.c.bf16 %v1602_v33, %v1600_v32  ;;  %v6582_v60 = vpack.c.bf16 %v7024_v16, %v7019_v6 }
 0x161   : > { %v7039_v27 = vunpack.i.h.bf16 %v7645_v18  ;;  %v7038_v28 = vunpack.i.l.bf16 %v7645_v18  ;;  %v7034_v29 = vunpack.i.h.bf16 %v7647_v20  ;;  %v7033_v30 = vunpack.i.l.bf16 %v7647_v20  ;;  %v299_v18 = vld [vmem:[%s8369_s6] sm:$0x7] }
 0x162   : > { %6097 = vmatmul.mubr.msk.f32.gmra.mrb[2].mxu0 %vm507_vm5, %v7637_v24  ;;  %6579 = vmatprep.subr.bf16.mxu0 %v6578_v25 }
 0x163   : > { %1490 = vmatprep.mubr.f32.mxu0 %v7324_v0  ;;  %v1791_v34 = vsel %vm1789_vm10, %v7033_v30, %v7034_v29  ;;  %v1793_v36 = vsel %vm1789_vm10, %v7038_v28, %v7039_v27  ;;  %v6590_v3 = vpack.c.bf16 %v7039_v27, %v7034_v29 }
 0x164   : > { %v7670_v39 = vpop.permute.xlu1 %7046  ;;  %v7042_v41 = vpop.permute.xlu0 %7041  ;;  %v6586_v42 = vpack.c.bf16 %v1793_v36, %v1791_v34 }
 0x165   : > { %6360 = vmatmul.mubr.msk.f32.vlgmr.msra.gmra.mrb[4].mxu1 %vm507_vm5, %v7545_v35  ;;  %v7044_v48 = vunpack.i.h.bf16 %v7042_v41  ;;  %v7043_v43 = vunpack.i.l.bf16 %v7042_v41  ;;  %v7049_v38 = vunpack.i.h.bf16 %v7670_v39  ;;  %v7048_v40 = vunpack.i.l.bf16 %v7670_v39  ;;  %v6101_v35 = vld [vmem:[%s8364_s1 + $0x58] sm:$0xff] }
 0x166   : > { %6561 = vmatpush3.bf16.msra.mxu1 %v6558_v19  ;;  %6102 = vmatmul.mubr.msk.f32.vlgmr.msra.gmra.mrb[0].mxu0 %vm507_vm5, %v6100_v23 }
 0x167   : > { %6567 = vmatprep.subr.bf16.mxu1 %v6566_v45  ;;  %6581 = vmatpush1.bf16.msra.mxu0 %v6580_v46  ;;  %v1792_v47 = vsel %vm1789_vm10, %v7044_v48, %v7038_v28  ;;  %v1790_v44 = vsel %vm1789_vm10, %v7043_v43, %v7033_v30  ;;  %v1981_v55 = vsel %vm8371_vm11, %v7048_v40, %v7049_v38 }
 0x168   : > { %6587 = vmatprep.subr.bf16.mxu0 %v6586_v42  ;;  %v7052_v26 = vpop.permute.xlu0 %7051  ;;  %1496 = vmatprep.mubr.f32.mxu0 %v7324_v0  ;;  %v7057_v50 = vpop.permute.xlu1 %7056  ;;  %v6588_v61 = vpack.c.bf16 %v1792_v47, %v1790_v44 }
 0x169   : > { %v7054_v31 = vunpack.i.h.bf16 %v7052_v26  ;;  %v7053_v37 = vunpack.i.l.bf16 %v7052_v26  ;;  %6366 = vmatprep.mubr.msk.f32.mxu1 %vm507_vm5, %v7569_v49  ;;  %v7059_v54 = vunpack.i.h.bf16 %v7057_v50  ;;  %v7058_v62 = vunpack.i.l.bf16 %v7057_v50 }
 0x16a   : > { %6103 = vmatmul.mubr.msk.f32.gmra.mrb[2].mxu0 %vm507_vm5, %v6101_v35 }
 0x16b   : > { %1680 = vmatprep.mubr.f32.mxu0 %v7324_v0  ;;  %v1983_v56 = vsel %vm8371_vm11, %v7053_v37, %v7054_v31  ;;  %v1980_v51 = vsel %vm8371_vm11, %v7058_v62, %v7048_v40  ;;  %v1982_v52 = vsel %vm8371_vm11, %v7059_v54, %v7053_v37  ;;  %v6598_v5 = vpack.c.bf16 %v7054_v31, %v7049_v38 }
 0x16c   : > { %v6594_v49 = vpack.c.bf16 %v1983_v56, %v1981_v55 }
 0x16d   : > { %6367 = vmatmul.mubr.msk.f32.vlgmr.msra.gmra.mrb[4].mxu1 %vm507_vm5, %v7597_v59  ;;  %v6596_v59 = vpack.c.bf16 %v1982_v52, %v1980_v51 }
 0x16e   : > { %6569 = vmatpush3.bf16.msra.mxu1 %v6566_v45  ;;  %6108 = vmatmul.mubr.msk.f32.vlgmr.msra.gmra.mrb[0].mxu0 %vm507_vm5, %v6106_v53 }
 0x16f   : > { %6575 = vmatprep.subr.bf16.mxu1 %v6574_v58  ;;  %6589 = vmatpush1.bf16.msra.mxu0 %v6588_v61 }
 0x170   : > { %6595 = vmatprep.subr.bf16.mxu0 %v6594_v49  ;;  %1686 = vmatprep.mubr.f32.mxu0 %v7324_v0  ;;  %v7349_v49 = vmov 0  }
 0x171   : > { %6373 = vmatprep.mubr.msk.f32.mxu1 %vm507_vm5, %v7621_v10  ;;  %7060 = vset.pattern.permute.xlu1 %v7349_v49 }
 0x172   : > { %6109 = vmatmul.mubr.msk.f32.gmra.mrb[2].mxu0 %vm507_vm5, %v6107_v63 }
 0x173   : > { %1870 = vmatprep.mubr.f32.mxu0 %v7324_v0 }
 0x175   : > { %6374 = vmatmul.mubr.msk.f32.vlgmr.msra.gmra.mrb[4].mxu1 %vm507_vm5, %v7637_v24  ;;  %v2156_v24 = vshrl.u32 %v2155_v21, 7 }
 0x176   : > { %6577 = vmatpush3.bf16.msra.mxu1 %v6574_v58  ;;  %6114 = vmatmul.mubr.msk.f32.vlgmr.msra.gmra.mrb[0].mxu0 %vm507_vm5, %v6112_v57 }
 0x177   : > { %6583 = vmatprep.subr.bf16.mxu1 %v6582_v60  ;;  %6597 = vmatpush1.bf16.msra.mxu0 %v6596_v59  ;;  %v2157_v14 = vsub.s32 0, %v2156_v24  ;;  %v2161_v13 = vsub.s32 1, %v2156_v24  ;;  %v2165_v20 = vsub.s32 2, %v2156_v24 }
 0x178   : > { %1876 = vmatprep.mubr.f32.mxu0 %v7324_v0  ;;  %6380 = vmatprep.mubr.msk.f32.mxu1 %vm507_vm5, %v6100_v23 }
 0x179   : > { %v7767_v25 = vrot.slane %v299_v18, %v2157_v14  ;;  %v7769_v27 = vrot.slane %v299_v18, %v2161_v13  ;;  %v7771_v28 = vrot.slane %v299_v18, %v2165_v20 }
 0x17a   : > { %6115 = vmatmul.mubr.msk.f32.gmra.mrb[2].mxu0 %vm507_vm5, %v6113_v2 }
 0x17b   : > { %2060 = vmatprep.mubr.f32.mxu0 %v7324_v0 }
 0x17d   : > { %6381 = vmatmul.mubr.msk.f32.vlgmr.msra.gmra.mrb[4].mxu1 %vm507_vm5, %v6101_v35 }
 0x17e   : > { %6585 = vmatpush3.bf16.msra.mxu1 %v6582_v60  ;;  %6120 = vmatmul.mubr.msk.f32.vlgmr.msra.gmra.mrb[0].mxu0 %vm507_vm5, %v6118_v1 }
 0x17f   : > { %6591 = vmatprep.subr.bf16.mxu1 %v6590_v3  ;;  %2066 = vmatprep.mubr.f32.mxu0 %v7324_v0 }
 0x180   : > { %6387 = vmatprep.mubr.msk.f32.mxu1 %vm507_vm5, %v6106_v53 }
 0x182   : > { %6121 = vmatmul.mubr.msk.f32.gmra.mrb[2].mxu0 %vm507_vm5, %v6119_v4 }
 0x183   : > { %4259 = vmatprep.mubr.f32.mxu0 %v7324_v0 }
 0x185   : > { %6388 = vmatmul.mubr.msk.f32.vlgmr.msra.gmra.mrb[4].mxu1 %vm507_vm5, %v6107_v63 }
 0x186   : > { %6593 = vmatpush3.bf16.msra.mxu1 %v6590_v3  ;;  %6394 = vmatprep.mubr.msk.f32.mxu1 %vm507_vm5, %v6112_v57 }
 0x187   : > { %6599 = vmatprep.subr.bf16.mxu1 %v6598_v5 }
 0x18d   : > { %6395 = vmatmul.mubr.msk.f32.vlgmr.msra.gmra.mrb[4].mxu1 %vm507_vm5, %v6113_v2 }
 0x18e   : > { %6601 = vmatpush3.bf16.msra.mxu1 %v6598_v5  ;;  %6401 = vmatprep.mubr.msk.f32.mxu1 %vm507_vm5, %v6118_v1  ;;  %v7350_v5 = vmov 1  }
 0x18f   : > { %7061 = vset.pattern.permute.xlu0 %v7350_v5 }
 0x195   : > { %6402 = vmatmul.mubr.msk.f32.vlgmr.msra.gmra.mrb[4].mxu1 %vm507_vm5, %v6119_v4 }
 0x196   : > { %2433 = vmatprep.mubr.f32.mxu1 %v7324_v0 }
 0x228   : > { %v738_v6 = vpop.f32.mrb[0].mxu1 }
 0x229   : > { %v740_v7 = vpop.f32.mrb[1].mxu1 }
 0x22c   : > { %v744_v8 = vpop.f32.mrb[2].mxu1 }
 0x22d   : > { %v746_v9 = vpop.f32.mrb[3].mxu1 }
 0x251   : > { %v2062_v10 = vpop.f32.mrb[0].mxu0 }
 0x252   : > { %v7756_v11 = vadd.f32 %v2062_v10, %v738_v6  ;;  %v2064_v12 = vpop.f32.mrb[1].mxu0  ;;  %v7804_v6 = vld [vmem:[%s293_s20] sm:$0xff] }
 0x253   : > { %v7758_v15 = vadd.f32 %v2064_v12, %v740_v7  ;;  %v7807_v7 = vadd.f32 1.0, %v7804_v6 }
 0x254   : > { %v2170_v32 = vmul.f32 %v7756_v11, %v7767_v25 }
 0x255   : > { %v2068_v16 = vpop.f32.mrb[2].mxu0  ;;  %v2171_v33 = vmul.f32 %v7758_v15, %v7769_v27 }
 0x256   : > { %v7760_v17 = vadd.f32 %v2068_v16, %v744_v8  ;;  %v2070_v19 = vpop.f32.mrb[3].mxu0  ;;  %v2189_v42 = vmul.f32 %v7756_v11, %v2170_v32  ;;  %v7809_v8 = vld [vmem:[%s293_s20 + $0x8] sm:$0xff]  ;;  %s7358_s20 = smov 118  }
 0x257   : > { %v7762_v22 = vadd.f32 %v2070_v19, %v746_v9  ;;  %v2190_v45 = vmul.f32 %v7758_v15, %v2171_v33  ;;  %v2176_v48 = vadd.f32 %v2171_v33, %v2170_v32  ;;  %v7813_v12 = vadd.f32 1.0, %v7809_v8 }
 0x258   : > { %v2173_v29 = vmul.f32 %v7760_v17, %v7767_v25 }
 0x259   : > { %v2174_v30 = vmul.f32 %v7762_v22, %v7769_v27  ;;  %v2195_v44 = vadd.f32 %v2190_v45, %v2189_v42 }
 0x25a   : > { %v2192_v37 = vmul.f32 %v7760_v17, %v2173_v29 }
 0x25b   : > { %v2182_v41 = vadd.f32 %v2174_v30, %v2173_v29  ;;  %v2193_v47 = vmul.f32 %v7762_v22, %v2174_v30 }
 0x25d   : > { %v2200_v55 = vadd.f32 %v2193_v47, %v2192_v37 }
 0x268   : > { %v7781_v23 = vpop.f32.mrb[4].mxu1 }
 0x269   : > { %v2175_v34 = vmul.f32 %v7781_v23, %v7771_v28  ;;  %v7785_v36 = vpop.f32.mrb[5].mxu1 }
 0x26a   : > { %v2172_v39 = vmul.f32 %v7771_v28, %v7785_v36 }
 0x26b   : > { %v2183_v46 = vsel %vm2177_vm12, %v2175_v34, 0.0  ;;  %v2194_v26 = vmul.f32 %v7781_v23, %v2175_v34 }
 0x26c   : > { %v2191_v43 = vmul.f32 %v2172_v39, %v7785_v36  ;;  %v2184_v38 = vadd.f32 %v2183_v46, %v2182_v41  ;;  %v2178_v40 = vsel %vm2177_vm12, %v2172_v39, 0.0 }
 0x26d   : > { %v2179_v35 = vadd.f32 %v2178_v40, %v2176_v48  ;;  %v2201_v53 = vsel %vm2177_vm12, %v2194_v26, 0.0 }
 0x26e   : > { %2185 = vadd.xlane.f32.xlu1 %v2184_v38  ;;  %v2196_v31 = vsel %vm2177_vm12, %v2191_v43, 0.0  ;;  %v2202_v56 = vadd.f32 %v2201_v53, %v2200_v55 }
 0x26f   : > { %2180 = vadd.xlane.f32.xlu0 %v2179_v35  ;;  %v2197_v50 = vadd.f32 %v2196_v31, %v2195_v44 }
 0x273   : > { %2198 = vadd.xlane.f32.xlu0 %v2197_v50 }
 0x277   : > { %2203 = vadd.xlane.f32.xlu0 %v2202_v56 }
 0x2fb   : > { %v2186_v54 = vpop.xlane.xlu1 %2185 }
 0x2fc   : > { %v2181_v58 = vpop.xlane.xlu0 %2180  ;;  %v2188_v63 = vmul.f32 0.00390625, %v2186_v54 }
 0x2fd   : > { %v2187_v61 = vmul.f32 0.00390625, %v2181_v58 }
 0x2fe   : > { %v2208_v59 = vmul.f32 %v2188_v63, %v2188_v63 }
 0x2ff   : > { %v2207_v51 = vmul.f32 %v2187_v61, %v2187_v61 }
 0x300   : > { %v2199_v62 = vpop.xlane.xlu0 %2198 }
 0x301   : > { %v2205_v52 = vmul.f32 0.00390625, %v2199_v62 }
 0x303   : > { %v2209_v57 = vsub.f32 %v2205_v52, %v2207_v51 }
 0x304   : > { %v2204_v60 = vpop.xlane.xlu0 %2203 }
 0x305   : > { %v2213_v2 = vadd.f32 1e-05, %v2209_v57  ;;  %v2206_v1 = vmul.f32 0.00390625, %v2204_v60 }
 0x307   : > { %7308 = vrsqrt.f32 %v2213_v2  ;;  %v2210_v3 = vsub.f32 %v2206_v1, %v2208_v59 }
 0x309   : > { %v2214_v4 = vadd.f32 1e-05, %v2210_v3 }
 0x30b   : > { %7310 = vrsqrt.f32 %v2214_v4 }
 0x311   : > { %v7309_v9 = vpop.eup %7308 }
 0x312   : > { %v2217_v10 = vmul.f32 %v7309_v9, %v7807_v7 }
 0x314   : > { %v2219_v16 = vmul.f32 %v2217_v10, %v2187_v61 }
 0x315   : > { %v7311_v19 = vpop.eup %7310 }
 0x316   : > { %2223 = vrot.lane.b32.xlu1 %v2219_v16, %s7351_s21  ;;  %v2218_v21 = vmul.f32 %v7311_v19, %v7813_v12 }
 0x318   : > { %v2220_v24 = vmul.f32 %v2218_v21, %v2188_v63 }
 0x31a   : > { %2233 = vperm.xlu1 %7060, %v2217_v10   ;;  %2225 = vrot.lane.b32.xlu0 %v2220_v24, %s7351_s21 }
 0x31e   : > { %2238 = vperm.xlu1 %7060, %v2218_v21  }
 0x322   : > { %7062 = vset.pattern.permute.xlu1 %v7350_v5 }
 0x388   : > { %v2224_v14 = vpop.permute.xlu1 %2223 }
 0x389   : > { %v2229_v13 = vsub.f32 %v7804_v6, %v2224_v14 }
 0x38b   : > { %2249 = vperm.xlu0 %7061, %v2229_v13  }
 0x38c   : > { %v2226_v18 = vpop.permute.xlu0 %2225 }
 0x38d   : > { %v2230_v20 = vsub.f32 %v7809_v8, %v2226_v18 }
 0x38f   : > { %2254 = vperm.xlu1 %7062, %v2230_v20  }
 0x399   : > { %v2234_v29 = vpop.permute.xlu1 %2233 }
 0x39a   : > { %v2241_v30 = vmul.f32 %v7756_v11, %v2234_v29  ;;  %v2243_v32 = vmul.f32 %v2234_v29, %v7785_v36  ;;  %v2242_v34 = vmul.f32 %v7758_v15, %v2234_v29 }
 0x39d   : > { %v2239_v33 = vpop.permute.xlu1 %2238 }
 0x39e   : > { %v2244_v45 = vmul.f32 %v7760_v17, %v2239_v33  ;;  %v2245_v48 = vmul.f32 %v7762_v22, %v2239_v33  ;;  %v2246_v11 = vmul.f32 %v7781_v23, %v2239_v33 }
 0x40a   : > { %v2250_v39 = vpop.permute.xlu0 %2249 }
 0x40b   : > { %v2257_v41 = vadd.f32 %v2250_v39, %v2241_v30  ;;  %v2259_v42 = vadd.f32 %v2250_v39, %v2243_v32  ;;  %v2258_v46 = vadd.f32 %v2250_v39, %v2242_v34 }
 0x40d   : > { %vm2263_vm13 = vcmp.gt.f32.partialorder %v2257_v41, 0.0  ;;  %v2269_v43 = vmul.f32 0.2, %v2257_v41  ;;  %v2271_v38 = vmul.f32 0.2, %v2259_v42  ;;  %vm2265_vm14 = vcmp.gt.f32.partialorder %v2259_v42, 0.0 }
 0x40e   : > { %v2255_v40 = vpop.permute.xlu1 %2254  ;;  %v2270_v31 = vmul.f32 0.2, %v2258_v46  ;;  %vm2264_vm0 = vcmp.gt.f32.partialorder %v2258_v46, 0.0 }
 0x40f   : > { %v2260_v35 = vadd.f32 %v2255_v40, %v2244_v45  ;;  %v2261_v36 = vadd.f32 %v2255_v40, %v2245_v48  ;;  %v2275_v26 = vsel %vm2263_vm13, %v2257_v41, %v2269_v43  ;;  %v2262_v37 = vadd.f32 %v2255_v40, %v2246_v11  ;;  %v6124_v40 = vld [vmem:[%s8365_s2 + $0x10] sm:$0xff]  ;;  %v6125_v11 = vld [vmem:[%s8365_s2 + $0x18] sm:$0xff] }
 0x410   : > { %v2281_v15 = vmul.f32 %v2275_v26, %v7767_v25  ;;  %v2277_v17 = vsel %vm2265_vm14, %v2259_v42, %v2271_v38  ;;  %v2276_v53 = vsel %vm2264_vm0, %v2258_v46, %v2270_v31  ;;  %vm2316_vm13 = vcmask 1047704  }
 0x411   : > { %vm2266_vm15 = vcmp.gt.f32.partialorder %v2260_v35, 0.0  ;;  %v2272_v47 = vmul.f32 0.2, %v2260_v35  ;;  %vm2267_vm1 = vcmp.gt.f32.partialorder %v2261_v36, 0.0  ;;  %v2273_v22 = vmul.f32 0.2, %v2261_v36 }
 0x412   : > { %2293 = vrot.lane.b32.xlu1 %v2281_v15, %s7327_s9  ;;  %v2283_v23 = vmul.f32 %v2277_v17, %v7771_v28  ;;  %v2274_v56 = vmul.f32 0.2, %v2262_v37  ;;  %vm2268_vm2 = vcmp.gt.f32.partialorder %v2262_v37, 0.0  ;;  %v2282_v58 = vmul.f32 %v2276_v53, %v7769_v27 }
 0x413   : > { %v2278_v44 = vsel %vm2266_vm15, %v2260_v35, %v2272_v47  ;;  %v2279_v55 = vsel %vm2267_vm1, %v2261_v36, %v2273_v22  ;;  %vm2305_vm14 = vcmask 154624   ;;  %vm2319_vm15 = vcmask 400384  }
 0x414   : > { %v2284_v50 = vmul.f32 %v2278_v44, %v7767_v25  ;;  %v2285_v61 = vmul.f32 %v2279_v55, %v7769_v27  ;;  %v2280_v54 = vsel %vm2268_vm2, %v2262_v37, %v2274_v56  ;;  %v2330_v44 = vld [vmem:[%s8365_s2] sm:$0xff] }
 0x415   : > { %v2286_v62 = vmul.f32 %v2280_v54, %v7771_v28 }
 0x416   : > { %2299 = vrot.lane.b32.xlu0 %v2284_v50, %s7327_s9  ;;  %2297 = vrot.lane.b32.xlu1 %v2283_v23, %s7327_s9 }
 0x41a   : > { %2295 = vrot.lane.b32.xlu0 %v2282_v58, %s7327_s9  ;;  %2301 = vrot.lane.b32.xlu1 %v2285_v61, %s7327_s9  ;;  %v2331_v58 = vld [vmem:[%s8365_s2 + $0x8] sm:$0xff] }
 0x41e   : > { %2303 = vrot.lane.b32.xlu0 %v2286_v62, %s7327_s9 }
 0x484   : > { %v2294_v63 = vpop.permute.xlu1 %2293 }
 0x485   : > { %2317 = vst.msk [vmem:[#allocation2] sm:$0xff] %vm2316_vm13, %v2294_v63 }
 0x488   : > { %v2298_v51 = vpop.permute.xlu1 %2297  ;;  %v2300_v52 = vpop.permute.xlu0 %2299 }
 0x489   : > { %2321 = vst.msk [vmem:[#allocation2 + $0x18] sm:$0xff] %vm2316_vm13, %v2300_v52 }
 0x48c   : > { %v2302_v57 = vpop.permute.xlu1 %2301  ;;  %v2296_v60 = vpop.permute.xlu0 %2295  ;;  %v7859_v19 = vld [vmem:[#allocation2] sm:$0xff] }
 0x48d   : > { %v7841_v59 = vsel %vm2305_vm14, %v2300_v52, %v2302_v57  ;;  %v7844_v2 = vsel %vm2305_vm14, %v2294_v63, %v2296_v60  ;;  %v2307_v1 = vsel %vm2305_vm14, %v2296_v60, %v2298_v51 }
 0x48e   : > { %2320 = vst.msk [vmem:[#allocation2 + $0x10] sm:$0xff] %vm2319_vm15, %v2307_v1  ;;  %v6610_v3 = vpack.c.bf16 %v7841_v59, %v7844_v2 }
 0x490   : > { %v2304_v4 = vpop.permute.xlu0 %2303  ;;  %v7856_v16 = vld [vmem:[#allocation2 + $0x18] sm:$0xff] }
 0x491   : > { %v2309_v5 = vsel %vm2305_vm14, %v2302_v57, %v2304_v4  ;;  %v7073_v24 = vpack.i.bf16 %v7856_v16, %v7859_v19  ;;  %v6612_v47 = vpack.c.bf16 %v7856_v16, %v7859_v19  ;;  %v6135_v19 = vld [vmem:[%s8365_s2 + $0x28] sm:$0xff] }
 0x492   : > { %2323 = vst.msk [vmem:[#allocation2 + $0x28] sm:$0xff] %vm2319_vm15, %v2309_v5 }
 0x495   : > { %v7852_v9 = vld [vmem:[#allocation2 + $0x10] sm:$0xff] }
 0x496   : > { %v7068_v10 = vpack.i.bf16 %v7852_v9, %v7844_v2 }
 0x498   : > { %7069 = vrot.lane.b32.xlu1 %v7068_v10, %s7341_s23 }
 0x499   : > { %v2329_v21 = vld [vmem:[#allocation2 + $0x28] sm:$0xff] }
 0x49a   : > { %v7063_v14 = vpack.i.bf16 %v2329_v21, %v7841_v59  ;;  %v6614_v22 = vpack.c.bf16 %v2329_v21, %v7852_v9 }
 0x49c   : > { %7074 = vrot.lane.b32.xlu1 %v7073_v24, %s7341_s23  ;;  %7064 = vrot.lane.b32.xlu0 %v7063_v14, %s7341_s23 }
 0x4a0   : > { %7079 = vrot.lane.b32.xlu1 %v7063_v14, %s7342_s27  ;;  %7084 = vrot.lane.b32.xlu0 %v7068_v10, %s7342_s27 }
 0x4a4   : > { %7099 = vrot.lane.b32.xlu1 %v7068_v10, %s7343_s28  ;;  %7089 = vrot.lane.b32.xlu0 %v7073_v24, %s7342_s27 }
 0x4a8   : > { %7104 = vrot.lane.b32.xlu1 %v7073_v24, %s7343_s28  ;;  %7094 = vrot.lane.b32.xlu0 %v7063_v14, %s7343_s28 }
 0x4ac   : > { %7109 = vrot.lane.b32.xlu1 %v7063_v14, %s7344_s29  ;;  %7114 = vrot.lane.b32.xlu0 %v7068_v10, %s7344_s29 }
 0x4b0   : > { %7129 = vrot.lane.b32.xlu1 %v7068_v10, %s7345_s30  ;;  %7119 = vrot.lane.b32.xlu0 %v7073_v24, %s7344_s29 }
 0x4b4   : > { %7134 = vrot.lane.b32.xlu1 %v7073_v24, %s7345_s30  ;;  %7124 = vrot.lane.b32.xlu0 %v7063_v14, %s7345_s30 }
 0x4b8   : > { %7139 = vrot.lane.b32.xlu1 %v7063_v14, %s7346_s8  ;;  %7144 = vrot.lane.b32.xlu0 %v7068_v10, %s7346_s8 }
 0x4bc   : > { %7159 = vrot.lane.b32.xlu1 %v7068_v10, %s7347_s10  ;;  %7149 = vrot.lane.b32.xlu0 %v7073_v24, %s7346_s8 }
 0x4c0   : > { %7164 = vrot.lane.b32.xlu1 %v7073_v24, %s7347_s10  ;;  %7154 = vrot.lane.b32.xlu0 %v7063_v14, %s7347_s10 }
 0x4c4   : > { %7169 = vrot.lane.b32.xlu1 %v7063_v14, %s7348_s11  ;;  %7174 = vrot.lane.b32.xlu0 %v7068_v10, %s7348_s11 }
 0x4c8   : > { %7179 = vrot.lane.b32.xlu0 %v7073_v24, %s7348_s11 }
 0x50a   : > { %v7070_v13 = vpop.permute.xlu1 %7069 }
 0x50b   : > { %v7072_v18 = vunpack.i.h.bf16 %v7070_v13  ;;  %v7071_v20 = vunpack.i.l.bf16 %v7070_v13 }
 0x50d   : > { %v2354_v45 = vsel %vm496_vm3, %v7071_v20, %v7072_v18 }
 0x50e   : > { %v7075_v29 = vpop.permute.xlu1 %7074  ;;  %v7065_v30 = vpop.permute.xlu0 %7064 }
 0x50f   : > { %v7077_v32 = vunpack.i.h.bf16 %v7075_v29  ;;  %v7076_v33 = vunpack.i.l.bf16 %v7075_v29  ;;  %v7067_v34 = vunpack.i.h.bf16 %v7065_v30  ;;  %v7066_v39 = vunpack.i.l.bf16 %v7065_v30 }
 0x511   : > { %v2353_v41 = vsel %vm496_vm3, %v7076_v33, %v7071_v20  ;;  %v2355_v42 = vsel %vm496_vm3, %v7077_v32, %v7066_v39  ;;  %v2356_v46 = vsel %vm496_vm3, %v7066_v39, %v7067_v34  ;;  %v6606_v38 = vpack.c.bf16 %v7067_v34, %v7072_v18  ;;  %v6140_v39 = vld [vmem:[%s8365_s2 + $0x30] sm:$0xff] }
 0x512   : > { %v6604_v48 = vpack.c.bf16 %v2355_v42, %v2353_v41  ;;  %v6602_v43 = vpack.c.bf16 %v2356_v46, %v2354_v45  ;;  %v7080_v35 = vpop.permute.xlu1 %7079  ;;  %v7085_v36 = vpop.permute.xlu0 %7084 }
 0x513   : > { %v7082_v26 = vunpack.i.h.bf16 %v7080_v35  ;;  %v7081_v15 = vunpack.i.l.bf16 %v7080_v35  ;;  %v7087_v31 = vunpack.i.h.bf16 %v7085_v36  ;;  %v7086_v37 = vunpack.i.l.bf16 %v7085_v36 }
 0x514   : > { %6603 = vmatprep.subr.bf16.mxu1 %v6602_v43  ;;  %v6141_v43 = vld [vmem:[%s8365_s2 + $0x38] sm:$0xff] }
 0x515   : > { %6605 = vmatpush1.bf16.msra.mxu1 %v6604_v48  ;;  %v2695_v50 = vsel %vm839_vm4, %v7086_v37, %v7087_v31  ;;  %v2697_v23 = vsel %vm839_vm4, %v7081_v15, %v7082_v26  ;;  %v6622_v2 = vpack.c.bf16 %v7082_v26, %v7087_v31 }
 0x516   : > { %6607 = vmatprep.subr.bf16.mxu1 %v6606_v38  ;;  %v7090_v17 = vpop.permute.xlu0 %7089  ;;  %v6618_v56 = vpack.c.bf16 %v2697_v23, %v2695_v50  ;;  %v7100_v61 = vpop.permute.xlu1 %7099 }
 0x517   : > { %v7092_v53 = vunpack.i.h.bf16 %v7090_v17  ;;  %v7091_v55 = vunpack.i.l.bf16 %v7090_v17  ;;  %v7102_v57 = vunpack.i.h.bf16 %v7100_v61  ;;  %v7101_v60 = vunpack.i.l.bf16 %v7100_v61 }
 0x518   : > { %6126 = vmatmul.mubr.msk.f32.vlgmr.msra.gmra.mrb[6].mxu1 %vm507_vm5, %v6124_v40 }
 0x519   : > { %6609 = vmatpush3.bf16.msra.mxu1 %v6606_v38  ;;  %2439 = vmatprep.mubr.f32.mxu1 %v7324_v0  ;;  %v2696_v62 = vsel %vm839_vm4, %v7092_v53, %v7081_v15  ;;  %v2694_v63 = vsel %vm839_vm4, %v7091_v55, %v7086_v37  ;;  %v2884_v5 = vsel %vm1029_vm6, %v7101_v60, %v7102_v57 }
 0x51a   : > { %6611 = vmatprep.subr.bf16.mxu1 %v6610_v3  ;;  %v7095_v54 = vpop.permute.xlu0 %7094  ;;  %v6620_v59 = vpack.c.bf16 %v2696_v62, %v2694_v63  ;;  %v7105_v1 = vpop.permute.xlu1 %7104  ;;  %v6134_v3 = vld [vmem:[%s8365_s2 + $0x20] sm:$0xff] }
 0x51b   : > { %v7097_v51 = vunpack.i.h.bf16 %v7095_v54  ;;  %v7096_v52 = vunpack.i.l.bf16 %v7095_v54  ;;  %v7107_v9 = vunpack.i.h.bf16 %v7105_v1  ;;  %v7106_v10 = vunpack.i.l.bf16 %v7105_v1  ;;  %v6152_v1 = vld [vmem:[%s8365_s2 + $0x50] sm:$0xff] }
 0x51c   : > { %6127 = vmatmul.mubr.msk.f32.gmra.mrb[8].mxu1 %vm507_vm5, %v6125_v11 }
 0x51d   : > { %6408 = vmatprep.mubr.msk.f32.mxu1 %vm507_vm5, %v6124_v40  ;;  %v2886_v4 = vsel %vm1029_vm6, %v7096_v52, %v7097_v51  ;;  %v2883_v14 = vsel %vm1029_vm6, %v7106_v10, %v7101_v60  ;;  %v2885_v13 = vsel %vm1029_vm6, %v7107_v9, %v7096_v52  ;;  %v6630_v33 = vpack.c.bf16 %v7097_v51, %v7102_v57 }
 0x51e   : > { %v6626_v16 = vpack.c.bf16 %v2886_v4, %v2884_v5  ;;  %v7110_v21 = vpop.permute.xlu1 %7109  ;;  %v7115_v24 = vpop.permute.xlu0 %7114  ;;  %v6628_v32 = vpack.c.bf16 %v2885_v13, %v2883_v14 }
 0x51f   : > { %v7112_v18 = vunpack.i.h.bf16 %v7110_v21  ;;  %v7111_v20 = vunpack.i.l.bf16 %v7110_v21  ;;  %v7117_v29 = vunpack.i.h.bf16 %v7115_v24  ;;  %v7116_v30 = vunpack.i.l.bf16 %v7115_v24 }
 0x520   : > { %6409 = vmatmul.mubr.msk.f32.vlgmr.msra.gmra.mrb[10].mxu1 %vm507_vm5, %v6125_v11 }
 0x521   : > { %6613 = vmatpush1.bf16.msra.mxu1 %v6612_v47  ;;  %2591 = vmatprep.mubr.f32.mxu1 %v7324_v0  ;;  %v3073_v41 = vsel %vm1219_vm7, %v7116_v30, %v7117_v29  ;;  %v3075_v42 = vsel %vm1219_vm7, %v7111_v20, %v7112_v18  ;;  %v6638_v47 = vpack.c.bf16 %v7112_v18, %v7117_v29 }
 0x522   : > { %6615 = vmatprep.subr.bf16.mxu1 %v6614_v22  ;;  %v7120_v34 = vpop.permute.xlu0 %7119  ;;  %v6634_v48 = vpack.c.bf16 %v3075_v42, %v3073_v41  ;;  %v7130_v38 = vpop.permute.xlu1 %7129 }
 0x523   : > { %v7122_v45 = vunpack.i.h.bf16 %v7120_v34  ;;  %v7121_v46 = vunpack.i.l.bf16 %v7120_v34  ;;  %v7132_v15 = vunpack.i.h.bf16 %v7130_v38  ;;  %v7131_v31 = vunpack.i.l.bf16 %v7130_v38  ;;  %v6158_v34 = vld [vmem:[%s8365_s2 + $0x60] sm:$0xff] }
 0x524   : > { %6130 = vmatmul.mubr.msk.f32.vlgmr.msra.gmra.mrb[6].mxu1 %vm507_vm5, %v2330_v44 }
 0x525   : > { %6617 = vmatpush3.bf16.msra.mxu1 %v6614_v22  ;;  %2597 = vmatprep.mubr.f32.mxu1 %v7324_v0  ;;  %v3074_v11 = vsel %vm1219_vm7, %v7122_v45, %v7111_v20  ;;  %v3072_v35 = vsel %vm1219_vm7, %v7121_v46, %v7116_v30  ;;  %v6146_v22 = vld [vmem:[%s8365_s2 + $0x40] sm:$0xff]  ;;  %v3262_v50 = vsel %vm1409_vm8, %v7131_v31, %v7132_v15 }
 0x526   : > { %6619 = vmatprep.subr.bf16.mxu1 %v6618_v56  ;;  %v7125_v40 = vpop.permute.xlu0 %7124  ;;  %v6636_v37 = vpack.c.bf16 %v3074_v11, %v3072_v35  ;;  %v7135_v17 = vpop.permute.xlu1 %7134  ;;  %v6147_v56 = vld [vmem:[%s8365_s2 + $0x48] sm:$0xff] }
 0x527   : > { %v7127_v36 = vunpack.i.h.bf16 %v7125_v40  ;;  %v7126_v26 = vunpack.i.l.bf16 %v7125_v40  ;;  %v7137_v23 = vunpack.i.h.bf16 %v7135_v17  ;;  %v7136_v53 = vunpack.i.l.bf16 %v7135_v17  ;;  %v6164_v17 = vld [vmem:[%s8365_s2 + $0x70] sm:$0xff] }
 0x528   : > { %6131 = vmatmul.mubr.msk.f32.gmra.mrb[8].mxu1 %vm507_vm5, %v2331_v58 }
 0x529   : > { %6415 = vmatprep.mubr.msk.f32.mxu1 %vm507_vm5, %v2330_v44  ;;  %v3264_v44 = vsel %vm1409_vm8, %v7126_v26, %v7127_v36  ;;  %v3261_v54 = vsel %vm1409_vm8, %v7136_v53, %v7131_v31  ;;  %v3263_v62 = vsel %vm1409_vm8, %v7137_v23, %v7126_v26 }
 0x52a   : > { %v6642_v55 = vpack.c.bf16 %v3264_v44, %v3262_v50  ;;  %v7145_v61 = vpop.permute.xlu0 %7144  ;;  %v6644_v60 = vpack.c.bf16 %v3263_v62, %v3261_v54  ;;  %v6170_v62 = vld [vmem:[%s8365_s2 + $0x80] sm:$0xff] }
 0x52b   : > { %v7147_v52 = vunpack.i.h.bf16 %v7145_v61  ;;  %v7146_v57 = vunpack.i.l.bf16 %v7145_v61 }
 0x52c   : > { %6416 = vmatmul.mubr.msk.f32.vlgmr.msra.gmra.mrb[10].mxu1 %vm507_vm5, %v2331_v58  ;;  %v7140_v58 = vpop.permute.xlu1 %7139 }
 0x52d   : > { %6621 = vmatpush1.bf16.msra.mxu1 %v6620_v59  ;;  %2774 = vmatprep.mubr.f32.mxu1 %v7324_v0  ;;  %v7142_v63 = vunpack.i.h.bf16 %v7140_v58  ;;  %v7141_v51 = vunpack.i.l.bf16 %v7140_v58  ;;  %v6646_v59 = vpack.c.bf16 %v7127_v36, %v7132_v15 }
 0x52e   : > { %6623 = vmatprep.subr.bf16.mxu1 %v6622_v2 }
 0x52f   : > { %v3453_v4 = vsel %vm1599_vm9, %v7141_v51, %v7142_v63 }
 0x530   : > { %6136 = vmatmul.mubr.msk.f32.vlgmr.msra.gmra.mrb[6].mxu1 %vm507_vm5, %v6134_v3 }
 0x531   : > { %6625 = vmatpush3.bf16.msra.mxu1 %v6622_v2  ;;  %2780 = vmatprep.mubr.f32.mxu1 %v7324_v0  ;;  %v7150_v2 = vpop.permute.xlu0 %7149 }
 0x532   : > { %6627 = vmatprep.subr.bf16.mxu1 %v6626_v16  ;;  %v7152_v5 = vunpack.i.h.bf16 %v7150_v2  ;;  %v7151_v9 = vunpack.i.l.bf16 %v7150_v2  ;;  %v6153_v16 = vld [vmem:[%s8365_s2 + $0x58] sm:$0xff] }
 0x534   : > { %6137 = vmatmul.mubr.msk.f32.gmra.mrb[8].mxu1 %vm507_vm5, %v6135_v19  ;;  %v3452_v24 = vsel %vm1599_vm9, %v7152_v5, %v7141_v51  ;;  %v3450_v14 = vsel %vm1599_vm9, %v7151_v9, %v7146_v57 }
 0x535   : > { %6422 = vmatprep.mubr.msk.f32.mxu1 %vm507_vm5, %v6134_v3  ;;  %v3451_v3 = vsel %vm1599_vm9, %v7146_v57, %v7147_v52  ;;  %v7155_v21 = vpop.permute.xlu0 %7154  ;;  %v6652_v30 = vpack.c.bf16 %v3452_v24, %v3450_v14 }
 0x536   : > { %v6650_v10 = vpack.c.bf16 %v3453_v4, %v3451_v3  ;;  %v7157_v13 = vunpack.i.h.bf16 %v7155_v21  ;;  %v7156_v18 = vunpack.i.l.bf16 %v7155_v21 }
 0x538   : > { %6423 = vmatmul.mubr.msk.f32.vlgmr.msra.gmra.mrb[10].mxu1 %vm507_vm5, %v6135_v19  ;;  %v7160_v19 = vpop.permute.xlu1 %7159 }
 0x539   : > { %6629 = vmatpush1.bf16.msra.mxu1 %v6628_v32  ;;  %2963 = vmatprep.mubr.f32.mxu1 %v7324_v0  ;;  %v7162_v20 = vunpack.i.h.bf16 %v7160_v19  ;;  %v7161_v29 = vunpack.i.l.bf16 %v7160_v19  ;;  %v6654_v32 = vpack.c.bf16 %v7142_v63, %v7147_v52  ;;  %v7175_v38 = vpop.permute.xlu0 %7174  ;;  %v6171_v63 = vld [vmem:[%s8365_s2 + $0x88] sm:$0xff] }
 0x53a   : > { %6631 = vmatprep.subr.bf16.mxu1 %v6630_v33  ;;  %v7177_v26 = vunpack.i.h.bf16 %v7175_v38  ;;  %v7176_v15 = vunpack.i.l.bf16 %v7175_v38 }
 0x53b   : > { %v3640_v41 = vsel %vm1789_vm10, %v7161_v29, %v7162_v20 }
 0x53c   : > { %6142 = vmatmul.mubr.msk.f32.vlgmr.msra.gmra.mrb[6].mxu1 %vm507_vm5, %v6140_v39 }
 0x53d   : > { %6633 = vmatpush3.bf16.msra.mxu1 %v6630_v33  ;;  %2969 = vmatprep.mubr.f32.mxu1 %v7324_v0  ;;  %v7165_v33 = vpop.permute.xlu1 %7164 }
 0x53e   : > { %6635 = vmatprep.subr.bf16.mxu1 %v6634_v48  ;;  %v7167_v42 = vunpack.i.h.bf16 %v7165_v33  ;;  %v7166_v45 = vunpack.i.l.bf16 %v7165_v33  ;;  %v6159_v48 = vld [vmem:[%s8365_s2 + $0x68] sm:$0xff] }
 0x540   : > { %6143 = vmatmul.mubr.msk.f32.gmra.mrb[8].mxu1 %vm507_vm5, %v6141_v43  ;;  %v3639_v40 = vsel %vm1789_vm10, %v7166_v45, %v7161_v29  ;;  %v3641_v11 = vsel %vm1789_vm10, %v7167_v42, %v7156_v18 }
 0x541   : > { %6429 = vmatprep.mubr.msk.f32.mxu1 %vm507_vm5, %v6140_v39  ;;  %v3642_v39 = vsel %vm1789_vm10, %v7156_v18, %v7157_v13  ;;  %v6660_v31 = vpack.c.bf16 %v3641_v11, %v3639_v40 }
 0x542   : > { %v6658_v46 = vpack.c.bf16 %v3642_v39, %v3640_v41 }
 0x544   : > { %6430 = vmatmul.mubr.msk.f32.vlgmr.msra.gmra.mrb[10].mxu1 %vm507_vm5, %v6141_v43  ;;  %v7170_v43 = vpop.permute.xlu1 %7169 }
 0x545   : > { %6637 = vmatpush1.bf16.msra.mxu1 %v6636_v37  ;;  %3152 = vmatprep.mubr.f32.mxu1 %v7324_v0  ;;  %v7172_v35 = vunpack.i.h.bf16 %v7170_v43  ;;  %v7171_v36 = vunpack.i.l.bf16 %v7170_v43  ;;  %v6662_v37 = vpack.c.bf16 %v7157_v13, %v7162_v20 }
 0x546   : > { %6639 = vmatprep.subr.bf16.mxu1 %v6638_v47 }
 0x547   : > { %v3831_v44 = vsel %vm8371_vm11, %v7171_v36, %v7172_v35  ;;  %v6670_v54 = vpack.c.bf16 %v7172_v35, %v7177_v26 }
 0x548   : > { %6148 = vmatmul.mubr.msk.f32.vlgmr.msra.gmra.mrb[6].mxu1 %vm507_vm5, %v6146_v22 }
 0x549   : > { %6641 = vmatpush3.bf16.msra.mxu1 %v6638_v47  ;;  %3158 = vmatprep.mubr.f32.mxu1 %v7324_v0  ;;  %v7180_v47 = vpop.permute.xlu0 %7179 }
 0x54a   : > { %6643 = vmatprep.subr.bf16.mxu1 %v6642_v55  ;;  %v7182_v50 = vunpack.i.h.bf16 %v7180_v47  ;;  %v7181_v23 = vunpack.i.l.bf16 %v7180_v47  ;;  %v6165_v55 = vld [vmem:[%s8365_s2 + $0x78] sm:$0xff] }
 0x54c   : > { %6149 = vmatmul.mubr.msk.f32.gmra.mrb[8].mxu1 %vm507_vm5, %v6147_v56  ;;  %v3828_v58 = vsel %vm8371_vm11, %v7181_v23, %v7176_v15 }
 0x54d   : > { %6436 = vmatprep.mubr.msk.f32.mxu1 %vm507_vm5, %v6146_v22  ;;  %v3829_v22 = vsel %vm8371_vm11, %v7176_v15, %v7177_v26 }
 0x54e   : > { %v6666_v53 = vpack.c.bf16 %v3831_v44, %v3829_v22 }
 0x550   : > { %6437 = vmatmul.mubr.msk.f32.vlgmr.msra.gmra.mrb[10].mxu1 %vm507_vm5, %v6147_v56  ;;  %v3830_v56 = vsel %vm8371_vm11, %v7182_v50, %v7171_v36 }
 0x551   : > { %6645 = vmatpush1.bf16.msra.mxu1 %v6644_v60  ;;  %3341 = vmatprep.mubr.f32.mxu1 %v7324_v0  ;;  %v6668_v61 = vpack.c.bf16 %v3830_v56, %v3828_v58 }
 0x552   : > { %6647 = vmatprep.subr.bf16.mxu1 %v6646_v59 }
 0x554   : > { %6154 = vmatmul.mubr.msk.f32.vlgmr.msra.gmra.mrb[6].mxu1 %vm507_vm5, %v6152_v1 }
 0x555   : > { %6649 = vmatpush3.bf16.msra.mxu1 %v6646_v59  ;;  %3347 = vmatprep.mubr.f32.mxu1 %v7324_v0 }
 0x556   : > { %6651 = vmatprep.subr.bf16.mxu1 %v6650_v10 }
 0x558   : > { %6155 = vmatmul.mubr.msk.f32.gmra.mrb[8].mxu1 %vm507_vm5, %v6153_v16 }
 0x559   : > { %6443 = vmatprep.mubr.msk.f32.mxu1 %vm507_vm5, %v6152_v1 }
 0x55c   : > { %6444 = vmatmul.mubr.msk.f32.vlgmr.msra.gmra.mrb[10].mxu1 %vm507_vm5, %v6153_v16 }
 0x55d   : > { %6653 = vmatpush1.bf16.msra.mxu1 %v6652_v30  ;;  %3530 = vmatprep.mubr.f32.mxu1 %v7324_v0 }
 0x55e   : > { %6655 = vmatprep.subr.bf16.mxu1 %v6654_v32 }
 0x560   : > { %6160 = vmatmul.mubr.msk.f32.vlgmr.msra.gmra.mrb[6].mxu1 %vm507_vm5, %v6158_v34 }
 0x561   : > { %6657 = vmatpush3.bf16.msra.mxu1 %v6654_v32  ;;  %3536 = vmatprep.mubr.f32.mxu1 %v7324_v0 }
 0x562   : > { %6659 = vmatprep.subr.bf16.mxu1 %v6658_v46 }
 0x564   : > { %6161 = vmatmul.mubr.msk.f32.gmra.mrb[8].mxu1 %vm507_vm5, %v6159_v48 }
 0x565   : > { %6450 = vmatprep.mubr.msk.f32.mxu1 %vm507_vm5, %v6158_v34 }
 0x568   : > { %6451 = vmatmul.mubr.msk.f32.vlgmr.msra.gmra.mrb[10].mxu1 %vm507_vm5, %v6159_v48  ;;  %v7352_v48 = vmov 2  }
 0x569   : > { %6661 = vmatpush1.bf16.msra.mxu1 %v6660_v31  ;;  %3719 = vmatprep.mubr.f32.mxu1 %v7324_v0 }
 0x56a   : > { %6663 = vmatprep.subr.bf16.mxu1 %v6662_v37  ;;  %7184 = vset.pattern.permute.xlu0 %v7352_v48 }
 0x56b   : > { %7183 = vset.pattern.permute.xlu1 %v7352_v48 }
 0x56c   : > { %6166 = vmatmul.mubr.msk.f32.vlgmr.msra.gmra.mrb[6].mxu1 %vm507_vm5, %v6164_v17 }
 0x56d   : > { %6665 = vmatpush3.bf16.msra.mxu1 %v6662_v37  ;;  %3725 = vmatprep.mubr.f32.mxu1 %v7324_v0 }
 0x56e   : > { %6667 = vmatprep.subr.bf16.mxu1 %v6666_v53 }
 0x570   : > { %6167 = vmatmul.mubr.msk.f32.gmra.mrb[8].mxu1 %vm507_vm5, %v6165_v55 }
 0x571   : > { %6457 = vmatprep.mubr.msk.f32.mxu1 %vm507_vm5, %v6164_v17 }
 0x574   : > { %6458 = vmatmul.mubr.msk.f32.vlgmr.msra.gmra.mrb[10].mxu1 %vm507_vm5, %v6165_v55 }
 0x575   : > { %6669 = vmatpush1.bf16.msra.mxu1 %v6668_v61  ;;  %3908 = vmatprep.mubr.f32.mxu1 %v7324_v0  ;;  %v7353_v61 = vmov 3  }
 0x576   : > { %6671 = vmatprep.subr.bf16.mxu1 %v6670_v54 }
 0x578   : > { %6172 = vmatmul.mubr.msk.f32.vlgmr.msra.gmra.mrb[6].mxu1 %vm507_vm5, %v6170_v62 }
 0x579   : > { %6673 = vmatpush3.bf16.msra.mxu1 %v6670_v54  ;;  %3914 = vmatprep.mubr.f32.mxu1 %v7324_v0 }
 0x57c   : > { %6173 = vmatmul.mubr.msk.f32.gmra.mrb[8].mxu1 %vm507_vm5, %v6171_v63 }
 0x57d   : > { %6464 = vmatprep.mubr.msk.f32.mxu1 %vm507_vm5, %v6170_v62 }
 0x580   : > { %6465 = vmatmul.mubr.msk.f32.vlgmr.msra.gmra.mrb[10].mxu1 %vm507_vm5, %v6171_v63 }
 0x64b   : > { %v8029_v51 = vpop.f32.mrb[6].mxu1 }
 0x64c   : > { %v4002_v52 = vmul.f32 %v8029_v51, %v7767_v25  ;;  %v8033_v57 = vpop.f32.mrb[7].mxu1 }
 0x64d   : > { %v4003_v60 = vmul.f32 %v8033_v57, %v7769_v27 }
 0x64e   : > { %v4020_v59 = vmul.f32 %v4002_v52, %v8029_v51 }
 0x64f   : > { %v4021_v2 = vmul.f32 %v4003_v60, %v8033_v57  ;;  %v8039_v1 = vpop.f32.mrb[8].mxu1  ;;  %v4008_v3 = vadd.f32 %v4003_v60, %v4002_v52 }
 0x650   : > { %v4005_v4 = vmul.f32 %v8039_v1, %v7767_v25  ;;  %v8043_v5 = vpop.f32.mrb[9].mxu1 }
 0x651   : > { %v4026_v9 = vadd.f32 %v4021_v2, %v4020_v59  ;;  %v4006_v10 = vmul.f32 %v8043_v5, %v7769_v27 }
 0x652   : > { %v4023_v16 = vmul.f32 %v4005_v4, %v8039_v1 }
 0x653   : > { %v4024_v19 = vmul.f32 %v4006_v10, %v8043_v5  ;;  %v8049_v21 = vpop.f32.mrb[10].mxu1  ;;  %v4013_v24 = vadd.f32 %v4006_v10, %v4005_v4 }
 0x654   : > { %v4007_v14 = vmul.f32 %v8049_v21, %v7771_v28  ;;  %v3987_v13 = vpop.f32.mrb[11].mxu1 }
 0x655   : > { %v4031_v18 = vadd.f32 %v4024_v19, %v4023_v16  ;;  %v4004_v20 = vmul.f32 %v3987_v13, %v7771_v28 }
 0x656   : > { %v4025_v29 = vmul.f32 %v8049_v21, %v4007_v14  ;;  %v4014_v30 = vsel %vm2177_vm12, %v4007_v14, 0.0 }
 0x657   : > { %v4022_v32 = vmul.f32 %v4004_v20, %v3987_v13  ;;  %v4015_v33 = vadd.f32 %v4014_v30, %v4013_v24  ;;  %v4009_v34 = vsel %vm2177_vm12, %v4004_v20, 0.0 }
 0x658   : > { %v4010_v39 = vadd.f32 %v4009_v34, %v4008_v3  ;;  %v4032_v41 = vsel %vm2177_vm12, %v4025_v29, 0.0 }
 0x659   : > { %v4027_v42 = vsel %vm2177_vm12, %v4022_v32, 0.0  ;;  %4016 = vadd.xlane.f32.xlu0 %v4015_v33  ;;  %v4033_v45 = vadd.f32 %v4032_v41, %v4031_v18 }
 0x65a   : > { %4011 = vadd.xlane.f32.xlu1 %v4010_v39  ;;  %v4028_v46 = vadd.f32 %v4027_v42, %v4026_v9 }
 0x65d   : > { %4029 = vadd.xlane.f32.xlu0 %v4028_v46 }
 0x65e   : > { %4034 = vadd.xlane.f32.xlu1 %v4033_v45 }
 0x6e6   : > { %v4017_v43 = vpop.xlane.xlu0 %4016 }
 0x6e7   : > { %v4012_v38 = vpop.xlane.xlu1 %4011  ;;  %v4019_v40 = vmul.f32 0.00390625, %v4017_v43 }
 0x6e8   : > { %v4018_v11 = vmul.f32 0.00390625, %v4012_v38 }
 0x6e9   : > { %v4039_v31 = vmul.f32 %v4019_v40, %v4019_v40 }
 0x6ea   : > { %v4038_v35 = vmul.f32 %v4018_v11, %v4018_v11  ;;  %v4030_v36 = vpop.xlane.xlu0 %4029 }
 0x6eb   : > { %v4036_v26 = vmul.f32 0.00390625, %v4030_v36  ;;  %v4035_v15 = vpop.xlane.xlu1 %4034 }
 0x6ec   : > { %v4037_v37 = vmul.f32 0.00390625, %v4035_v15 }
 0x6ed   : > { %v4040_v47 = vsub.f32 %v4036_v26, %v4038_v35 }
 0x6ee   : > { %v4041_v17 = vsub.f32 %v4037_v37, %v4039_v31 }
 0x6ef   : > { %v4042_v22 = vadd.f32 1e-05, %v4040_v47 }
 0x6f0   : > { %v4043_v44 = vadd.f32 1e-05, %v4041_v17 }
 0x6f1   : > { %7312 = vrsqrt.f32 %v4042_v22 }
 0x6f2   : > { %7314 = vrsqrt.f32 %v4043_v44 }
 0x6fb   : > { %v7313_v50 = vpop.eup %7312 }
 0x6fc   : > { %v7315_v23 = vpop.eup %7314  ;;  %v4046_v53 = vmul.f32 %v7313_v50, %v7807_v7 }
 0x6fd   : > { %v4047_v55 = vmul.f32 %v7315_v23, %v7813_v12 }
 0x6fe   : > { %v4048_v56 = vmul.f32 %v4046_v53, %v4018_v11 }
 0x6ff   : > { %v4049_v58 = vmul.f32 %v4047_v55, %v4019_v40 }
 0x700   : > { %4052 = vrot.lane.b32.xlu0 %v4048_v56, %s7351_s21 }
 0x701   : > { %4054 = vrot.lane.b32.xlu1 %v4049_v58, %s7351_s21 }
 0x704   : > { %4067 = vperm.xlu0 %7184, %v4047_v55   ;;  %v5829_v55 = vld [vmem:[%s8367_s4 + $0x8] sm:$0xff] }
 0x705   : > { %4062 = vperm.xlu1 %7183, %v4046_v53   ;;  %v5828_v53 = vld [vmem:[%s8367_s4] sm:$0xff] }
 0x708   : > { %7306 = vset.pattern.permute.xlu0 %v7349_v49 }
 0x709   : > { %7185 = vset.pattern.permute.xlu1 %v7353_v61 }
 0x772   : > { %v4053_v54 = vpop.permute.xlu0 %4052 }
 0x773   : > { %v4058_v62 = vsub.f32 %v7804_v6, %v4053_v54  ;;  %v4055_v63 = vpop.permute.xlu1 %4054 }
 0x774   : > { %v4059_v7 = vsub.f32 %v7809_v8, %v4055_v63 }
 0x775   : > { %4078 = vperm.xlu1 %7185, %v4058_v62  }
 0x779   : > { %4083 = vperm.xlu1 %7185, %v4059_v7  }
 0x77d   : > { %7307 = vset.pattern.permute.xlu1 %v7349_v49 }
 0x783   : > { %v4068_v59 = vpop.permute.xlu0 %4067 }
 0x784   : > { %v4063_v12 = vpop.permute.xlu1 %4062  ;;  %v4073_v6 = vmul.f32 %v4068_v59, %v8039_v1  ;;  %v4074_v16 = vmul.f32 %v4068_v59, %v8043_v5  ;;  %v4075_v24 = vmul.f32 %v8049_v21, %v4068_v59 }
 0x785   : > { %v4070_v52 = vmul.f32 %v4063_v12, %v8029_v51  ;;  %v4072_v60 = vmul.f32 %v4063_v12, %v3987_v13  ;;  %v4071_v2 = vmul.f32 %v4063_v12, %v8033_v57 }
 0x7f4   : > { %v4079_v3 = vpop.permute.xlu1 %4078 }
 0x7f5   : > { %v4086_v4 = vadd.f32 %v4079_v3, %v4070_v52  ;;  %v4088_v9 = vadd.f32 %v4079_v3, %v4072_v60  ;;  %v4087_v10 = vadd.f32 %v4079_v3, %v4071_v2 }
 0x7f7   : > { %vm4092_vm12 = vcmp.gt.f32.partialorder %v4086_v4, 0.0  ;;  %v4098_v8 = vmul.f32 0.2, %v4086_v4  ;;  %vm4094_vm0 = vcmp.gt.f32.partialorder %v4088_v9, 0.0  ;;  %v4100_v19 = vmul.f32 0.2, %v4088_v9 }
 0x7f8   : > { %v4084_v49 = vpop.permute.xlu1 %4083  ;;  %v4099_v18 = vmul.f32 0.2, %v4087_v10  ;;  %vm4093_vm2 = vcmp.gt.f32.partialorder %v4087_v10, 0.0 }
 0x7f9   : > { %v4104_v51 = vsel %vm4092_vm12, %v4086_v4, %v4098_v8  ;;  %v4089_v14 = vadd.f32 %v4084_v49, %v4073_v6  ;;  %v4090_v13 = vadd.f32 %v4084_v49, %v4074_v16  ;;  %v4106_v20 = vsel %vm4094_vm0, %v4088_v9, %v4100_v19  ;;  %v6176_v6 = vld [vmem:[%s8366_s3 + $0x10] sm:$0xff]  ;;  %v6177_v16 = vld [vmem:[%s8366_s3 + $0x18] sm:$0xff] }
 0x7fa   : > { %v4110_v57 = vmul.f32 %v4104_v51, %v7767_v25  ;;  %v4091_v29 = vadd.f32 %v4084_v49, %v4075_v24  ;;  %v4112_v32 = vmul.f32 %v4106_v20, %v7771_v28  ;;  %v4105_v33 = vsel %vm4093_vm2, %v4087_v10, %v4099_v18  ;;  %v4156_v18 = vld [vmem:[%s8366_s3] sm:$0xff] }
 0x7fb   : > { %vm4095_vm1 = vcmp.gt.f32.partialorder %v4089_v14, 0.0  ;;  %v4101_v30 = vmul.f32 0.2, %v4089_v14  ;;  %vm4096_vm11 = vcmp.gt.f32.partialorder %v4090_v13, 0.0  ;;  %v4102_v1 = vmul.f32 0.2, %v4090_v13 }
 0x7fc   : > { %4122 = vrot.lane.b32.xlu0 %v4110_v57, %s7327_s9  ;;  %v4103_v34 = vmul.f32 0.2, %v4091_v29  ;;  %vm4097_vm12 = vcmp.gt.f32.partialorder %v4091_v29, 0.0  ;;  %v4111_v42 = vmul.f32 %v4105_v33, %v7769_v27  ;;  %vm5945_vm0 = vcmask 818176  }
 0x7fd   : > { %v4107_v5 = vsel %vm4095_vm1, %v4089_v14, %v4101_v30  ;;  %v4108_v39 = vsel %vm4096_vm11, %v4090_v13, %v4102_v1  ;;  %vm5967_vm11 = vcmask 654336  }
 0x7fe   : > { %v4113_v21 = vmul.f32 %v4107_v5, %v7767_v25  ;;  %v4114_v41 = vmul.f32 %v4108_v39, %v7769_v27  ;;  %v4109_v45 = vsel %vm4097_vm12, %v4091_v29, %v4103_v34  ;;  %v4157_v5 = vld [vmem:[%s8366_s3 + $0x8] sm:$0xff] }
 0x7ff   : > { %v4115_v46 = vmul.f32 %v4109_v45, %v7771_v28 }
 0x800   : > { %4126 = vrot.lane.b32.xlu0 %v4112_v32, %s7327_s9  ;;  %4128 = vrot.lane.b32.xlu1 %v4113_v21, %s7327_s9 }
 0x804   : > { %4130 = vrot.lane.b32.xlu0 %v4114_v41, %s7327_s9  ;;  %4124 = vrot.lane.b32.xlu1 %v4111_v42, %s7327_s9 }
 0x808   : > { %4132 = vrot.lane.b32.xlu1 %v4115_v46, %s7327_s9  ;;  %s8328_s9 = scalar_lea.vmem %s8370_s7, %s6230_s26 }
 0x86e   : > { %v4123_v25 = vpop.permute.xlu0 %4122 }
 0x86f   : > { %4144 = vst.msk [vmem:[#allocation2] sm:$0xff] %vm2316_vm13, %v4123_v25 }
 0x872   : > { %v4127_v48 = vpop.permute.xlu0 %4126  ;;  %v4129_v43 = vpop.permute.xlu1 %4128 }
 0x873   : > { %4147 = vst.msk [vmem:[#allocation2 + $0x18] sm:$0xff] %vm2316_vm13, %v4129_v43  ;;  %vm5970_vm13 = vcmask 785408  }
 0x876   : > { %v4131_v38 = vpop.permute.xlu0 %4130  ;;  %v4125_v40 = vpop.permute.xlu1 %4124  ;;  %v8102_v31 = vld [vmem:[#allocation2] sm:$0xff] }
 0x877   : > { %v8087_v27 = vsel %vm2305_vm14, %v4129_v43, %v4131_v38  ;;  %v8090_v11 = vsel %vm2305_vm14, %v4123_v25, %v4125_v40  ;;  %v4135_v35 = vsel %vm2305_vm14, %v4125_v40, %v4127_v48  ;;  %v6186_v43 = vld [vmem:[%s8366_s3 + $0x20] sm:$0xff] }
 0x878   : > { %4148 = vst [vmem:[#allocation2 + $0x20] sm:$0xff] %v8087_v27  ;;  %4145 = vst [vmem:[#allocation2 + $0x8] sm:$0xff] %v8090_v11  ;;  %v6682_v28 = vpack.c.bf16 %v8087_v27, %v8090_v11 }
 0x879   : > { %4146 = vst.msk [vmem:[#allocation2 + $0x10] sm:$0xff] %vm2319_vm15, %v4135_v35 }
 0x87a   : > { %v4133_v36 = vpop.permute.xlu1 %4132  ;;  %v8098_v26 = vld [vmem:[#allocation2 + $0x18] sm:$0xff] }
 0x87b   : > { %v4137_v15 = vsel %vm2305_vm14, %v4131_v38, %v4133_v36  ;;  %v6684_v37 = vpack.c.bf16 %v8098_v26, %v8102_v31  ;;  %v7196_v44 = vpack.i.bf16 %v8098_v26, %v8102_v31  ;;  %vm5894_vm14 = vcmask 932864  }
 0x87c   : > { %4149 = vst.msk [vmem:[#allocation2 + $0x28] sm:$0xff] %vm2319_vm15, %v4137_v15  ;;  %vm5973_vm15 = vcmask 916480  }
 0x880   : > { %v4152_v47 = vld [vmem:[#allocation2 + $0x10] sm:$0xff] }
 0x881   : > { %v7191_v17 = vpack.i.bf16 %v4152_v47, %v8090_v11 }
 0x883   : > { %7192 = vrot.lane.b32.xlu0 %v7191_v17, %s7341_s23  ;;  %v4155_v22 = vld [vmem:[#allocation2 + $0x28] sm:$0xff] }
 0x884   : > { %v7186_v50 = vpack.i.bf16 %v4155_v22, %v8087_v27  ;;  %v8111_v23 = vpack.c.bf16 %v4155_v22, %v4152_v47 }
 0x886   : > { %7187 = vrot.lane.b32.xlu1 %v7186_v50, %s7341_s23 }
 0x887   : > { %7197 = vrot.lane.b32.xlu0 %v7196_v44, %s7341_s23 }
 0x88a   : > { %7207 = vrot.lane.b32.xlu1 %v7191_v17, %s7342_s27 }
 0x88b   : > { %7202 = vrot.lane.b32.xlu0 %v7186_v50, %s7342_s27 }
 0x88e   : > { %7212 = vrot.lane.b32.xlu1 %v7196_v44, %s7342_s27 }
 0x88f   : > { %7222 = vrot.lane.b32.xlu0 %v7191_v17, %s7343_s28 }
 0x892   : > { %7217 = vrot.lane.b32.xlu1 %v7186_v50, %s7343_s28 }
 0x893   : > { %7227 = vrot.lane.b32.xlu0 %v7196_v44, %s7343_s28 }
 0x896   : > { %7237 = vrot.lane.b32.xlu1 %v7191_v17, %s7344_s29 }
 0x897   : > { %7232 = vrot.lane.b32.xlu0 %v7186_v50, %s7344_s29 }
 0x89a   : > { %7242 = vrot.lane.b32.xlu1 %v7196_v44, %s7344_s29 }
 0x89b   : > { %7252 = vrot.lane.b32.xlu0 %v7191_v17, %s7345_s30 }
 0x89e   : > { %7247 = vrot.lane.b32.xlu1 %v7186_v50, %s7345_s30 }
 0x89f   : > { %7257 = vrot.lane.b32.xlu0 %v7196_v44, %s7345_s30 }
 0x8a2   : > { %7267 = vrot.lane.b32.xlu1 %v7191_v17, %s7346_s8 }
 0x8a3   : > { %7262 = vrot.lane.b32.xlu0 %v7186_v50, %s7346_s8 }
 0x8a6   : > { %7272 = vrot.lane.b32.xlu1 %v7196_v44, %s7346_s8 }
 0x8a7   : > { %7282 = vrot.lane.b32.xlu0 %v7191_v17, %s7347_s10 }
 0x8aa   : > { %7277 = vrot.lane.b32.xlu1 %v7186_v50, %s7347_s10 }
 0x8ab   : > { %7287 = vrot.lane.b32.xlu0 %v7196_v44, %s7347_s10 }
 0x8ae   : > { %7297 = vrot.lane.b32.xlu1 %v7191_v17, %s7348_s11 }
 0x8af   : > { %7292 = vrot.lane.b32.xlu0 %v7186_v50, %s7348_s11 }
 0x8b2   : > { %7302 = vrot.lane.b32.xlu1 %v7196_v44, %s7348_s11  ;;  %s7354_s11 = smov 114  }
 0x8b3   : > { %5832 = vperm.xlu0 %7306, %v5828_v53   ;;  %v6192_v53 = vld [vmem:[%s8366_s3 + $0x30] sm:$0xff] }
 0x8b6   : > { %5837 = vperm.xlu1 %7307, %v5829_v55  }
 0x8f5   : > { %v7193_v56 = vpop.permute.xlu0 %7192 }
 0x8f6   : > { %v7195_v58 = vunpack.i.h.bf16 %v7193_v56  ;;  %v7194_v61 = vunpack.i.l.bf16 %v7193_v56 }
 0x8f8   : > { %v7188_v62 = vpop.permute.xlu1 %7187  ;;  %v4180_v2 = vsel %vm496_vm3, %v7194_v61, %v7195_v58 }
 0x8f9   : > { %v7198_v54 = vpop.permute.xlu0 %7197  ;;  %v7190_v12 = vunpack.i.h.bf16 %v7188_v62  ;;  %v7189_v52 = vunpack.i.l.bf16 %v7188_v62  ;;  %v6193_v62 = vld [vmem:[%s8366_s3 + $0x38] sm:$0xff] }
 0x8fa   : > { %v7200_v63 = vunpack.i.h.bf16 %v7198_v54  ;;  %v7199_v7 = vunpack.i.l.bf16 %v7198_v54 }
 0x8fb   : > { %v4182_v3 = vsel %vm496_vm3, %v7189_v52, %v7190_v12  ;;  %v6678_v10 = vpack.c.bf16 %v7190_v12, %v7195_v58 }
 0x8fc   : > { %v4179_v60 = vsel %vm496_vm3, %v7199_v7, %v7194_v61  ;;  %v4181_v59 = vsel %vm496_vm3, %v7200_v63, %v7189_v52  ;;  %v6674_v9 = vpack.c.bf16 %v4182_v3, %v4180_v2  ;;  %v7208_v19 = vpop.permute.xlu1 %7207  ;;  %vm8372_vm3 = vcmask 736256  }
 0x8fd   : > { %v6676_v4 = vpack.c.bf16 %v4181_v59, %v4179_v60  ;;  %v7203_v8 = vpop.permute.xlu0 %7202  ;;  %v7210_v51 = vunpack.i.h.bf16 %v7208_v19  ;;  %v7209_v14 = vunpack.i.l.bf16 %v7208_v19 }
 0x8fe   : > { %6675 = vmatprep.subr.bf16.mxu0 %v6674_v9  ;;  %v7205_v49 = vunpack.i.h.bf16 %v7203_v8  ;;  %v7204_v24 = vunpack.i.l.bf16 %v7203_v8 }
 0x8ff   : > { %6677 = vmatpush1.bf16.msra.mxu0 %v6676_v4  ;;  %v4521_v57 = vsel %vm839_vm4, %v7209_v14, %v7210_v51 }
 0x900   : > { %6679 = vmatprep.subr.bf16.mxu0 %v6678_v10  ;;  %v7213_v13 = vpop.permute.xlu1 %7212  ;;  %v4523_v20 = vsel %vm839_vm4, %v7204_v24, %v7205_v49  ;;  %v6694_v25 = vpack.c.bf16 %v7205_v49, %v7210_v51  ;;  %v6199_v51 = vld [vmem:[%s8366_s3 + $0x48] sm:$0xff] }
 0x901   : > { %v7215_v29 = vunpack.i.h.bf16 %v7213_v13  ;;  %v7214_v30 = vunpack.i.l.bf16 %v7213_v13  ;;  %v6690_v1 = vpack.c.bf16 %v4523_v20, %v4521_v57  ;;  %v7223_v32 = vpop.permute.xlu0 %7222 }
 0x902   : > { %6178 = vmatmul.mubr.msk.f32.vlgmr.msra.gmra.mrb[4].mxu0 %vm507_vm5, %v6176_v6  ;;  %v7225_v42 = vunpack.i.h.bf16 %v7223_v32  ;;  %v7224_v45 = vunpack.i.l.bf16 %v7223_v32 }
 0x903   : > { %6681 = vmatpush3.bf16.msra.mxu0 %v6678_v10  ;;  %4265 = vmatprep.mubr.f32.mxu0 %v7324_v0  ;;  %v4522_v33 = vsel %vm839_vm4, %v7215_v29, %v7204_v24  ;;  %v4520_v34 = vsel %vm839_vm4, %v7214_v30, %v7209_v14  ;;  %vm8373_vm4 = vmmov %vm8372_vm3 }
 0x904   : > { %6683 = vmatprep.subr.bf16.mxu0 %v6682_v28  ;;  %v7218_v21 = vpop.permute.xlu1 %7217  ;;  %v6692_v46 = vpack.c.bf16 %v4522_v33, %v4520_v34  ;;  %v4710_v40 = vsel %vm1029_vm6, %v7224_v45, %v7225_v42  ;;  %v6187_v28 = vld [vmem:[%s8366_s3 + $0x28] sm:$0xff]  ;;  %v6204_v33 = vld [vmem:[%s8366_s3 + $0x50] sm:$0xff] }
 0x905   : > { %v7220_v39 = vunpack.i.h.bf16 %v7218_v21  ;;  %v7219_v41 = vunpack.i.l.bf16 %v7218_v21  ;;  %v7228_v48 = vpop.permute.xlu0 %7227 }
 0x906   : > { %6179 = vmatmul.mubr.msk.f32.gmra.mrb[6].mxu0 %vm507_vm5, %v6177_v16  ;;  %v7230_v27 = vunpack.i.h.bf16 %v7228_v48  ;;  %v7229_v11 = vunpack.i.l.bf16 %v7228_v48 }
 0x907   : > { %6471 = vmatprep.mubr.msk.f32.mxu0 %vm507_vm5, %v6176_v6  ;;  %v4712_v38 = vsel %vm1029_vm6, %v7219_v41, %v7220_v39  ;;  %v6702_v50 = vpack.c.bf16 %v7220_v39, %v7225_v42  ;;  %v6198_v6 = vld [vmem:[%s8366_s3 + $0x40] sm:$0xff] }
 0x908   : > { %v6698_v35 = vpack.c.bf16 %v4712_v38, %v4710_v40  ;;  %v7238_v26 = vpop.permute.xlu1 %7237  ;;  %v4709_v15 = vsel %vm1029_vm6, %v7229_v11, %v7224_v45  ;;  %v4711_v31 = vsel %vm1029_vm6, %v7230_v27, %v7219_v41  ;;  %vm8374_vm6 = vmmov %vm8372_vm3 }
 0x909   : > { %v7233_v36 = vpop.permute.xlu0 %7232  ;;  %v7240_v17 = vunpack.i.h.bf16 %v7238_v26  ;;  %v7239_v22 = vunpack.i.l.bf16 %v7238_v26  ;;  %v6700_v44 = vpack.c.bf16 %v4711_v31, %v4709_v15  ;;  %v6210_v15 = vld [vmem:[%s8366_s3 + $0x60] sm:$0xff] }
 0x90a   : > { %6472 = vmatmul.mubr.msk.f32.vlgmr.msra.gmra.mrb[8].mxu0 %vm507_vm5, %v6177_v16  ;;  %v7234_v47 = vunpack.i.l.bf16 %v7233_v36 }
 0x90b   : > { %6685 = vmatpush1.bf16.msra.mxu0 %v6684_v37  ;;  %4417 = vmatprep.mubr.f32.mxu0 %v7324_v0  ;;  %v7235_v37 = vunpack.i.h.bf16 %v7233_v36  ;;  %v4899_v55 = vsel %vm1219_vm7, %v7239_v22, %v7240_v17 }
 0x90c   : > { %6687 = vmatprep.subr.bf16.mxu0 %v8111_v23 }
 0x90d   : > { %v4901_v56 = vsel %vm1219_vm7, %v7234_v47, %v7235_v37  ;;  %v7253_v63 = vpop.permute.xlu0 %7252  ;;  %v6710_v9 = vpack.c.bf16 %v7235_v37, %v7240_v17 }
 0x90e   : > { %6182 = vmatmul.mubr.msk.f32.vlgmr.msra.gmra.mrb[4].mxu0 %vm507_vm5, %v4156_v18  ;;  %v6706_v54 = vpack.c.bf16 %v4901_v56, %v4899_v55  ;;  %v7255_v2 = vunpack.i.h.bf16 %v7253_v63  ;;  %v7254_v3 = vunpack.i.l.bf16 %v7253_v63 }
 0x90f   : > { %6689 = vmatpush3.bf16.msra.mxu0 %v8111_v23  ;;  %4423 = vmatprep.mubr.f32.mxu0 %v7324_v0  ;;  %v7243_v23 = vpop.permute.xlu1 %7242 }
 0x910   : > { %6691 = vmatprep.subr.bf16.mxu0 %v6690_v1  ;;  %v7245_v58 = vunpack.i.h.bf16 %v7243_v23  ;;  %v7244_v61 = vunpack.i.l.bf16 %v7243_v23  ;;  %v5088_v8 = vsel %vm1409_vm8, %v7254_v3, %v7255_v2 }
 0x911   : > { %v7258_v10 = vpop.permute.xlu0 %7257 }
 0x912   : > { %6183 = vmatmul.mubr.msk.f32.gmra.mrb[6].mxu0 %vm507_vm5, %v4157_v5  ;;  %v4900_v12 = vsel %vm1219_vm7, %v7245_v58, %v7234_v47  ;;  %v4898_v52 = vsel %vm1219_vm7, %v7244_v61, %v7239_v22  ;;  %v7260_v19 = vunpack.i.h.bf16 %v7258_v10  ;;  %v7259_v49 = vunpack.i.l.bf16 %v7258_v10  ;;  %vm8375_vm7 = vmmov %vm8372_vm3 }
 0x913   : > { %6478 = vmatprep.mubr.msk.f32.mxu0 %vm507_vm5, %v4156_v18  ;;  %v7248_v7 = vpop.permute.xlu1 %7247  ;;  %v6708_v4 = vpack.c.bf16 %v4900_v12, %v4898_v52  ;;  %v6216_v12 = vld [vmem:[%s8366_s3 + $0x70] sm:$0xff] }
 0x914   : > { %v7250_v60 = vunpack.i.h.bf16 %v7248_v7  ;;  %v7249_v59 = vunpack.i.l.bf16 %v7248_v7  ;;  %v5087_v18 = vsel %vm1409_vm8, %v7259_v49, %v7254_v3 }
 0x915   : > { %v7263_v14 = vpop.permute.xlu0 %7262 }
 0x916   : > { %6479 = vmatmul.mubr.msk.f32.vlgmr.msra.gmra.mrb[8].mxu0 %vm507_vm5, %v4157_v5  ;;  %v5090_v16 = vsel %vm1409_vm8, %v7249_v59, %v7250_v60  ;;  %v5089_v57 = vsel %vm1409_vm8, %v7260_v19, %v7249_v59  ;;  %v7265_v20 = vunpack.i.h.bf16 %v7263_v14  ;;  %v7264_v29 = vunpack.i.l.bf16 %v7263_v14  ;;  %v6223_v19 = vld [vmem:[%s8366_s3 + $0x88] sm:$0xff] }
 0x917   : > { %6693 = vmatpush1.bf16.msra.mxu0 %v6692_v46  ;;  %4600 = vmatprep.mubr.f32.mxu0 %v7324_v0  ;;  %v6714_v24 = vpack.c.bf16 %v5090_v16, %v5088_v8  ;;  %v7268_v13 = vpop.permute.xlu1 %7267  ;;  %v6716_v5 = vpack.c.bf16 %v5089_v57, %v5087_v18  ;;  %v6718_v32 = vpack.c.bf16 %v7250_v60, %v7255_v2  ;;  %v6205_v46 = vld [vmem:[%s8366_s3 + $0x58] sm:$0xff]  ;;  %v6222_v8 = vld [vmem:[%s8366_s3 + $0x80] sm:$0xff]  ;;  %vm5958_vm8 = vcmask 261120  }
 0x918   : > { %6695 = vmatprep.subr.bf16.mxu0 %v6694_v25  ;;  %v7270_v30 = vunpack.i.h.bf16 %v7268_v13  ;;  %v7269_v1 = vunpack.i.l.bf16 %v7268_v13  ;;  %v5279_v39 = vsel %vm1599_vm9, %v7264_v29, %v7265_v20 }
 0x91a   : > { %6188 = vmatmul.mubr.msk.f32.vlgmr.msra.gmra.mrb[4].mxu0 %vm507_vm5, %v6186_v43  ;;  %v5277_v34 = vsel %vm1599_vm9, %v7269_v1, %v7270_v30  ;;  %v6726_v36 = vpack.c.bf16 %v7265_v20, %v7270_v30 }
 0x91b   : > { %6697 = vmatpush3.bf16.msra.mxu0 %v6694_v25  ;;  %4606 = vmatprep.mubr.f32.mxu0 %v7324_v0  ;;  %v7273_v21 = vpop.permute.xlu1 %7272  ;;  %v6722_v45 = vpack.c.bf16 %v5279_v39, %v5277_v34  ;;  %v7283_v25 = vpop.permute.xlu0 %7282 }
 0x91c   : > { %6699 = vmatprep.subr.bf16.mxu0 %v6698_v35  ;;  %v7275_v41 = vunpack.i.h.bf16 %v7273_v21  ;;  %v7274_v42 = vunpack.i.l.bf16 %v7273_v21  ;;  %v7285_v11 = vunpack.i.h.bf16 %v7283_v25  ;;  %v7284_v35 = vunpack.i.l.bf16 %v7283_v25 }
 0x91e   : > { %6189 = vmatmul.mubr.msk.f32.gmra.mrb[6].mxu0 %vm507_vm5, %v6187_v28  ;;  %v5276_v38 = vsel %vm1599_vm9, %v7274_v42, %v7269_v1  ;;  %v5466_v37 = vsel %vm1789_vm10, %v7284_v35, %v7285_v11 }
 0x91f   : > { %6485 = vmatprep.mubr.msk.f32.mxu0 %vm507_vm5, %v6186_v43  ;;  %v7278_v48 = vpop.permute.xlu1 %7277  ;;  %v5278_v43 = vsel %vm1599_vm9, %v7275_v41, %v7264_v29  ;;  %v7288_v26 = vpop.permute.xlu0 %7287  ;;  %vm5961_vm9 = vcmask 392192  }
 0x920   : > { %v7280_v40 = vunpack.i.h.bf16 %v7278_v48  ;;  %v7279_v27 = vunpack.i.l.bf16 %v7278_v48  ;;  %v7290_v47 = vunpack.i.h.bf16 %v7288_v26  ;;  %v7289_v17 = vunpack.i.l.bf16 %v7288_v26 }
 0x922   : > { %6486 = vmatmul.mubr.msk.f32.vlgmr.msra.gmra.mrb[8].mxu0 %vm507_vm5, %v6187_v28  ;;  %v6724_v28 = vpack.c.bf16 %v5278_v43, %v5276_v38  ;;  %v5468_v31 = vsel %vm1789_vm10, %v7279_v27, %v7280_v40  ;;  %v5467_v55 = vsel %vm1789_vm10, %v7290_v47, %v7279_v27  ;;  %v6734_v63 = vpack.c.bf16 %v7280_v40, %v7285_v11 }
 0x923   : > { %6701 = vmatpush1.bf16.msra.mxu0 %v6700_v44  ;;  %4789 = vmatprep.mubr.f32.mxu0 %v7324_v0  ;;  %v6730_v22 = vpack.c.bf16 %v5468_v31, %v5466_v37  ;;  %v6211_v44 = vld [vmem:[%s8366_s3 + $0x68] sm:$0xff]  ;;  %v7298_v23 = vpop.permute.xlu1 %7297 }
 0x924   : > { %6703 = vmatprep.subr.bf16.mxu0 %v6702_v50  ;;  %v7300_v61 = vunpack.i.h.bf16 %v7298_v23 }
 0x926   : > { %6194 = vmatmul.mubr.msk.f32.vlgmr.msra.gmra.mrb[4].mxu0 %vm507_vm5, %v6192_v53 }
 0x927   : > { %6705 = vmatpush3.bf16.msra.mxu0 %v6702_v50  ;;  %4795 = vmatprep.mubr.f32.mxu0 %v7324_v0  ;;  %v7293_v50 = vpop.permute.xlu0 %7292  ;;  %v7303_v7 = vpop.permute.xlu1 %7302 }
 0x928   : > { %6707 = vmatprep.subr.bf16.mxu0 %v6706_v54  ;;  %v7295_v56 = vunpack.i.h.bf16 %v7293_v50  ;;  %v7294_v58 = vunpack.i.l.bf16 %v7293_v50  ;;  %v7299_v54 = vunpack.i.l.bf16 %v7298_v23  ;;  %v7305_v59 = vunpack.i.h.bf16 %v7303_v7 }
 0x929   : > { %v7304_v2 = vunpack.i.l.bf16 %v7303_v7 }
 0x92a   : > { %6195 = vmatmul.mubr.msk.f32.gmra.mrb[6].mxu0 %vm507_vm5, %v6193_v62  ;;  %v5655_v52 = vsel %vm8372_vm3, %v7299_v54, %v7300_v61  ;;  %v5657_v60 = vsel %vm8373_vm4, %v7294_v58, %v7295_v56  ;;  %v6742_v16 = vpack.c.bf16 %v7295_v56, %v7300_v61 }
 0x92b   : > { %6492 = vmatprep.mubr.msk.f32.mxu0 %vm507_vm5, %v6192_v53  ;;  %v5465_v53 = vsel %vm1789_vm10, %v7289_v17, %v7284_v35  ;;  %v6738_v3 = vpack.c.bf16 %v5657_v60, %v5655_v52  ;;  %v5654_v10 = vsel %vm8375_vm7, %v7304_v2, %v7299_v54  ;;  %vm5964_vm10 = vcmask 523264  }
 0x92e   : > { %6493 = vmatmul.mubr.msk.f32.vlgmr.msra.gmra.mrb[8].mxu0 %vm507_vm5, %v6193_v62  ;;  %v6732_v62 = vpack.c.bf16 %v5467_v55, %v5465_v53 }
 0x92f   : > { %6709 = vmatpush1.bf16.msra.mxu0 %v6708_v4  ;;  %4978 = vmatprep.mubr.f32.mxu0 %v7324_v0  ;;  %v6217_v4 = vld [vmem:[%s8366_s3 + $0x78] sm:$0xff] }
 0x930   : > { %6711 = vmatprep.subr.bf16.mxu0 %v6710_v9 }
 0x932   : > { %6200 = vmatmul.mubr.msk.f32.vlgmr.msra.gmra.mrb[4].mxu0 %vm507_vm5, %v6198_v6  ;;  %v5833_v49 = vpop.permute.xlu0 %5832 }
 0x933   : > { %6713 = vmatpush3.bf16.msra.mxu0 %v6710_v9  ;;  %4984 = vmatprep.mubr.f32.mxu0 %v7324_v0  ;;  %v5656_v9 = vsel %vm8374_vm6, %v7305_v59, %v7294_v58 }
 0x934   : > { %6715 = vmatprep.subr.bf16.mxu0 %v6714_v24 }
 0x935   : > { %v5838_v18 = vpop.permute.xlu1 %5837 }
 0x936   : > { %6201 = vmatmul.mubr.msk.f32.gmra.mrb[6].mxu0 %vm507_vm5, %v6199_v51 }
 0x937   : > { %6499 = vmatprep.mubr.msk.f32.mxu0 %vm507_vm5, %v6198_v6  ;;  %v6740_v6 = vpack.c.bf16 %v5656_v9, %v5654_v10 }
 0x93a   : > { %6500 = vmatmul.mubr.msk.f32.vlgmr.msra.gmra.mrb[8].mxu0 %vm507_vm5, %v6199_v51 }
 0x93b   : > { %6717 = vmatpush1.bf16.msra.mxu0 %v6716_v5  ;;  %5167 = vmatprep.mubr.f32.mxu0 %v7324_v0 }
 0x93c   : > { %6719 = vmatprep.subr.bf16.mxu0 %v6718_v32 }
 0x93e   : > { %6206 = vmatmul.mubr.msk.f32.vlgmr.msra.gmra.mrb[4].mxu0 %vm507_vm5, %v6204_v33 }
 0x93f   : > { %6721 = vmatpush3.bf16.msra.mxu0 %v6718_v32  ;;  %5173 = vmatprep.mubr.f32.mxu0 %v7324_v0 }
 0x940   : > { %6723 = vmatprep.subr.bf16.mxu0 %v6722_v45 }
 0x942   : > { %6207 = vmatmul.mubr.msk.f32.gmra.mrb[6].mxu0 %vm507_vm5, %v6205_v46 }
 0x943   : > { %6506 = vmatprep.mubr.msk.f32.mxu0 %vm507_vm5, %v6204_v33 }
 0x946   : > { %6507 = vmatmul.mubr.msk.f32.vlgmr.msra.gmra.mrb[8].mxu0 %vm507_vm5, %v6205_v46 }
 0x947   : > { %6725 = vmatpush1.bf16.msra.mxu0 %v6724_v28  ;;  %5356 = vmatprep.mubr.f32.mxu0 %v7324_v0 }
 0x948   : > { %6727 = vmatprep.subr.bf16.mxu0 %v6726_v36 }
 0x94a   : > { %6212 = vmatmul.mubr.msk.f32.vlgmr.msra.gmra.mrb[4].mxu0 %vm507_vm5, %v6210_v15 }
 0x94b   : > { %6729 = vmatpush3.bf16.msra.mxu0 %v6726_v36  ;;  %5362 = vmatprep.mubr.f32.mxu0 %v7324_v0 }
 0x94c   : > { %6731 = vmatprep.subr.bf16.mxu0 %v6730_v22 }
 0x94e   : > { %6213 = vmatmul.mubr.msk.f32.gmra.mrb[6].mxu0 %vm507_vm5, %v6211_v44 }
 0x94f   : > { %6513 = vmatprep.mubr.msk.f32.mxu0 %vm507_vm5, %v6210_v15 }
 0x952   : > { %6514 = vmatmul.mubr.msk.f32.vlgmr.msra.gmra.mrb[8].mxu0 %vm507_vm5, %v6211_v44 }
 0x953   : > { %6733 = vmatpush1.bf16.msra.mxu0 %v6732_v62  ;;  %5545 = vmatprep.mubr.f32.mxu0 %v7324_v0 }
 0x954   : > { %6735 = vmatprep.subr.bf16.mxu0 %v6734_v63 }
 0x956   : > { %6218 = vmatmul.mubr.msk.f32.vlgmr.msra.gmra.mrb[4].mxu0 %vm507_vm5, %v6216_v12 }
 0x957   : > { %6737 = vmatpush3.bf16.msra.mxu0 %v6734_v63  ;;  %5551 = vmatprep.mubr.f32.mxu0 %v7324_v0 }
 0x958   : > { %6739 = vmatprep.subr.bf16.mxu0 %v6738_v3 }
 0x95a   : > { %6219 = vmatmul.mubr.msk.f32.gmra.mrb[6].mxu0 %vm507_vm5, %v6217_v4 }
 0x95b   : > { %6520 = vmatprep.mubr.msk.f32.mxu0 %vm507_vm5, %v6216_v12 }
 0x95e   : > { %6521 = vmatmul.mubr.msk.f32.vlgmr.msra.gmra.mrb[8].mxu0 %vm507_vm5, %v6217_v4 }
 0x95f   : > { %6741 = vmatpush1.bf16.msra.mxu0 %v6740_v6  ;;  %5734 = vmatprep.mubr.f32.mxu0 %v7324_v0 }
 0x960   : > { %6743 = vmatprep.subr.bf16.mxu0 %v6742_v16 }
 0x962   : > { %6224 = vmatmul.mubr.msk.f32.vlgmr.msra.gmra.mrb[4].mxu0 %vm507_vm5, %v6222_v8 }
 0x963   : > { %6745 = vmatpush3.bf16.msra.mxu0 %v6742_v16  ;;  %5740 = vmatprep.mubr.f32.mxu0 %v7324_v0 }
 0x966   : > { %6225 = vmatmul.mubr.msk.f32.gmra.mrb[6].mxu0 %vm507_vm5, %v6223_v19 }
 0x967   : > { %6527 = vmatprep.mubr.msk.f32.mxu0 %vm507_vm5, %v6222_v8 }
 0x96a   : > { %6528 = vmatmul.mubr.msk.f32.vlgmr.msra.gmra.mrb[8].mxu0 %vm507_vm5, %v6223_v19 }
 0xa35   : > { %v5736_v24 = vpop.f32.mrb[4].mxu0 }
 0xa36   : > { %v8289_v51 = vadd.f32 %v5833_v49, %v5736_v24  ;;  %v5738_v14 = vpop.f32.mrb[5].mxu0 }
 0xa37   : > { %v5841_v13 = vadd.f32 %v5833_v49, %v5738_v14 }
 0xa38   : > { %5848 = vrot.lane.b32.xlu1 %v8289_v51, %s7342_s27 }
 0xa39   : > { %5888 = vrot.lane.b32.xlu0 %v5841_v13, %s7354_s11  ;;  %v5742_v0 = vpop.f32.mrb[6].mxu0 }
 0xa3a   : > { %v8294_v57 = vadd.f32 %v5838_v18, %v5742_v0  ;;  %v5744_v20 = vpop.f32.mrb[7].mxu0 }
 0xa3b   : > { %v5844_v1 = vadd.f32 %v5838_v18, %v5744_v20 }
 0xa3c   : > { %5854 = vrot.lane.b32.xlu1 %v8289_v51, %s7355_s17 }
 0xa3d   : > { %5850 = vrot.lane.b32.xlu0 %v8294_v57, %s7342_s27  ;;  %v6529_v29 = vpop.f32.mrb[8].mxu0  ;;  %s7360_s27 = smov 112  }
 0xa3e   : > { %v5813_v30 = vpop.f32.mrb[9].mxu0  ;;  %v5845_v5 = vadd.f32 %v6529_v29, %v5838_v18 }
 0xa3f   : > { %v5842_v32 = vadd.f32 %v5833_v49, %v5813_v30 }
 0xa40   : > { %5860 = vrot.lane.b32.xlu1 %v8289_v51, %s7356_s18 }
 0xa41   : > { %5856 = vrot.lane.b32.xlu0 %v8294_v57, %s7355_s17 }
 0xa44   : > { %5866 = vrot.lane.b32.xlu1 %v8289_v51, %s7357_s19 }
 0xa45   : > { %5862 = vrot.lane.b32.xlu0 %v8294_v57, %s7356_s18 }
 0xa48   : > { %5872 = vrot.lane.b32.xlu1 %v8289_v51, %s7358_s20 }
 0xa49   : > { %5868 = vrot.lane.b32.xlu0 %v8294_v57, %s7357_s19 }
 0xa4c   : > { %5878 = vrot.lane.b32.xlu1 %v8289_v51, %s7359_s22 }
 0xa4d   : > { %5874 = vrot.lane.b32.xlu0 %v8294_v57, %s7358_s20 }
 0xa50   : > { %5886 = vrot.lane.b32.xlu1 %v8289_v51, %s7354_s11 }
 0xa51   : > { %5880 = vrot.lane.b32.xlu0 %v8294_v57, %s7359_s22 }
 0xa54   : > { %5899 = vrot.lane.b32.xlu1 %v5841_v13, %s7360_s27 }
 0xa55   : > { %5901 = vrot.lane.b32.xlu0 %v5844_v1, %s7360_s27 }
 0xa58   : > { %5905 = vrot.lane.b32.xlu1 %v5841_v13, %s7343_s28 }
 0xa59   : > { %5907 = vrot.lane.b32.xlu0 %v5844_v1, %s7343_s28  ;;  %s7365_s28 = smov 98  }
 0xa5c   : > { %5911 = vrot.lane.b32.xlu1 %v5841_v13, %s7345_s30 }
 0xa5d   : > { %5913 = vrot.lane.b32.xlu0 %v5844_v1, %s7345_s30 }
 0xa60   : > { %5917 = vrot.lane.b32.xlu1 %v5841_v13, %s7361_s12 }
 0xa61   : > { %5919 = vrot.lane.b32.xlu0 %v5844_v1, %s7361_s12 }
 0xa64   : > { %5923 = vrot.lane.b32.xlu1 %v5841_v13, %s7362_s13 }
 0xa65   : > { %5925 = vrot.lane.b32.xlu0 %v5844_v1, %s7362_s13 }
 0xa68   : > { %5929 = vrot.lane.b32.xlu1 %v5841_v13, %s7363_s14 }
 0xa69   : > { %5931 = vrot.lane.b32.xlu0 %v5844_v1, %s7363_s14 }
 0xa6c   : > { %5937 = vrot.lane.b32.xlu1 %v5841_v13, %s7364_s15 }
 0xa6d   : > { %5892 = vrot.lane.b32.xlu0 %v5844_v1, %s7354_s11 }
 0xa70   : > { %5890 = vrot.lane.b32.xlu1 %v8294_v57, %s7354_s11 }
 0xa71   : > { %5943 = vrot.lane.b32.xlu0 %v5845_v5, %s7364_s15 }
 0xa74   : > { %5941 = vrot.lane.b32.xlu1 %v5844_v1, %s7364_s15 }
 0xa75   : > { %5939 = vrot.lane.b32.xlu0 %v5842_v32, %s7364_s15 }
 0xa78   : > { %5950 = vrot.lane.b32.xlu1 %v5842_v32, %s7365_s28 }
 0xa79   : > { %5952 = vrot.lane.b32.xlu0 %v5845_v5, %s7365_s28 }
 0xaaa   : > { %v5849_v21 = vpop.permute.xlu1 %5848 }
 0xaab   : > { %v5889_v33 = vpop.permute.xlu0 %5888  ;;  %v5956_v43 = vsel %vm507_vm5, %v8289_v51, %v5849_v21 }
 0xaae   : > { %v5855_v34 = vpop.permute.xlu1 %5854 }
 0xaaf   : > { %v5851_v39 = vpop.permute.xlu0 %5850  ;;  %v5959_v40 = vsel %vm5958_vm8, %v5956_v43, %v5855_v34 }
 0xab0   : > { %v5957_v62 = vsel %vm507_vm5, %v8294_v57, %v5851_v39 }
 0xab2   : > { %v5861_v41 = vpop.permute.xlu1 %5860 }
 0xab3   : > { %v5857_v42 = vpop.permute.xlu0 %5856  ;;  %v5962_v11 = vsel %vm5961_vm9, %v5959_v40, %v5861_v41 }
 0xab4   : > { %v5960_v7 = vsel %vm5958_vm8, %v5957_v62, %v5857_v42 }
 0xab6   : > { %v5867_v45 = vpop.permute.xlu1 %5866 }
 0xab7   : > { %v5863_v46 = vpop.permute.xlu0 %5862  ;;  %v5965_v35 = vsel %vm5964_vm10, %v5962_v11, %v5867_v45 }
 0xab8   : > { %v5963_v52 = vsel %vm5961_vm9, %v5960_v7, %v5863_v46 }
 0xaba   : > { %v5873_v25 = vpop.permute.xlu1 %5872 }
 0xabb   : > { %v5869_v48 = vpop.permute.xlu0 %5868  ;;  %v5968_v28 = vsel %vm5967_vm11, %v5965_v35, %v5873_v25 }
 0xabc   : > { %v5966_v60 = vsel %vm5964_vm10, %v5963_v52, %v5869_v48 }
 0xabe   : > { %v5879_v38 = vpop.permute.xlu1 %5878 }
 0xabf   : > { %v5875_v27 = vpop.permute.xlu0 %5874  ;;  %v5971_v26 = vsel %vm5970_vm13, %v5968_v28, %v5879_v38 }
 0xac0   : > { %v5969_v59 = vsel %vm5967_vm11, %v5966_v60, %v5875_v27 }
 0xac2   : > { %v5887_v36 = vpop.permute.xlu1 %5886 }
 0xac3   : > { %v5895_v15 = vsel %vm5894_vm14, %v5887_v36, %v5889_v33  ;;  %v5881_v31 = vpop.permute.xlu0 %5880 }
 0xac4   : > { %v5974_v37 = vsel %vm5973_vm15, %v5971_v26, %v5895_v15  ;;  %v5972_v3 = vsel %vm5970_vm13, %v5969_v59, %v5881_v31 }
 0xac5   : > { %5990 = vst [vmem:[%s8328_s9] sm:$0xff] %v5974_v37 }
 0xac6   : > { %v5900_v47 = vpop.permute.xlu1 %5899 }
 0xac7   : > { %v5902_v17 = vpop.permute.xlu0 %5901 }
 0xaca   : > { %v5906_v22 = vpop.permute.xlu1 %5905 }
 0xacb   : > { %v5908_v44 = vpop.permute.xlu0 %5907  ;;  %v5976_v10 = vsel %vm507_vm5, %v5900_v47, %v5906_v22 }
 0xacc   : > { %v5977_v8 = vsel %vm507_vm5, %v5902_v17, %v5908_v44 }
 0xace   : > { %v5912_v50 = vpop.permute.xlu1 %5911 }
 0xacf   : > { %v5914_v23 = vpop.permute.xlu0 %5913  ;;  %v5978_v16 = vsel %vm5958_vm8, %v5976_v10, %v5912_v50 }
 0xad0   : > { %v5979_v24 = vsel %vm5958_vm8, %v5977_v8, %v5914_v23 }
 0xad2   : > { %v5918_v53 = vpop.permute.xlu1 %5917 }
 0xad3   : > { %v5920_v55 = vpop.permute.xlu0 %5919  ;;  %v5980_v19 = vsel %vm5961_vm9, %v5978_v16, %v5918_v53 }
 0xad4   : > { %v5981_v13 = vsel %vm5961_vm9, %v5979_v24, %v5920_v55 }
 0xad6   : > { %v5924_v56 = vpop.permute.xlu1 %5923 }
 0xad7   : > { %v5926_v58 = vpop.permute.xlu0 %5925  ;;  %v5982_v51 = vsel %vm5964_vm10, %v5980_v19, %v5924_v56 }
 0xad8   : > { %v5983_v20 = vsel %vm5964_vm10, %v5981_v13, %v5926_v58 }
 0xada   : > { %v5930_v61 = vpop.permute.xlu1 %5929 }
 0xadb   : > { %v5932_v54 = vpop.permute.xlu0 %5931  ;;  %v5984_v18 = vsel %vm5967_vm11, %v5982_v51, %v5930_v61 }
 0xadc   : > { %v5985_v30 = vsel %vm5967_vm11, %v5983_v20, %v5932_v54 }
 0xade   : > { %v5938_v63 = vpop.permute.xlu1 %5937 }
 0xadf   : > { %v5893_v12 = vpop.permute.xlu0 %5892 }
 0xae2   : > { %v5891_v2 = vpop.permute.xlu1 %5890 }
 0xae3   : > { %v5896_v4 = vsel %vm5894_vm14, %v5891_v2, %v5893_v12  ;;  %v5944_v9 = vpop.permute.xlu0 %5943 }
 0xae4   : > { %v5975_v6 = vsel %vm5973_vm15, %v5972_v3, %v5896_v4 }
 0xae5   : > { %5992 = vst [vmem:[%s8328_s9 + $0x10] sm:$0xff] %v5975_v6 }
 0xae6   : > { %v5942_v49 = vpop.permute.xlu1 %5941 }
 0xae7   : > { %v5940_v14 = vpop.permute.xlu0 %5939  ;;  %v5947_v0 = vsel %vm5945_vm0, %v5942_v49, %v5944_v9 }
 0xae8   : > { %v5946_v57 = vsel %vm5945_vm0, %v5938_v63, %v5940_v14  ;;  %v5987_v32 = vsel %vm5970_vm13, %v5985_v30, %v5947_v0 }
 0xae9   : > { %v5986_v29 = vsel %vm5970_vm13, %v5984_v18, %v5946_v57 }
 0xaea   : > { %v5951_v1 = vpop.permute.xlu1 %5950 }
 0xaeb   : > { %v5988_v5 = vsel %vm5973_vm15, %v5986_v29, %v5951_v1  ;;  %v5953_v21 = vpop.permute.xlu0 %5952 }
 0xaec   : > { %5991 = vst [vmem:[%s8328_s9 + $0x8] sm:$0xff] %v5988_v5  ;;  %v5989_v33 = vsel %vm5973_vm15, %v5987_v32, %v5953_v21 }
 0xaed   : > { %5993 = vst [vmem:[%s8328_s9 + $0x18] sm:$0xff] %v5989_v33 }
 0xaee PF: > { %s17_s24 = sadd.s32 1, %s7322_s24  }
 0xaef   : > { %p14_p4 = scmp.ge.s32.totalorder %s17_s24, 4  }
 0xaf1   :  { %16 = sbr.rel (!%p14_p4) target bundleno = 1 (0x1), region = 105 }

</bundles_post_ra>
